<compile_context>
chip_gen: v5e
topology: v5e:2x2
jax: 0.10.0
libtpu: 0.0.40
codegen_flags: <defaults>
</compile_context>

<pallas_src>
import functools
import math

import jax
import jax.numpy as jnp
from jax.experimental import pallas as pl
from jax.experimental.pallas import tpu as pltpu

BN_EPS = 1e-5


# ---------------------------------------------------------------------------
# Fused Pallas kernel: [conv1+BN+ReLU, conv2+BN+ReLU] + residual conv, per image.
# ---------------------------------------------------------------------------
def _res_convblock_kernel(xcol_ref, w1r_ref, b1r_ref, w2_ref, b2_ref,
                          o_ref, a1pad_ref, *, h, w, cout, res_off):
    # xcol_ref : (M, 9*Cin) bf16   im2col of the padded input, M = H*W
    # w1r_ref  : (9*Cin, res_off+Cout) bf16  [conv1*BN1-scale | pad | residual]
    # b1r_ref  : (1, res_off+Cout) f32       [BN1-folded bias | pad | res bias]
    # w2_ref   : (9, Cout, Cout) bf16        conv2 taps, BN2 scale folded in
    # b2_ref   : (1, Cout) f32               BN2-folded bias
    # o_ref    : (M, Cout) f32
    # a1pad_ref: VMEM (M + 2*(W+1), Cout) f32 — conv1 activation, flat-M padded
    m = h * w
    pad = w + 1

    xcol = xcol_ref[...]                                     # (M, 9*Cin) bf16

    # --- conv1 and residual conv as ONE MXU matmul over the shared im2col ----
    y = jnp.dot(xcol, w1r_ref[...], preferred_element_type=jnp.float32)
    y = y + b1r_ref[...]                                     # (M, res_off+Cout)
    a1 = jnp.maximum(y[:, :cout], 0.0)                       # conv1+BN1+ReLU
    res = y[:, res_off:]                                     # residual branch

    # Park the residual in the output VMEM block (frees its vregs for the loop)
    o_ref[...] = res

    # --- stage conv1 output in flat-M padded VMEM scratch (halo-only zeroing) -
    a1pad_ref[pl.ds(0, pad), :] = jnp.zeros((pad, cout), jnp.float32)
    a1pad_ref[pl.ds(pad + m, pad), :] = jnp.zeros((pad, cout), jnp.float32)
    a1pad_ref[pl.ds(pad, m), :] = a1

    # Column masks: a flat-M shift wraps across image rows; mask those taps.
    col = jax.lax.broadcasted_iota(jnp.int32, (m, 1), 0) % w
    keep_left = col >= 1                                     # reading x-1 valid
    keep_right = col <= w - 2                                # reading x+1 valid

    # --- conv2: 9 shifted taps read straight from VMEM, bf16 MXU, f32 acc ----
    acc = jnp.zeros((m, cout), jnp.float32)
    for k in range(9):
        dy, dx = k // 3 - 1, k % 3 - 1
        tap = a1pad_ref[pl.ds(pad + dy * w + dx, m), :]      # (M, Cout) f32
        if dx == -1:
            tap = jnp.where(keep_left, tap, 0.0)
        elif dx == 1:
            tap = jnp.where(keep_right, tap, 0.0)
        acc = acc + jnp.dot(tap.astype(jnp.bfloat16), w2_ref[k],
                            preferred_element_type=jnp.float32)

    a2 = jnp.maximum(acc + b2_ref[...], 0.0)                 # conv2+BN2+ReLU
    o_ref[...] = a2 + o_ref[...]                             # + residual


# ---------------------------------------------------------------------------
# Wrapper
# ---------------------------------------------------------------------------
def _im2col_3x3(x):
    """x: (N, H, W, C) f32 -> (N, H*W, 9*C) bf16, taps ordered (dy, dx, C)."""
    n, h, w, c = x.shape
    xp = jnp.pad(x, ((0, 0), (1, 1), (1, 1), (0, 0)))
    cols = [xp[:, dy:dy + h, dx:dx + w, :].reshape(n, h * w, c)
            for dy in range(3) for dx in range(3)]
    return jnp.concatenate(cols, axis=-1).astype(jnp.bfloat16)


def res_convblock_forward(params, x_nchw):
    x = jnp.transpose(x_nchw, (0, 2, 3, 1)).astype(jnp.float32)   # NCHW -> NHWC
    n, h, w, _ = x.shape
    cin9, w1r_cols = params["w1r"].shape
    cout = params["b2"].shape[1]
    res_off = w1r_cols - cout
    m = h * w

    xcol = _im2col_3x3(x)                         # (N, M, 9*Cin) bf16 (Cin tiny)

    kernel = functools.partial(_res_convblock_kernel,
                               h=h, w=w, cout=cout, res_off=res_off)
    out = pl.pallas_call(
        kernel,
        out_shape=jax.ShapeDtypeStruct((n, m, cout), jnp.float32),
        grid=(n,),
        in_specs=[
            pl.BlockSpec((None, m, cin9), lambda b: (b, 0, 0)),       # im2col
            pl.BlockSpec((cin9, w1r_cols), lambda b: (0, 0)),         # w1 | wr
            pl.BlockSpec((1, w1r_cols), lambda b: (0, 0)),            # b1 | br
            pl.BlockSpec((9, cout, cout), lambda b: (0, 0, 0)),       # w2 taps
            pl.BlockSpec((1, cout), lambda b: (0, 0)),                # b2
        ],
        out_specs=pl.BlockSpec((None, m, cout), lambda b: (b, 0, 0)),
        scratch_shapes=[pltpu.VMEM((m + 2 * (w + 1), cout), jnp.float32)],
        compiler_params=pltpu.CompilerParams(
            dimension_semantics=("parallel",),
        ),
    )(xcol, params["w1r"], params["b1r"], params["w2"], params["b2"])

    out = out.reshape(n, h, w, cout)
    return jnp.transpose(out, (0, 3, 1, 2))                           # -> NCHW


# ---------------------------------------------------------------------------
# Deterministic parameters (PyTorch-style init) + BN folding + matmul layout
# ---------------------------------------------------------------------------
def make_params(key, ch_in, ch_out):
    ks = jax.random.split(key, 14)
    bi = 1.0 / math.sqrt(ch_in * 9)
    bm = 1.0 / math.sqrt(ch_out * 9)
    u = jax.random.uniform
    raw = {
        "w1": u(ks[0], (3, 3, ch_in, ch_out), jnp.float32, -bi, bi),
        "b1": u(ks[1], (ch_out,), jnp.float32, -bi, bi),
        "w2": u(ks[2], (3, 3, ch_out, ch_out), jnp.float32, -bm, bm),
        "b2": u(ks[3], (ch_out,), jnp.float32, -bm, bm),
        "wr": u(ks[4], (3, 3, ch_in, ch_out), jnp.float32, -bi, bi),
        "br": u(ks[5], (ch_out,), jnp.float32, -bi, bi),
        # BatchNorm eval-mode params: (gamma, beta, running_mean, running_var)
        "bn1": (u(ks[6], (ch_out,), jnp.float32, 0.5, 1.5),
                u(ks[7], (ch_out,), jnp.float32, -0.5, 0.5),
                u(ks[8], (ch_out,), jnp.float32, -0.5, 0.5),
                u(ks[9], (ch_out,), jnp.float32, 0.5, 1.5)),
        "bn2": (u(ks[10], (ch_out,), jnp.float32, 0.5, 1.5),
                u(ks[11], (ch_out,), jnp.float32, -0.5, 0.5),
                u(ks[12], (ch_out,), jnp.float32, -0.5, 0.5),
                u(ks[13], (ch_out,), jnp.float32, 0.5, 1.5)),
    }
    g1, be1, m1, v1 = raw["bn1"]
    g2, be2, m2, v2 = raw["bn2"]
    s1 = g1 / jnp.sqrt(v1 + BN_EPS)
    s2 = g2 / jnp.sqrt(v2 + BN_EPS)

    # BN scales folded into the conv weights (per-output-channel column scale).
    w1f = (raw["w1"] * s1).reshape(9 * ch_in, ch_out)
    wrf = raw["wr"].reshape(9 * ch_in, ch_out)

    # Residual columns placed at a native-lane-aligned offset (>= 128) so the
    # in-kernel split of the fused matmul result needs no unaligned lane slice.
    res_off = max(128, ((ch_out + 127) // 128) * 128)
    w1r = jnp.zeros((9 * ch_in, res_off + ch_out), jnp.float32)
    w1r = w1r.at[:, :ch_out].set(w1f).at[:, res_off:].set(wrf)
    b1r = jnp.zeros((1, res_off + ch_out), jnp.float32)
    b1r = b1r.at[:, :ch_out].set(be1 + (raw["b1"] - m1) * s1)
    b1r = b1r.at[:, res_off:].set(raw["br"])

    kparams = {
        "w1r": w1r.astype(jnp.bfloat16),
        "b1r": b1r,
        "w2": (raw["w2"] * s2).reshape(9, ch_out, ch_out).astype(jnp.bfloat16),
        "b2": (be2 + (raw["b2"] - m2) * s2).reshape(1, ch_out),
    }
    return kparams, raw


# ---------------------------------------------------------------------------
# Plain-JAX/XLA reference: the true module forward in f32 (eval-mode BN).
# ---------------------------------------------------------------------------
def _reference_forward(raw, x_nchw):
    x = jnp.transpose(x_nchw, (0, 2, 3, 1)).astype(jnp.float32)

    def conv(t, w_hwio, b):
        y = jax.lax.conv_general_dilated(
            t, w_hwio, window_strides=(1, 1), padding="SAME",
            dimension_numbers=("NHWC", "HWIO", "NHWC"),
            precision=jax.lax.Precision.HIGHEST)
        return y + b

    def bn(t, p):
        gamma, beta, mean, var = p
        return (t - mean) * (gamma / jnp.sqrt(var + BN_EPS)) + beta

    a = jax.nn.relu(bn(conv(x, raw["w1"], raw["b1"]), raw["bn1"]))
    a = jax.nn.relu(bn(conv(a, raw["w2"], raw["b2"]), raw["bn2"]))
    r = conv(x, raw["wr"], raw["br"])
    return jnp.transpose(a + r, (0, 3, 1, 2))


# ---------------------------------------------------------------------------
if __name__ == "__main__":
    batch, ch_in, ch_out, spatial = 2, 4, 32, 16

    key = jax.random.PRNGKey(0)
    kx, kp = jax.random.split(key)
    x = jax.random.normal(kx, (batch, ch_in, spatial, spatial), jnp.float32)
    params, raw = make_params(kp, ch_in, ch_out)

    fwd = jax.jit(res_convblock_forward)
    out = jax.block_until_ready(fwd(params, x))

    assert out.shape == (batch, ch_out, spatial, spatial), out.shape
    assert bool(jnp.all(jnp.isfinite(out)))

    ref = _reference_forward(raw, x)
    max_err = float(jnp.max(jnp.abs(out - ref)))
    assert max_err < 0.1, f"kernel deviates from reference: max abs err {max_err}"
    print("KERNEL_OK")
</pallas_src>

<mosaic_0001>
module attributes {stable_mosaic.version = 11 : i64} {
  func.func @_res_convblock_kernel(%arg0: i32, %arg1: memref<1x256x36xbf16, #tpu.memory_space<vmem>>, %arg2: memref<36x160xbf16, #tpu.memory_space<vmem>>, %arg3: memref<1x160xf32, #tpu.memory_space<vmem>>, %arg4: memref<9x32x32xbf16, #tpu.memory_space<vmem>>, %arg5: memref<1x32xf32, #tpu.memory_space<vmem>>, %arg6: memref<1x256x32xf32, #tpu.memory_space<vmem>>, %arg7: memref<290x32xf32, #tpu.memory_space<vmem>>) attributes {dimension_semantics = [#tpu.dimension_semantics<parallel>], iteration_bounds = array<i64: 2>, scalar_prefetch = 0 : i64, scratch_operands = 1 : i64, tpu.core_type = #tpu.core_type<tc>, window_params = [{transform_indices = @transform_0, window_bounds = array<i64: 1, 256, 36>}, {pipeline_mode = #tpu.pipeline_mode<synchronous>, transform_indices = @transform_1, window_bounds = array<i64: 36, 160>}, {pipeline_mode = #tpu.pipeline_mode<synchronous>, transform_indices = @transform_2, window_bounds = array<i64: 1, 160>}, {pipeline_mode = #tpu.pipeline_mode<synchronous>, transform_indices = @transform_3, window_bounds = array<i64: 9, 32, 32>}, {pipeline_mode = #tpu.pipeline_mode<synchronous>, transform_indices = @transform_4, window_bounds = array<i64: 1, 32>}, {transform_indices = @transform_5, window_bounds = array<i64: 1, 256, 32>}]} {
    %c0 = arith.constant 0 : index
    %c0_0 = arith.constant 0 : index
    %c0_1 = arith.constant 0 : index
    %0 = vector.load %arg1[%c0, %c0_0, %c0_1] : memref<1x256x36xbf16, #tpu.memory_space<vmem>>, vector<1x256x36xbf16>
    %1 = vector.shape_cast %0 : vector<1x256x36xbf16> to vector<256x36xbf16>
    %c0_2 = arith.constant 0 : index
    %c0_3 = arith.constant 0 : index
    %2 = vector.load %arg2[%c0_2, %c0_3] : memref<36x160xbf16, #tpu.memory_space<vmem>>, vector<36x160xbf16>
    %cst = arith.constant dense<0.000000e+00> : vector<256x160xf32>
    %3 = tpu.matmul %1, %2, %cst {dimension_numbers = #tpu.dot_dimension_numbers<[1], [0], [0], [1], [0, 0, 1, 1], [], []>} : vector<256x36xbf16>, vector<36x160xbf16>, vector<256x160xf32> -> vector<256x160xf32>
    %c0_4 = arith.constant 0 : index
    %c0_5 = arith.constant 0 : index
    %4 = vector.load %arg3[%c0_4, %c0_5] : memref<1x160xf32, #tpu.memory_space<vmem>>, vector<1x160xf32>
    %5 = vector.broadcast %4 : vector<1x160xf32> to vector<256x160xf32>
    %6 = arith.addf %3, %5 : vector<256x160xf32>
    %7 = vector.extract_strided_slice %6 {offsets = [0, 0], sizes = [256, 32], strides = [1, 1]} : vector<256x160xf32> to vector<256x32xf32>
    %cst_6 = arith.constant 0.000000e+00 : f32
    %8 = vector.broadcast %cst_6 : f32 to vector<256x32xf32>
    %9 = arith.maximumf %7, %8 : vector<256x32xf32>
    %10 = vector.extract_strided_slice %6 {offsets = [0, 128], sizes = [256, 32], strides = [1, 1]} : vector<256x160xf32> to vector<256x32xf32>
    %c0_7 = arith.constant 0 : index
    %c0_8 = arith.constant 0 : index
    %c0_9 = arith.constant 0 : index
    %11 = vector.load %arg6[%c0_7, %c0_8, %c0_9] : memref<1x256x32xf32, #tpu.memory_space<vmem>>, vector<1x256x32xf32>
    %12 = vector.shape_cast %11 : vector<1x256x32xf32> to vector<256x32xf32>
    %13 = vector.shape_cast %10 : vector<256x32xf32> to vector<1x256x32xf32>
    tpu.vector_store %arg6[%c0_7, %c0_8, %c0_9], %13 {strides = array<i32>} : memref<1x256x32xf32, #tpu.memory_space<vmem>>, vector<1x256x32xf32>,
    %cst_10 = arith.constant 0.000000e+00 : f32
    %14 = vector.broadcast %cst_10 : f32 to vector<17x32xf32>
    %c0_11 = arith.constant 0 : index
    %c0_12 = arith.constant 0 : index
    %15 = vector.load %arg7[%c0_11, %c0_12] : memref<290x32xf32, #tpu.memory_space<vmem>>, vector<17x32xf32>
    tpu.vector_store %arg7[%c0_11, %c0_12], %14 {strides = array<i32>} : memref<290x32xf32, #tpu.memory_space<vmem>>, vector<17x32xf32>,
    %cst_13 = arith.constant 0.000000e+00 : f32
    %16 = vector.broadcast %cst_13 : f32 to vector<17x32xf32>
    %c273 = arith.constant 273 : index
    %c0_14 = arith.constant 0 : index
    %17 = vector.load %arg7[%c273, %c0_14] : memref<290x32xf32, #tpu.memory_space<vmem>>, vector<17x32xf32>
    tpu.vector_store %arg7[%c273, %c0_14], %16 {strides = array<i32>} : memref<290x32xf32, #tpu.memory_space<vmem>>, vector<17x32xf32>,
    %c17 = arith.constant 17 : index
    %c0_15 = arith.constant 0 : index
    %18 = vector.load %arg7[%c17, %c0_15] : memref<290x32xf32, #tpu.memory_space<vmem>>, vector<256x32xf32>
    tpu.vector_store %arg7[%c17, %c0_15], %9 {strides = array<i32>} : memref<290x32xf32, #tpu.memory_space<vmem>>, vector<256x32xf32>,
    %19 = tpu.iota {dimensions = array<i32: 0>} : vector<256x1xi32>
    %c16_i32 = arith.constant 16 : i32
    %c0_i32 = arith.constant 0 : i32
    %20 = arith.cmpi eq, %c16_i32, %c0_i32 : i32
    %c1_i32 = arith.constant 1 : i32
    %21 = arith.select %20, %c1_i32, %c16_i32 : i32
    %22 = vector.broadcast %21 : i32 to vector<256x1xi32>
    %23 = arith.remsi %19, %22 : vector<256x1xi32>
    %c0_i32_16 = arith.constant 0 : i32
    %24 = vector.broadcast %c0_i32_16 : i32 to vector<256x1xi32>
    %25 = arith.cmpi ne, %23, %24 : vector<256x1xi32>
    %c0_i32_17 = arith.constant 0 : i32
    %26 = vector.broadcast %c0_i32_17 : i32 to vector<256x1xi32>
    %27 = arith.cmpi slt, %23, %26 : vector<256x1xi32>
    %c0_i32_18 = arith.constant 0 : i32
    %28 = arith.cmpi slt, %21, %c0_i32_18 : i32
    %29 = vector.broadcast %28 : i1 to vector<256x1xi1>
    %30 = vector.broadcast %29 : vector<256x1xi1> to vector<256x1xi1>
    %31 = arith.xori %27, %30 : vector<256x1xi1>
    %32 = arith.andi %31, %25 : vector<256x1xi1>
    %33 = vector.broadcast %21 : i32 to vector<256x1xi32>
    %34 = arith.addi %23, %33 : vector<256x1xi32>
    %35 = arith.select %32, %34, %23 : vector<256x1xi1>, vector<256x1xi32>
    %c1_i32_19 = arith.constant 1 : i32
    %36 = vector.broadcast %c1_i32_19 : i32 to vector<256x1xi32>
    %37 = arith.cmpi sge, %35, %36 : vector<256x1xi32>
    %c14_i32 = arith.constant 14 : i32
    %38 = vector.broadcast %c14_i32 : i32 to vector<256x1xi32>
    %39 = arith.cmpi sle, %35, %38 : vector<256x1xi32>
    %cst_20 = arith.constant 0.000000e+00 : f32
    %40 = vector.broadcast %cst_20 : f32 to vector<256x32xf32>
    %c0_21 = arith.constant 0 : index
    %c0_22 = arith.constant 0 : index
    %41 = vector.load %arg7[%c0_21, %c0_22] : memref<290x32xf32, #tpu.memory_space<vmem>>, vector<256x32xf32>
    %cst_23 = arith.constant 0.000000e+00 : f32
    %42 = vector.shape_cast %37 : vector<256x1xi1> to vector<256x1xi1>
    %43 = vector.broadcast %42 : vector<256x1xi1> to vector<256x32xi1>
    %44 = vector.broadcast %cst_23 : f32 to vector<256x32xf32>
    %45 = arith.select %43, %41, %44 : vector<256x32xi1>, vector<256x32xf32>
    %46 = arith.truncf %45 : vector<256x32xf32> to vector<256x32xbf16>
    %c0_24 = arith.constant 0 : index
    %c0_25 = arith.constant 0 : index
    %c0_26 = arith.constant 0 : index
    %47 = vector.load %arg4[%c0_24, %c0_25, %c0_26] : memref<9x32x32xbf16, #tpu.memory_space<vmem>>, vector<1x32x32xbf16>
    %48 = vector.shape_cast %47 : vector<1x32x32xbf16> to vector<32x32xbf16>
    %cst_27 = arith.constant dense<0.000000e+00> : vector<256x32xf32>
    %49 = tpu.matmul %46, %48, %cst_27 {dimension_numbers = #tpu.dot_dimension_numbers<[1], [0], [0], [1], [0, 0, 1, 1], [], []>} : vector<256x32xbf16>, vector<32x32xbf16>, vector<256x32xf32> -> vector<256x32xf32>
    %50 = arith.addf %40, %49 : vector<256x32xf32>
    %c1 = arith.constant 1 : index
    %c0_28 = arith.constant 0 : index
    %51 = vector.load %arg7[%c1, %c0_28] : memref<290x32xf32, #tpu.memory_space<vmem>>, vector<256x32xf32>
    %52 = arith.truncf %51 : vector<256x32xf32> to vector<256x32xbf16>
    %c1_29 = arith.constant 1 : index
    %c0_30 = arith.constant 0 : index
    %c0_31 = arith.constant 0 : index
    %53 = vector.load %arg4[%c1_29, %c0_30, %c0_31] : memref<9x32x32xbf16, #tpu.memory_space<vmem>>, vector<1x32x32xbf16>
    %54 = vector.shape_cast %53 : vector<1x32x32xbf16> to vector<32x32xbf16>
    %cst_32 = arith.constant dense<0.000000e+00> : vector<256x32xf32>
    %55 = tpu.matmul %52, %54, %cst_32 {dimension_numbers = #tpu.dot_dimension_numbers<[1], [0], [0], [1], [0, 0, 1, 1], [], []>} : vector<256x32xbf16>, vector<32x32xbf16>, vector<256x32xf32> -> vector<256x32xf32>
    %56 = arith.addf %50, %55 : vector<256x32xf32>
    %c2 = arith.constant 2 : index
    %c0_33 = arith.constant 0 : index
    %57 = vector.load %arg7[%c2, %c0_33] : memref<290x32xf32, #tpu.memory_space<vmem>>, vector<256x32xf32>
    %cst_34 = arith.constant 0.000000e+00 : f32
    %58 = vector.shape_cast %39 : vector<256x1xi1> to vector<256x1xi1>
    %59 = vector.broadcast %58 : vector<256x1xi1> to vector<256x32xi1>
    %60 = vector.broadcast %cst_34 : f32 to vector<256x32xf32>
    %61 = arith.select %59, %57, %60 : vector<256x32xi1>, vector<256x32xf32>
    %62 = arith.truncf %61 : vector<256x32xf32> to vector<256x32xbf16>
    %c2_35 = arith.constant 2 : index
    %c0_36 = arith.constant 0 : index
    %c0_37 = arith.constant 0 : index
    %63 = vector.load %arg4[%c2_35, %c0_36, %c0_37] : memref<9x32x32xbf16, #tpu.memory_space<vmem>>, vector<1x32x32xbf16>
    %64 = vector.shape_cast %63 : vector<1x32x32xbf16> to vector<32x32xbf16>
    %cst_38 = arith.constant dense<0.000000e+00> : vector<256x32xf32>
    %65 = tpu.matmul %62, %64, %cst_38 {dimension_numbers = #tpu.dot_dimension_numbers<[1], [0], [0], [1], [0, 0, 1, 1], [], []>} : vector<256x32xbf16>, vector<32x32xbf16>, vector<256x32xf32> -> vector<256x32xf32>
    %66 = arith.addf %56, %65 : vector<256x32xf32>
    %c16 = arith.constant 16 : index
    %c0_39 = arith.constant 0 : index
    %67 = vector.load %arg7[%c16, %c0_39] : memref<290x32xf32, #tpu.memory_space<vmem>>, vector<256x32xf32>
    %cst_40 = arith.constant 0.000000e+00 : f32
    %68 = vector.shape_cast %37 : vector<256x1xi1> to vector<256x1xi1>
    %69 = vector.broadcast %68 : vector<256x1xi1> to vector<256x32xi1>
    %70 = vector.broadcast %cst_40 : f32 to vector<256x32xf32>
    %71 = arith.select %69, %67, %70 : vector<256x32xi1>, vector<256x32xf32>
    %72 = arith.truncf %71 : vector<256x32xf32> to vector<256x32xbf16>
    %c3 = arith.constant 3 : index
    %c0_41 = arith.constant 0 : index
    %c0_42 = arith.constant 0 : index
    %73 = vector.load %arg4[%c3, %c0_41, %c0_42] : memref<9x32x32xbf16, #tpu.memory_space<vmem>>, vector<1x32x32xbf16>
    %74 = vector.shape_cast %73 : vector<1x32x32xbf16> to vector<32x32xbf16>
    %cst_43 = arith.constant dense<0.000000e+00> : vector<256x32xf32>
    %75 = tpu.matmul %72, %74, %cst_43 {dimension_numbers = #tpu.dot_dimension_numbers<[1], [0], [0], [1], [0, 0, 1, 1], [], []>} : vector<256x32xbf16>, vector<32x32xbf16>, vector<256x32xf32> -> vector<256x32xf32>
    %76 = arith.addf %66, %75 : vector<256x32xf32>
    %c17_44 = arith.constant 17 : index
    %c0_45 = arith.constant 0 : index
    %77 = vector.load %arg7[%c17_44, %c0_45] : memref<290x32xf32, #tpu.memory_space<vmem>>, vector<256x32xf32>
    %78 = arith.truncf %77 : vector<256x32xf32> to vector<256x32xbf16>
    %c4 = arith.constant 4 : index
    %c0_46 = arith.constant 0 : index
    %c0_47 = arith.constant 0 : index
    %79 = vector.load %arg4[%c4, %c0_46, %c0_47] : memref<9x32x32xbf16, #tpu.memory_space<vmem>>, vector<1x32x32xbf16>
    %80 = vector.shape_cast %79 : vector<1x32x32xbf16> to vector<32x32xbf16>
    %cst_48 = arith.constant dense<0.000000e+00> : vector<256x32xf32>
    %81 = tpu.matmul %78, %80, %cst_48 {dimension_numbers = #tpu.dot_dimension_numbers<[1], [0], [0], [1], [0, 0, 1, 1], [], []>} : vector<256x32xbf16>, vector<32x32xbf16>, vector<256x32xf32> -> vector<256x32xf32>
    %82 = arith.addf %76, %81 : vector<256x32xf32>
    %c18 = arith.constant 18 : index
    %c0_49 = arith.constant 0 : index
    %83 = vector.load %arg7[%c18, %c0_49] : memref<290x32xf32, #tpu.memory_space<vmem>>, vector<256x32xf32>
    %cst_50 = arith.constant 0.000000e+00 : f32
    %84 = vector.shape_cast %39 : vector<256x1xi1> to vector<256x1xi1>
    %85 = vector.broadcast %84 : vector<256x1xi1> to vector<256x32xi1>
    %86 = vector.broadcast %cst_50 : f32 to vector<256x32xf32>
    %87 = arith.select %85, %83, %86 : vector<256x32xi1>, vector<256x32xf32>
    %88 = arith.truncf %87 : vector<256x32xf32> to vector<256x32xbf16>
    %c5 = arith.constant 5 : index
    %c0_51 = arith.constant 0 : index
    %c0_52 = arith.constant 0 : index
    %89 = vector.load %arg4[%c5, %c0_51, %c0_52] : memref<9x32x32xbf16, #tpu.memory_space<vmem>>, vector<1x32x32xbf16>
    %90 = vector.shape_cast %89 : vector<1x32x32xbf16> to vector<32x32xbf16>
    %cst_53 = arith.constant dense<0.000000e+00> : vector<256x32xf32>
    %91 = tpu.matmul %88, %90, %cst_53 {dimension_numbers = #tpu.dot_dimension_numbers<[1], [0], [0], [1], [0, 0, 1, 1], [], []>} : vector<256x32xbf16>, vector<32x32xbf16>, vector<256x32xf32> -> vector<256x32xf32>
    %92 = arith.addf %82, %91 : vector<256x32xf32>
    %c32 = arith.constant 32 : index
    %c0_54 = arith.constant 0 : index
    %93 = vector.load %arg7[%c32, %c0_54] : memref<290x32xf32, #tpu.memory_space<vmem>>, vector<256x32xf32>
    %cst_55 = arith.constant 0.000000e+00 : f32
    %94 = vector.shape_cast %37 : vector<256x1xi1> to vector<256x1xi1>
    %95 = vector.broadcast %94 : vector<256x1xi1> to vector<256x32xi1>
    %96 = vector.broadcast %cst_55 : f32 to vector<256x32xf32>
    %97 = arith.select %95, %93, %96 : vector<256x32xi1>, vector<256x32xf32>
    %98 = arith.truncf %97 : vector<256x32xf32> to vector<256x32xbf16>
    %c6 = arith.constant 6 : index
    %c0_56 = arith.constant 0 : index
    %c0_57 = arith.constant 0 : index
    %99 = vector.load %arg4[%c6, %c0_56, %c0_57] : memref<9x32x32xbf16, #tpu.memory_space<vmem>>, vector<1x32x32xbf16>
    %100 = vector.shape_cast %99 : vector<1x32x32xbf16> to vector<32x32xbf16>
    %cst_58 = arith.constant dense<0.000000e+00> : vector<256x32xf32>
    %101 = tpu.matmul %98, %100, %cst_58 {dimension_numbers = #tpu.dot_dimension_numbers<[1], [0], [0], [1], [0, 0, 1, 1], [], []>} : vector<256x32xbf16>, vector<32x32xbf16>, vector<256x32xf32> -> vector<256x32xf32>
    %102 = arith.addf %92, %101 : vector<256x32xf32>
    %c33 = arith.constant 33 : index
    %c0_59 = arith.constant 0 : index
    %103 = vector.load %arg7[%c33, %c0_59] : memref<290x32xf32, #tpu.memory_space<vmem>>, vector<256x32xf32>
    %104 = arith.truncf %103 : vector<256x32xf32> to vector<256x32xbf16>
    %c7 = arith.constant 7 : index
    %c0_60 = arith.constant 0 : index
    %c0_61 = arith.constant 0 : index
    %105 = vector.load %arg4[%c7, %c0_60, %c0_61] : memref<9x32x32xbf16, #tpu.memory_space<vmem>>, vector<1x32x32xbf16>
    %106 = vector.shape_cast %105 : vector<1x32x32xbf16> to vector<32x32xbf16>
    %cst_62 = arith.constant dense<0.000000e+00> : vector<256x32xf32>
    %107 = tpu.matmul %104, %106, %cst_62 {dimension_numbers = #tpu.dot_dimension_numbers<[1], [0], [0], [1], [0, 0, 1, 1], [], []>} : vector<256x32xbf16>, vector<32x32xbf16>, vector<256x32xf32> -> vector<256x32xf32>
    %108 = arith.addf %102, %107 : vector<256x32xf32>
    %c34 = arith.constant 34 : index
    %c0_63 = arith.constant 0 : index
    %109 = vector.load %arg7[%c34, %c0_63] : memref<290x32xf32, #tpu.memory_space<vmem>>, vector<256x32xf32>
    %cst_64 = arith.constant 0.000000e+00 : f32
    %110 = vector.shape_cast %39 : vector<256x1xi1> to vector<256x1xi1>
    %111 = vector.broadcast %110 : vector<256x1xi1> to vector<256x32xi1>
    %112 = vector.broadcast %cst_64 : f32 to vector<256x32xf32>
    %113 = arith.select %111, %109, %112 : vector<256x32xi1>, vector<256x32xf32>
    %114 = arith.truncf %113 : vector<256x32xf32> to vector<256x32xbf16>
    %c8 = arith.constant 8 : index
    %c0_65 = arith.constant 0 : index
    %c0_66 = arith.constant 0 : index
    %115 = vector.load %arg4[%c8, %c0_65, %c0_66] : memref<9x32x32xbf16, #tpu.memory_space<vmem>>, vector<1x32x32xbf16>
    %116 = vector.shape_cast %115 : vector<1x32x32xbf16> to vector<32x32xbf16>
    %cst_67 = arith.constant dense<0.000000e+00> : vector<256x32xf32>
    %117 = tpu.matmul %114, %116, %cst_67 {dimension_numbers = #tpu.dot_dimension_numbers<[1], [0], [0], [1], [0, 0, 1, 1], [], []>} : vector<256x32xbf16>, vector<32x32xbf16>, vector<256x32xf32> -> vector<256x32xf32>
    %118 = arith.addf %108, %117 : vector<256x32xf32>
    %c0_68 = arith.constant 0 : index
    %c0_69 = arith.constant 0 : index
    %119 = vector.load %arg5[%c0_68, %c0_69] : memref<1x32xf32, #tpu.memory_space<vmem>>, vector<1x32xf32>
    %120 = vector.broadcast %119 : vector<1x32xf32> to vector<256x32xf32>
    %121 = arith.addf %118, %120 : vector<256x32xf32>
    %cst_70 = arith.constant 0.000000e+00 : f32
    %122 = vector.broadcast %cst_70 : f32 to vector<256x32xf32>
    %123 = arith.maximumf %121, %122 : vector<256x32xf32>
    %c0_71 = arith.constant 0 : index
    %c0_72 = arith.constant 0 : index
    %c0_73 = arith.constant 0 : index
    %124 = vector.load %arg6[%c0_71, %c0_72, %c0_73] : memref<1x256x32xf32, #tpu.memory_space<vmem>>, vector<1x256x32xf32>
    %125 = vector.shape_cast %124 : vector<1x256x32xf32> to vector<256x32xf32>
    %126 = arith.addf %123, %125 : vector<256x32xf32>
    %c0_74 = arith.constant 0 : index
    %c0_75 = arith.constant 0 : index
    %c0_76 = arith.constant 0 : index
    %127 = vector.load %arg6[%c0_74, %c0_75, %c0_76] : memref<1x256x32xf32, #tpu.memory_space<vmem>>, vector<1x256x32xf32>
    %128 = vector.shape_cast %127 : vector<1x256x32xf32> to vector<256x32xf32>
    %129 = vector.shape_cast %126 : vector<256x32xf32> to vector<1x256x32xf32>
    tpu.vector_store %arg6[%c0_74, %c0_75, %c0_76], %129 {strides = array<i32>} : memref<1x256x32xf32, #tpu.memory_space<vmem>>, vector<1x256x32xf32>,
    return
  }
  func.func @transform_0(%arg0: i32) -> (i32, i32, i32) {
    %c0_i32 = arith.constant 0 : i32
    %c0_i32_0 = arith.constant 0 : i32
    %c0_i32_1 = arith.constant 0 : i32
    return %arg0, %c0_i32, %c0_i32_0 : i32, i32, i32
  }
  func.func @transform_1(%arg0: i32) -> (i32, i32) {
    %c0_i32 = arith.constant 0 : i32
    %c0_i32_0 = arith.constant 0 : i32
    %c0_i32_1 = arith.constant 0 : i32
    return %c0_i32, %c0_i32_0 : i32, i32
  }
  func.func @transform_2(%arg0: i32) -> (i32, i32) {
    %c0_i32 = arith.constant 0 : i32
    %c0_i32_0 = arith.constant 0 : i32
    %c0_i32_1 = arith.constant 0 : i32
    return %c0_i32, %c0_i32_0 : i32, i32
  }
  func.func @transform_3(%arg0: i32) -> (i32, i32, i32) {
    %c0_i32 = arith.constant 0 : i32
    %c0_i32_0 = arith.constant 0 : i32
    %c0_i32_1 = arith.constant 0 : i32
    %c0_i32_2 = arith.constant 0 : i32
    return %c0_i32, %c0_i32_0, %c0_i32_1 : i32, i32, i32
  }
  func.func @transform_4(%arg0: i32) -> (i32, i32) {
    %c0_i32 = arith.constant 0 : i32
    %c0_i32_0 = arith.constant 0 : i32
    %c0_i32_1 = arith.constant 0 : i32
    return %c0_i32, %c0_i32_0 : i32, i32
  }
  func.func @transform_5(%arg0: i32) -> (i32, i32, i32) {
    %c0_i32 = arith.constant 0 : i32
    %c0_i32_0 = arith.constant 0 : i32
    %c0_i32_1 = arith.constant 0 : i32
    return %arg0, %c0_i32, %c0_i32_0 : i32, i32, i32
  }
}

</mosaic_0001>

<bundles_post_ra>
// kernel: res_convblock_forward.1
= control target key start
LH: loop header
LB: loop body
LE: loop exit
PB: predicated region body
PF: predicated region fallthrough
CT: control target
= control target key end

     0   :  { %10 = vsyncpa [#allocation4], 0  ;;  %s5971_s0 = inlined_call_operand.vmem [shape: bf16[2,256,36], index: 0, kind: input, shape index: {}]   ;;  %s5972_s1 = inlined_call_operand.vmem [shape: bf16[36,160], index: 1, kind: input, shape index: {}]   ;;  %s5973_s2 = inlined_call_operand.vmem [shape: f32[1,160], index: 2, kind: input, shape index: {}]   ;;  %s5974_s3 = inlined_call_operand.vmem [shape: bf16[9,32,32], index: 3, kind: input, shape index: {}]   ;;  %s5975_s4 = inlined_call_operand.vmem [shape: f32[1,32], index: 4, kind: input, shape index: {}]   ;;  %s5976_s5 = inlined_call_operand.hbm [shape: f32[2,256,32], index: 5, kind: output, shape index: {}]  }
   0x1   :  { %12 = vsyncpa [#allocation4 + $0x1], 0  ;;  %s4363_s18 = smov 0   ;;  %s4365_s19 = smov 0  }
   0x2   :  { %s4367_s20 = smov 0   ;;  %s4369_s21 = smov 0  }
   0x3 LB: > { %s4384_s22 = sadd.s32 4294967295, %s4328_s21   ;;  %s3794_s23 = sadd.s32 4294967294, %s4328_s21   ;;  %s4328_s21 = sphi %s4369_s21, %s6152_s21   ;;  %s4324_s20 = sphi %s4367_s20, %s6151_s20   ;;  %s4320_s19 = sphi %s4365_s19, %s6150_s19   ;;  %s4316_s18 = sphi %s4363_s18, %s6149_s18  }
   0x4   : > { %s4388_s24 = sadd.s32 1, %s4328_s21   ;;  %s135_s25 = sadd.s32 1, %s4324_s20 }
   0x5   : > { %s132_s26 = ssub.s32 %s4328_s21, %s4388_s24  ;;  %p145_p0 = scmp.ne.s32.totalorder %s4324_s20, %s4320_s19 }
   0x6   : > { %p133_p1 = scmp.eq.s32.totalorder %s132_s26, 0  ;;  %p146_p2 = scmp.eq.s32.totalorder %s4384_s22, 1 }
   0x7   : > { %p151_p3 = scmp.ne.s32.totalorder %s4320_s19, %s4316_s18  ;;  %p152_p4 = scmp.eq.s32.totalorder %s3794_s23, 1 }
   0x8   : > { %s4399_s27 = scalar_select %p133_p1, %s4324_s20, %s135_s25  }
   0x9   : > { %p4401_p5 = por %p146_p2, %p145_p0  ;;  %p4405_p6 = por %p152_p4, %p151_p3 }
   0xa   : > { %p3797_p7 = scmp.ge.s32.totalorder %s4328_s21, 1  ;;  %p190_p8 = scmp.lt.s32.totalorder %s4328_s21, 3 }
   0xc   : > { %p191_p9 = pnand %p3797_p7, %p190_p8 }
   0xe   : > { %194 = sbr.rel (%p191_p9) target bundleno = 1076 (0x434), region = 40 }
  0x13   : > { %v260_v0 = vld [vmem:[%s5972_s1 + $0x20] sm:$0x33]  ;;  %p218_p10 = scmp.lt.s32.totalorder %s4384_s22, 1  ;;  %vm421_vm0 = vcmask 1041408   ;;  %v3875_v3 = vld [vmem:[%s5972_s1 + $0x10] sm:$0xf] }
  0x14   : > { %v360_v1 = vunpack.c.l.b16 %v260_v0  ;;  %v4186_v4 = vld [vmem:[%s5972_s1 + $0x14] sm:$0xf0]  ;;  %v3867_v7 = vld [vmem:[%s5972_s1] sm:$0xf]  ;;  %v4184_v8 = vld [vmem:[%s5972_s1 + $0x4] sm:$0xf0]  ;;  %v361_v14 = vunpack.c.h.b16 %v260_v0 }
  0x15   : > { %s219_s11 = scalar_select %p218_p10, %s4384_s22, 1  ;;  %v3876_v6 = vor.u32 %v4186_v4, %v3875_v3  ;;  %v3868_v9 = vor.u32 %v4184_v8, %v3867_v7  ;;  %vm372_vm1 = vcmask 293888   ;;  %v4185_v16 = vld [vmem:[%s5972_s1 + $0x14] sm:$0xf]  ;;  %v3877_v17 = vld [vmem:[%s5972_s1 + $0x18] sm:$0xf0] }
  0x16   : > { %v366_v2 = vpack.c.b16 %v360_v1, %v360_v1  ;;  %v367_v15 = vpack.c.b16 %v361_v14, %v361_v14  ;;  %v3880_v19 = vor.u32 %v4185_v16, %v3877_v17  ;;  %v4183_v20 = vld [vmem:[%s5972_s1 + $0x4] sm:$0xf]  ;;  %v3869_v21 = vld [vmem:[%s5972_s1 + $0x8] sm:$0xf0]  ;;  %vm638_vm2 = vcmask 261120   ;;  %v4190_v47 = vld [vmem:[%s5974_s3 + $0x18] sm:$0xff] }
  0x17   : > { %s4166_s16 = sshll.u32 %s219_s11, 7  ;;  %v3872_v22 = vor.u32 %v4183_v20, %v3869_v21  ;;  %vm673_vm3 = vcmask 253952   ;;  %v4330_v30 = vmov 0.0   ;;  %v4500_v32 = vld [vmem:[%s5973_s2] sm:$0x3]  ;;  %v4188_v48 = vld [vmem:[%s5974_s3 + $0x8] sm:$0xff]  ;;  %4209 = vmatpush.bf16.msra.mxu2 %v4190_v47 }
  0x18   : > { %v423_v5 = vsel %vm421_vm0, %v366_v2, 0  ;;  %s4432_s25 = scalar_lea.vmem %s5971_s0, %s4166_s16  ;;  %v426_v18 = vsel %vm421_vm0, %v367_v15, 0  ;;  %671 = vst.msk [vmem:[#allocation2] sm:$0xff] %vm638_vm2, %v4330_v30  ;;  %v4503_v33 = vperm.slane %v4500_v32, 0  ;;  %4211 = vmatpush.bf16.msra.mxu3 %v4188_v48  ;;  %v4189_v54 = vld [vmem:[%s5974_s3 + $0x10] sm:$0xff]  ;;  %v4187_v55 = vld [vmem:[%s5974_s3] sm:$0xff] }
  0x19   : > { %433 = vmatpush.bf16.msra.mxu0 %v423_v5  ;;  %4206 = vmatpush.bf16.msra.mxu1 %v423_v5  ;;  %v4167_v10 = vld [vmem:[%s4432_s25] sm:$0xff]  ;;  %v4168_v12 = vld [vmem:[%s4432_s25 + $0x8] sm:$0xff]  ;;  %v4169_v23 = vld [vmem:[%s4432_s25 + $0x10] sm:$0xff]  ;;  %672 = vst.msk [vmem:[#allocation2 + $0x8] sm:$0xff] %vm638_vm2, %v4330_v30  ;;  %s4205_s10 = sshll.u32 %s4384_s22, 8  ;;  %s4286_s6 = scalar_lea.hbm %s5976_s5, 512 }
  0x1a   : > { %v4436_v11 = vld [vmem:[%s4432_s25 + $0x60] sm:$0xff]  ;;  %v4443_v13 = vld [vmem:[%s4432_s25 + $0x68] sm:$0xff]  ;;  %v4463_v24 = vld [vmem:[%s4432_s25 + $0x70] sm:$0xff]  ;;  %674 = vst.msk [vmem:[#allocation2 + $0x10] sm:$0x1] %vm673_vm3, %v4330_v30  ;;  %s3728_s13 = scalar_lea.hbm %s5976_s5, %s4205_s10 }
  0x1b   : > { %v4170_v25 = vld [vmem:[%s4432_s25 + $0x18] sm:$0xff]  ;;  %v4171_v27 = vld [vmem:[%s4432_s25 + $0x20] sm:$0xff]  ;;  %v4172_v28 = vld [vmem:[%s4432_s25 + $0x28] sm:$0xff]  ;;  %675 = vst.msk [vmem:[#allocation2 + $0x111] sm:$0xff] %vm638_vm2, %v4330_v30  ;;  %4210 = vmatpush.bf16.msra.mxu2 %v4189_v54 }
  0x1c   : > { %v4470_v26 = vld [vmem:[%s4432_s25 + $0x78] sm:$0xff]  ;;  %v4482_v29 = vld [vmem:[%s4432_s25 + $0x30] sm:$0xff]  ;;  %676 = vst.msk [vmem:[#allocation2 + $0x119] sm:$0xff] %vm638_vm2, %v4330_v30  ;;  %v4506_v34 = vld [vmem:[%s4432_s25 + $0x40] sm:$0xff]  ;;  %4212 = vmatpush.bf16.msra.mxu3 %v4187_v55 }
  0x1d   : > { %434 = vmatpush.bf16.msra.mxu0 %v3876_v6  ;;  %4207 = vmatpush.bf16.msra.mxu1 %v3876_v6  ;;  %677 = vst.msk [vmem:[#allocation2 + $0x121] sm:$0x1] %vm673_vm3, %v4330_v30  ;;  %v4492_v31 = vld [vmem:[%s4432_s25 + $0x38] sm:$0xff]  ;;  %v4526_v49 = vld [vmem:[%s4432_s25 + $0x48] sm:$0xff]  ;;  %v4195_v3 = vld [vmem:[%s5974_s3 + $0x40] sm:$0xff]  ;;  %v5991_v30 = vmov 0 }
  0x1e   : > { %v4192_v58 = vld [vmem:[%s5974_s3 + $0x28] sm:$0xff]  ;;  %v4194_v2 = vld [vmem:[%s5974_s3 + $0x38] sm:$0xff]  ;;  %v4558_v4 = vld [vmem:[%s4432_s25 + $0x50] sm:$0xff] }
  0x1f   : > { %1905 = vmatpush.bf16.msrb.mxu2 %v4192_v58  ;;  %v4196_v63 = vld [vmem:[%s5974_s3 + $0x48] sm:$0xff] }
  0x20   : > { %2171 = vmatpush.bf16.msrb.mxu3 %v4194_v2 }
  0x21   : > { %435 = vmatpush.bf16.msra.mxu0 %v3868_v9  ;;  %4208 = vmatpush.bf16.msra.mxu1 %v3868_v9 }
  0x24   : > { %3881 = vmatmul.msk.bf16.vlgmr.msra.gmra.mxu0 %vm372_vm1, %v4167_v10  ;;  %3893 = vmatmul.msk.bf16.vlgmr.msra.gmra.mxu1 %vm372_vm1, %v4436_v11 }
  0x25   : > { %522 = vmatpush.bf16.msrb.mxu1 %v426_v18  ;;  %2405 = vmatpush.bf16.msrb.mxu0 %v4196_v63 }
  0x29   : > { %523 = vmatpush.bf16.msrb.mxu1 %v3880_v19  ;;  %2406 = vmatpush.bf16.msrb.mxu0 %v4195_v3 }
  0x2d   : > { %524 = vmatpush.bf16.msrb.mxu1 %v3872_v22 }
  0x31   : > { %1458 = vmatpush.bf16.msra.mxu1 %v4190_v47 }
  0x34   : > { %3882 = vmatmul.msk.bf16.gmra.mxu0 %vm372_vm1, %v4168_v12  ;;  %3894 = vmatmul.msk.bf16.gmra.mxu1 %vm372_vm1, %v4443_v13 }
  0x35   : > { %1459 = vmatpush.bf16.msra.mxu1 %v4189_v54 }
  0x44   : > { %3883 = vmatmul.msk.bf16.gmra.mxu0 %vm372_vm1, %v4169_v23  ;;  %3895 = vmatmul.msk.bf16.gmra.mxu1 %vm372_vm1, %v4463_v24 }
  0x54   : > { %3884 = vmatmul.msk.bf16.gmra.mxu0 %vm372_vm1, %v4170_v25  ;;  %3896 = vmatmul.msk.bf16.gmra.mxu1 %vm372_vm1, %v4470_v26 }
  0x64   : > { %3885 = vmatmul.msk.bf16.gmra.mxu0 %vm372_vm1, %v4171_v27  ;;  %3897 = vmatmul.msk.bf16.vlgmr.msrb.gmra.mxu1 %vm372_vm1, %v4167_v10 }
  0x65   : > { %1607 = vmatpush.bf16.msrb.mxu1 %v4188_v48 }
  0x69   : > { %1608 = vmatpush.bf16.msrb.mxu1 %v4187_v55 }
  0x74   : > { %3886 = vmatmul.msk.bf16.gmra.mxu0 %vm372_vm1, %v4172_v28  ;;  %3898 = vmatmul.msk.bf16.gmra.mxu1 %vm372_vm1, %v4168_v12  ;;  %v710_v12 = vlaneseq }
  0x76   : > { %v4568_v14 = vshrl.u32 %v710_v12, 7 }
  0x78   : > { %v717_v19 = vadd.s32 48, %v4568_v14  ;;  %v719_v47 = vadd.s32 64, %v4568_v14 }
  0x7a   : > { %v789_v22 = vand.u32 15, %v717_v19 }
  0x7c   : > { %vm4580_vm4 = vcmp.ge.s32.totalorder %v789_v22, 1 }
  0x7d   : > { %v5992_v30 = vsel %vm4580_vm4, 4294967295, %v5991_v30 }
  0x7e   : > { %5993 = vst [vmem:[#allocation6_spill] sm:$0xff] %v5992_v30 }
  0x84   : > { %3887 = vmatmul.msk.bf16.gmra.mxu0 %vm372_vm1, %v4482_v29  ;;  %3899 = vmatmul.msk.bf16.gmra.mxu1 %vm372_vm1, %v4169_v23  ;;  %v4576_v23 = vld [vmem:[%s4432_s25 + $0x58] sm:$0xff]  ;;  %s215_s25 = sand.u32 1, %s4320_s19  }
  0x85   : > { %s3798_s15 = sshll.u32 %s215_s25, 8  ;;  %s3717_s22 = scalar_lea.sflag [#allocation4], %s215_s25 }
  0x86   : > { %s4616_s16 = scalar_lea.vmem [#allocation3], %s3798_s15  ;;  %s3731_s15 = sshll.u32 %s3728_s13, 4  ;;  %s3732_s15 = int_to_ptr.hbm [resolvable:$true] %s3731_s15 }
  0x87   : > { %s3729_s14 = sshll.u32 %s4616_s16, 4  ;;  %s4280_s17 = sshra.s32 %s3732_s15, 4  ;;  %s3730_s14 = int_to_ptr.vmem [resolvable:$true] %s3729_s14  ;;  %s4281_s17 = int_to_ptr.hbm [resolvable:$true] %s4280_s17 }
  0x88   : > { %s4282_s23 = scalar_lea.hbm %s4281_s17, 256  ;;  %p4287_p0 = scmp.lt.s32.totalorder %s4281_s17, %s5976_s5 }
  0x89   : > { %p4283_p11 = scmp.ne.s32.totalorder %s4281_s17, %s4282_s23  ;;  %p4288_p1 = scmp.lt.s32.totalorder %s4286_s6, %s4282_s23 }
  0x8b   : > { %p4284_p12 = pnand %p4283_p11, %p4401_p5  ;;  %p4289_p2 = por %p4288_p1, %p4287_p0 }
  0x8d   : > { %p4285_p13 = pneg %p4284_p12 }
  0x8f   : > { %p4290_p3 = pnand %p4289_p2, %p4285_p13 }
  0x94   : > { %3888 = vmatmul.msk.bf16.gmra.mxu0 %vm372_vm1, %v4492_v31  ;;  %3900 = vmatmul.msk.bf16.gmra.mxu1 %vm372_vm1, %v4170_v25 }
  0xa1   : > { %v437_v35 = vpop.f32.mrf.mxu0  ;;  %v497_v36 = vpop.f32.mrf.mxu1 }
  0xa2   : > { %v438_v37 = vadd.f32 %v437_v35, %v4503_v33  ;;  %v498_v38 = vadd.f32 %v497_v36, %v4503_v33 }
  0xa4   : > { %v606_v39 = vmax.f32 %v438_v37, 0.0  ;;  %v630_v40 = vmax.f32 %v498_v38, 0.0  ;;  %3889 = vmatmul.msk.bf16.gmra.mxu0 %vm372_vm1, %v4506_v34  ;;  %3901 = vmatmul.msk.bf16.gmra.mxu1 %vm372_vm1, %v4171_v27 }
  0xa6   : > { %678 = vst.msk [vmem:[#allocation2 + $0x11] sm:$0xff] %vm638_vm2, %v606_v39 }
  0xa7   : > { %702 = vst.msk [vmem:[#allocation2 + $0xd1] sm:$0xff] %vm638_vm2, %v630_v40 }
  0xa9   : > { %v439_v41 = vpop.f32.mrf.mxu0  ;;  %v499_v42 = vpop.f32.mrf.mxu1 }
  0xaa   : > { %v440_v43 = vadd.f32 %v439_v41, %v4503_v33  ;;  %v500_v44 = vadd.f32 %v499_v42, %v4503_v33 }
  0xac   : > { %v607_v45 = vmax.f32 %v440_v43, 0.0  ;;  %v631_v46 = vmax.f32 %v500_v44, 0.0 }
  0xae   : > { %679 = vst.msk [vmem:[#allocation2 + $0x19] sm:$0xff] %vm638_vm2, %v607_v45 }
  0xaf   : > { %703 = vst.msk [vmem:[#allocation2 + $0xd9] sm:$0xff] %vm638_vm2, %v631_v46 }
  0xb1   : > { %v442_v50 = vpop.f32.mrf.mxu0  ;;  %v502_v51 = vpop.f32.mrf.mxu1 }
  0xb2   : > { %v443_v52 = vadd.f32 %v442_v50, %v4503_v33  ;;  %v503_v53 = vadd.f32 %v502_v51, %v4503_v33  ;;  %v4605_v51 = vperm.slane %v4500_v32, 1 }
  0xb4   : > { %v608_v56 = vmax.f32 %v443_v52, 0.0  ;;  %v632_v57 = vmax.f32 %v503_v53, 0.0  ;;  %3890 = vmatmul.msk.bf16.gmra.mxu0 %vm372_vm1, %v4526_v49  ;;  %3902 = vmatmul.msk.bf16.gmra.mxu1 %vm372_vm1, %v4172_v28  ;;  %v803_v52 = vand.u32 15, %v719_v47 }
  0xb5   : > { %v2287_v53 = vld [vmem:[#allocation2 + $0x19] sm:$0xff] }
  0xb6   : > { %680 = vst.msk [vmem:[#allocation2 + $0x21] sm:$0xff] %vm638_vm2, %v608_v56  ;;  %v2286_v56 = vld [vmem:[#allocation2 + $0x11] sm:$0xff]  ;;  %vm4612_vm5 = vcmp.ge.s32.totalorder %v803_v52, 1 }
  0xb7   : > { %704 = vst.msk [vmem:[#allocation2 + $0xe1] sm:$0xff] %vm638_vm2, %v632_v57 }
  0xb9   : > { %v444_v59 = vpop.f32.mrf.mxu0  ;;  %v504_v60 = vpop.f32.mrf.mxu1 }
  0xba   : > { %v445_v61 = vadd.f32 %v444_v59, %v4503_v33  ;;  %v505_v62 = vadd.f32 %v504_v60, %v4503_v33  ;;  %v4610_v59 = vpack.c.bf16 %v2287_v53, %v2286_v56  ;;  %v5994_v60 = vmov 0 }
  0xbb   : > { %v5995_v60 = vsel %vm4612_vm5, 4294967295, %v5994_v60 }
  0xbc   : > { %v609_v0 = vmax.f32 %v445_v61, 0.0  ;;  %v633_v1 = vmax.f32 %v505_v62, 0.0  ;;  %5996 = vst [vmem:[#allocation7_spill] sm:$0xff] %v5995_v60 }
  0xbe   : > { %681 = vst.msk [vmem:[#allocation2 + $0x29] sm:$0xff] %vm638_vm2, %v609_v0 }
  0xbf   : > { %705 = vst.msk [vmem:[#allocation2 + $0xe9] sm:$0xff] %vm638_vm2, %v633_v1 }
  0xc1   : > { %v447_v5 = vpop.f32.mrf.mxu0  ;;  %v507_v6 = vpop.f32.mrf.mxu1 }
  0xc2   : > { %v448_v7 = vadd.f32 %v447_v5, %v4503_v33  ;;  %v508_v8 = vadd.f32 %v507_v6, %v4503_v33 }
  0xc4   : > { %v610_v9 = vmax.f32 %v448_v7, 0.0  ;;  %v634_v10 = vmax.f32 %v508_v8, 0.0  ;;  %3891 = vmatmul.msk.bf16.gmra.mxu0 %vm372_vm1, %v4558_v4  ;;  %3903 = vmatmul.msk.bf16.gmra.mxu1 %vm372_vm1, %v4482_v29  ;;  %v721_v8 = vadd.s32 80, %v4568_v14 }
  0xc5   : > { %v2289_v12 = vld [vmem:[#allocation2 + $0x29] sm:$0xff] }
  0xc6   : > { %682 = vst.msk [vmem:[#allocation2 + $0x31] sm:$0xff] %vm638_vm2, %v610_v9 }
  0xc7   : > { %706 = vst.msk [vmem:[#allocation2 + $0xf1] sm:$0xff] %vm638_vm2, %v634_v10  ;;  %v817_v10 = vand.u32 15, %v721_v8 }
  0xc9   : > { %v449_v15 = vpop.f32.mrf.mxu0  ;;  %v509_v16 = vpop.f32.mrf.mxu1  ;;  %vm4642_vm6 = vcmp.ge.s32.totalorder %v817_v10, 1 }
  0xca   : > { %v450_v17 = vadd.f32 %v449_v15, %v4503_v33  ;;  %v510_v18 = vadd.f32 %v509_v16, %v4503_v33 }
  0xcc   : > { %v611_v20 = vmax.f32 %v450_v17, 0.0  ;;  %v635_v21 = vmax.f32 %v510_v18, 0.0  ;;  %v2288_v17 = vld [vmem:[#allocation2 + $0x21] sm:$0xff] }
  0xcd   : > { %v1197_v35 = vld [vmem:[#allocation2 + $0x30] sm:$0xff] }
  0xce   : > { %683 = vst.msk [vmem:[#allocation2 + $0x39] sm:$0xff] %vm638_vm2, %v611_v20  ;;  %v1345_v38 = vld [vmem:[#allocation2 + $0x31] sm:$0xff]  ;;  %v1293_v41 = vsel %vm4580_vm4, %v1197_v35, 0.0  ;;  %v4640_v20 = vpack.c.bf16 %v2289_v12, %v2288_v17 }
  0xcf   : > { %707 = vst.msk [vmem:[#allocation2 + $0xf9] sm:$0xff] %vm638_vm2, %v635_v21  ;;  %v5997_v21 = vmov 0 }
  0xd0   : > { %v5998_v21 = vsel %vm4642_vm6, 4294967295, %v5997_v21 }
  0xd1   : > { %v452_v25 = vpop.f32.mrf.mxu0  ;;  %v512_v27 = vpop.f32.mrf.mxu1  ;;  %5999 = vst [vmem:[#allocation8_spill] sm:$0xff] %v5998_v21 }
  0xd2   : > { %v453_v28 = vadd.f32 %v452_v25, %v4503_v33  ;;  %v513_v29 = vadd.f32 %v512_v27, %v4503_v33 }
  0xd4   : > { %v612_v36 = vmax.f32 %v453_v28, 0.0  ;;  %v636_v37 = vmax.f32 %v513_v29, 0.0  ;;  %3892 = vmatmul.msk.bf16.gmra.mxu0 %vm372_vm1, %v4576_v23  ;;  %3904 = vmatmul.msk.bf16.gmra.mxu1 %vm372_vm1, %v4492_v31 }
  0xd5   : > { %v1346_v39 = vld [vmem:[#allocation2 + $0x39] sm:$0xff] }
  0xd6   : > { %v1198_v40 = vld [vmem:[#allocation2 + $0x38] sm:$0xff]  ;;  %684 = vst.msk [vmem:[#allocation2 + $0x41] sm:$0xff] %vm638_vm2, %v612_v36  ;;  %v4591_v42 = vpack.c.bf16 %v1346_v39, %v1345_v38 }
  0xd7   : > { %v1322_v43 = vpack.c.bf16 %v1198_v40, %v1293_v41  ;;  %708 = vst.msk [vmem:[#allocation2 + $0x101] sm:$0xff] %vm638_vm2, %v636_v37  ;;  %v723_v41 = vadd.s32 96, %v4568_v14 }
  0xd8   : > { %3928 = vmatmul.msk.bf16.vlgmr.msra.gmra.mxu2 %vm638_vm2, %v4591_v42 }
  0xd9   : > { %3952 = vmatmul.msk.bf16.vlgmr.msra.gmra.mxu3 %vm638_vm2, %v1322_v43  ;;  %v454_v31 = vpop.f32.mrf.mxu0  ;;  %v514_v44 = vpop.f32.mrf.mxu1 }
  0xda   : > { %v455_v45 = vadd.f32 %v454_v31, %v4503_v33  ;;  %v515_v46 = vadd.f32 %v514_v44, %v4503_v33  ;;  %v831_v31 = vand.u32 15, %v723_v41 }
  0xdc   : > { %v613_v48 = vmax.f32 %v455_v45, 0.0  ;;  %v637_v50 = vmax.f32 %v515_v46, 0.0  ;;  %vm4668_vm7 = vcmp.ge.s32.totalorder %v831_v31, 1 }
  0xdd   : > { %v1199_v61 = vld [vmem:[#allocation2 + $0x40] sm:$0xff] }
  0xde   : > { %685 = vst.msk [vmem:[#allocation2 + $0x49] sm:$0xff] %vm638_vm2, %v613_v48  ;;  %v1347_v62 = vld [vmem:[#allocation2 + $0x41] sm:$0xff]  ;;  %v1295_v1 = vsel %vm4612_vm5, %v1199_v61, 0.0  ;;  %v4201_v48 = vld [vmem:[%s5974_s3 + $0x70] sm:$0xff] }
  0xdf   : > { %709 = vst.msk [vmem:[#allocation2 + $0x109] sm:$0xff] %vm638_vm2, %v637_v50 }
  0xe1   : > { %v457_v54 = vpop.f32.mrf.mxu0  ;;  %v526_v55 = vpop.f32.mrf.mxu1 }
  0xe2   : > { %v458_v57 = vadd.f32 %v457_v54, %v4503_v33  ;;  %v527_v58 = vadd.f32 %v526_v55, %v4605_v51 }
  0xe4   : > { %v614_v32 = vmax.f32 %v458_v57, 0.0  ;;  %639 = vst.msk [vmem:[%s4616_s16] sm:$0xff] %vm638_vm2, %v527_v58  ;;  %3905 = vmatmul.msk.bf16.gmra.mxu1 %vm372_vm1, %v4506_v34  ;;  %4033 = vmatmul.msk.bf16.vlgmr.msrb.gmra.mxu0 %vm638_vm2, %v4610_v59 }
  0xe5   : > { %v1348_v63 = vld [vmem:[#allocation2 + $0x49] sm:$0xff] }
  0xe6   : > { %v1200_v0 = vld [vmem:[#allocation2 + $0x48] sm:$0xff]  ;;  %686 = vst.msk [vmem:[#allocation2 + $0x51] sm:$0xff] %vm638_vm2, %v614_v32  ;;  %v4627_v2 = vpack.c.bf16 %v1348_v63, %v1347_v62  ;;  %v725_v62 = vadd.s32 112, %v4568_v14 }
  0xe7   : > { %v1323_v3 = vpack.c.bf16 %v1200_v0, %v1295_v1 }
  0xe8   : > { %3929 = vmatmul.msk.bf16.gmra.mxu2 %vm638_vm2, %v4627_v2  ;;  %v845_v0 = vand.u32 15, %v725_v62 }
  0xe9   : > { %3953 = vmatmul.msk.bf16.gmra.mxu3 %vm638_vm2, %v1323_v3  ;;  %v459_v34 = vpop.f32.mrf.mxu0  ;;  %v528_v5 = vpop.f32.mrf.mxu1 }
  0xea   : > { %v460_v6 = vadd.f32 %v459_v34, %v4503_v33  ;;  %v529_v7 = vadd.f32 %v528_v5, %v4605_v51  ;;  %vm4694_vm8 = vcmp.ge.s32.totalorder %v845_v0, 1 }
  0xec   : > { %v615_v9 = vmax.f32 %v460_v6, 0.0  ;;  %640 = vst.msk [vmem:[%s4616_s16 + $0x8] sm:$0xff] %vm638_vm2, %v529_v7 }
  0xed   : > { %v1201_v22 = vld [vmem:[#allocation2 + $0x50] sm:$0xff] }
  0xee   : > { %687 = vst.msk [vmem:[#allocation2 + $0x59] sm:$0xff] %vm638_vm2, %v615_v9  ;;  %v1349_v27 = vld [vmem:[#allocation2 + $0x51] sm:$0xff]  ;;  %v1297_v35 = vsel %vm4642_vm6, %v1201_v22, 0.0  ;;  %v727_v22 = vadd.s32 128, %v4568_v14 }
  0xf1   : > { %v462_v15 = vpop.f32.mrf.mxu0  ;;  %v531_v16 = vpop.f32.mrf.mxu1 }
  0xf2   : > { %v463_v18 = vadd.f32 %v462_v15, %v4503_v33  ;;  %v532_v19 = vadd.f32 %v531_v16, %v4605_v51 }
  0xf4   : > { %v616_v25 = vmax.f32 %v463_v18, 0.0  ;;  %641 = vst.msk [vmem:[%s4616_s16 + $0x10] sm:$0xff] %vm638_vm2, %v532_v19  ;;  %3906 = vmatmul.msk.bf16.gmra.mxu1 %vm372_vm1, %v4526_v49  ;;  %4034 = vmatmul.msk.bf16.gmra.mxu0 %vm638_vm2, %v4640_v20 }
  0xf5   : > { %v1350_v28 = vld [vmem:[#allocation2 + $0x59] sm:$0xff] }
  0xf6   : > { %v1202_v29 = vld [vmem:[#allocation2 + $0x58] sm:$0xff]  ;;  %688 = vst.msk [vmem:[#allocation2 + $0x61] sm:$0xff] %vm638_vm2, %v616_v25  ;;  %v4655_v36 = vpack.c.bf16 %v1350_v28, %v1349_v27  ;;  %v859_v27 = vand.u32 15, %v727_v22  ;;  %v4191_v28 = vld [vmem:[%s5974_s3 + $0x20] sm:$0xff] }
  0xf7   : > { %v1324_v37 = vpack.c.bf16 %v1202_v29, %v1297_v35  ;;  %1906 = vmatpush.bf16.msrb.mxu2 %v4191_v28  ;;  %v1700_v60 = vld [vmem:[#allocation2 + $0x52] sm:$0xff] }
  0xf8   : > { %3930 = vmatmul.msk.bf16.gmra.mxu2 %vm638_vm2, %v4655_v36  ;;  %vm4725_vm9 = vcmp.ge.s32.totalorder %v859_v27, 1 }
  0xf9   : > { %3954 = vmatmul.msk.bf16.gmra.mxu3 %vm638_vm2, %v1324_v37  ;;  %v464_v49 = vpop.f32.mrf.mxu0  ;;  %v533_v38 = vpop.f32.mrf.mxu1 }
  0xfa   : > { %v465_v39 = vadd.f32 %v464_v49, %v4503_v33  ;;  %v534_v40 = vadd.f32 %v533_v38, %v4605_v51 }
  0xfc   : > { %v617_v43 = vmax.f32 %v465_v39, 0.0  ;;  %642 = vst.msk [vmem:[%s4616_s16 + $0x18] sm:$0xff] %vm638_vm2, %v534_v40 }
  0xfd   : > { %v1203_v50 = vld [vmem:[#allocation2 + $0x60] sm:$0xff] }
  0xfe   : > { %689 = vst.msk [vmem:[#allocation2 + $0x69] sm:$0xff] %vm638_vm2, %v617_v43  ;;  %v1351_v53 = vld [vmem:[#allocation2 + $0x61] sm:$0xff]  ;;  %v1299_v56 = vsel %vm4668_vm7, %v1203_v50, 0.0 }
 0x101   : > { %v467_v44 = vpop.f32.mrf.mxu0  ;;  %v536_v45 = vpop.f32.mrf.mxu1 }
 0x102   : > { %v468_v46 = vadd.f32 %v467_v44, %v4503_v33  ;;  %v537_v47 = vadd.f32 %v536_v45, %v4605_v51 }
 0x104   : > { %v618_v52 = vmax.f32 %v468_v46, 0.0  ;;  %643 = vst.msk [vmem:[%s4616_s16 + $0x20] sm:$0xff] %vm638_vm2, %v537_v47  ;;  %3907 = vmatmul.msk.bf16.gmra.mxu1 %vm372_vm1, %v4558_v4  ;;  %4035 = vmatmul.msk.bf16.gmra.mxu0 %vm638_vm2, %v4591_v42 }
 0x105   : > { %v1352_v54 = vld [vmem:[#allocation2 + $0x69] sm:$0xff] }
 0x106   : > { %v1204_v55 = vld [vmem:[#allocation2 + $0x68] sm:$0xff]  ;;  %690 = vst.msk [vmem:[#allocation2 + $0x71] sm:$0xff] %vm638_vm2, %v618_v52  ;;  %v4681_v57 = vpack.c.bf16 %v1352_v54, %v1351_v53 }
 0x107   : > { %v1325_v58 = vpack.c.bf16 %v1204_v55, %v1299_v56 }
 0x108   : > { %3931 = vmatmul.msk.bf16.gmra.mxu2 %vm638_vm2, %v4681_v57 }
 0x109   : > { %3955 = vmatmul.msk.bf16.gmra.mxu3 %vm638_vm2, %v1325_v58  ;;  %v469_v4 = vpop.f32.mrf.mxu0  ;;  %v538_v42 = vpop.f32.mrf.mxu1  ;;  %v729_v58 = vadd.s32 144, %v4568_v14 }
 0x10a   : > { %v470_v61 = vadd.f32 %v469_v4, %v4503_v33  ;;  %v539_v32 = vadd.f32 %v538_v42, %v4605_v51 }
 0x10b   : > { %v873_v42 = vand.u32 15, %v729_v58  ;;  %v735_v58 = vadd.s32 192, %v4568_v14 }
 0x10c   : > { %v619_v63 = vmax.f32 %v470_v61, 0.0  ;;  %644 = vst.msk [vmem:[%s4616_s16 + $0x28] sm:$0xff] %vm638_vm2, %v539_v32 }
 0x10d   : > { %v1205_v7 = vld [vmem:[#allocation2 + $0x70] sm:$0xff]  ;;  %vm4761_vm10 = vcmp.ge.s32.totalorder %v873_v42, 1 }
 0x10e   : > { %691 = vst.msk [vmem:[#allocation2 + $0x79] sm:$0xff] %vm638_vm2, %v619_v63  ;;  %v1353_v9 = vld [vmem:[#allocation2 + $0x71] sm:$0xff]  ;;  %v1301_v15 = vsel %vm4694_vm8, %v1205_v7, 0.0 }
 0x111   : > { %v472_v1 = vpop.f32.mrf.mxu0  ;;  %v541_v3 = vpop.f32.mrf.mxu1 }
 0x112   : > { %v473_v34 = vadd.f32 %v472_v1, %v4503_v33  ;;  %v542_v5 = vadd.f32 %v541_v3, %v4605_v51 }
 0x114   : > { %v620_v8 = vmax.f32 %v473_v34, 0.0  ;;  %645 = vst.msk [vmem:[%s4616_s16 + $0x30] sm:$0xff] %vm638_vm2, %v542_v5  ;;  %3908 = vmatmul.msk.bf16.gmra.mxu1 %vm372_vm1, %v4576_v23  ;;  %4036 = vmatmul.msk.bf16.gmra.mxu0 %vm638_vm2, %v4627_v2 }
 0x115   : > { %v1354_v10 = vld [vmem:[#allocation2 + $0x79] sm:$0xff] }
 0x116   : > { %v1206_v12 = vld [vmem:[#allocation2 + $0x78] sm:$0xff]  ;;  %692 = vst.msk [vmem:[#allocation2 + $0x81] sm:$0xff] %vm638_vm2, %v620_v8  ;;  %v4707_v16 = vpack.c.bf16 %v1354_v10, %v1353_v9 }
 0x117   : > { %v1326_v17 = vpack.c.bf16 %v1206_v12, %v1301_v15  ;;  %v2033_v21 = vld [vmem:[#allocation2 + $0x78] sm:$0xff] }
 0x118   : > { %3932 = vmatmul.msk.bf16.gmra.mxu2 %vm638_vm2, %v4707_v16 }
 0x119   : > { %3956 = vmatmul.msk.bf16.gmra.mxu3 %vm638_vm2, %v1326_v17  ;;  %v474_v23 = vpop.f32.mrf.mxu0  ;;  %v543_v18 = vpop.f32.mrf.mxu1 }
 0x11a   : > { %v475_v2 = vadd.f32 %v474_v23, %v4503_v33  ;;  %v544_v19 = vadd.f32 %v543_v18, %v4605_v51 }
 0x11c   : > { %v621_v25 = vmax.f32 %v475_v2, 0.0  ;;  %646 = vst.msk [vmem:[%s4616_s16 + $0x38] sm:$0xff] %vm638_vm2, %v544_v19  ;;  %v731_v19 = vadd.s32 160, %v4568_v14 }
 0x11d   : > { %v2034_v29 = vld [vmem:[#allocation2 + $0x80] sm:$0xff] }
 0x11e   : > { %693 = vst.msk [vmem:[#allocation2 + $0x89] sm:$0xff] %vm638_vm2, %v621_v25  ;;  %v2830_v35 = vsel %vm4668_vm7, %v2034_v29, 0.0  ;;  %v1207_v41 = vld [vmem:[#allocation2 + $0x80] sm:$0xff]  ;;  %v887_v25 = vand.u32 15, %v731_v19 }
 0x11f   : > { %v1355_v31 = vld [vmem:[#allocation2 + $0x81] sm:$0xff]  ;;  %v1303_v46 = vsel %vm4725_vm9, %v1207_v41, 0.0 }
 0x120   : > { %vm4794_vm11 = vcmp.ge.s32.totalorder %v887_v25, 1 }
 0x121   : > { %v477_v37 = vpop.f32.mrf.mxu0  ;;  %v546_v49 = vpop.f32.mrf.mxu1 }
 0x122   : > { %v478_v38 = vadd.f32 %v477_v37, %v4503_v33  ;;  %v547_v39 = vadd.f32 %v546_v49, %v4605_v51 }
 0x124   : > { %v622_v43 = vmax.f32 %v478_v38, 0.0  ;;  %647 = vst.msk [vmem:[%s4616_s16 + $0x40] sm:$0xff] %vm638_vm2, %v547_v39  ;;  %3909 = vmatmul.msk.bf16.gmra.mxu1 %vm372_vm1, %v4436_v11  ;;  %4037 = vmatmul.msk.bf16.gmra.mxu0 %vm638_vm2, %v4655_v36  ;;  %v4193_v11 = vld [vmem:[%s5974_s3 + $0x30] sm:$0xff] }
 0x125   : > { %v1356_v44 = vld [vmem:[#allocation2 + $0x89] sm:$0xff]  ;;  %2172 = vmatpush.bf16.msrb.mxu3 %v4193_v11 }
 0x126   : > { %v1208_v45 = vld [vmem:[#allocation2 + $0x88] sm:$0xff]  ;;  %694 = vst.msk [vmem:[#allocation2 + $0x91] sm:$0xff] %vm638_vm2, %v622_v43  ;;  %v4740_v50 = vpack.c.bf16 %v1356_v44, %v1355_v31 }
 0x127   : > { %v4737_v47 = vld [vmem:[#allocation2 + $0x88] sm:$0xff]  ;;  %v1327_v52 = vpack.c.bf16 %v1208_v45, %v1303_v46 }
 0x128   : > { %v4746_v36 = vpack.c.bf16 %v4737_v47, %v2830_v35  ;;  %3933 = vmatmul.msk.bf16.gmra.mxu2 %vm638_vm2, %v4740_v50 }
 0x129   : > { %3957 = vmatmul.msk.bf16.gmra.mxu3 %vm638_vm2, %v1327_v52  ;;  %v479_v53 = vpop.f32.mrf.mxu0  ;;  %v548_v54 = vpop.f32.mrf.mxu1 }
 0x12a   : > { %6006 = vst [vmem:[#allocation9_spill] sm:$0xff] %v4746_v36  ;;  %v480_v55 = vadd.f32 %v479_v53, %v4503_v33  ;;  %v549_v56 = vadd.f32 %v548_v54, %v4605_v51 }
 0x12c   : > { %v623_v4 = vmax.f32 %v480_v55, 0.0  ;;  %648 = vst.msk [vmem:[%s4616_s16 + $0x48] sm:$0xff] %vm638_vm2, %v549_v56  ;;  %v733_v56 = vadd.s32 176, %v4568_v14 }
 0x12d   : > { %v2036_v61 = vld [vmem:[#allocation2 + $0x90] sm:$0xff] }
 0x12e   : > { %695 = vst.msk [vmem:[#allocation2 + $0x99] sm:$0xff] %vm638_vm2, %v623_v4  ;;  %v2832_v32 = vsel %vm4694_vm8, %v2036_v61, 0.0  ;;  %v1209_v34 = vld [vmem:[#allocation2 + $0x90] sm:$0xff]  ;;  %v901_v42 = vand.u32 15, %v733_v56  ;;  %v915_v61 = vand.u32 15, %v735_v58 }
 0x12f   : > { %v1357_v7 = vld [vmem:[#allocation2 + $0x91] sm:$0xff]  ;;  %v1305_v10 = vsel %vm4761_vm10, %v1209_v34, 0.0 }
 0x130   : > { %vm4826_vm12 = vcmp.ge.s32.totalorder %v901_v42, 1  ;;  %vm4830_vm13 = vcmp.ge.s32.totalorder %v915_v61, 1  ;;  %v2048_v58 = vld [vmem:[#allocation2 + $0xf0] sm:$0xff]  ;;  %v2049_v61 = vld [vmem:[#allocation2 + $0xf8] sm:$0xff] }
 0x131   : > { %v482_v62 = vpop.f32.mrf.mxu0  ;;  %v551_v63 = vpop.f32.mrf.mxu1 }
 0x132   : > { %v483_v0 = vadd.f32 %v482_v62, %v4503_v33  ;;  %v552_v1 = vadd.f32 %v551_v63, %v4605_v51 }
 0x134   : > { %v624_v5 = vmax.f32 %v483_v0, 0.0  ;;  %649 = vst.msk [vmem:[%s4616_s16 + $0x50] sm:$0xff] %vm638_vm2, %v552_v1  ;;  %3910 = vmatmul.msk.bf16.gmra.mxu1 %vm372_vm1, %v4443_v13  ;;  %4038 = vmatmul.msk.bf16.gmra.mxu0 %vm638_vm2, %v4681_v57  ;;  %v2046_v0 = vld [vmem:[#allocation2 + $0xe0] sm:$0xff] }
 0x135   : > { %v1358_v8 = vld [vmem:[#allocation2 + $0x99] sm:$0xff] }
 0x136   : > { %v1210_v9 = vld [vmem:[#allocation2 + $0x98] sm:$0xff]  ;;  %696 = vst.msk [vmem:[#allocation2 + $0xa1] sm:$0xff] %vm638_vm2, %v624_v5  ;;  %v4776_v15 = vpack.c.bf16 %v1358_v8, %v1357_v7  ;;  %v2047_v8 = vld [vmem:[#allocation2 + $0xe8] sm:$0xff] }
 0x137   : > { %v4773_v12 = vld [vmem:[#allocation2 + $0x98] sm:$0xff]  ;;  %v1328_v17 = vpack.c.bf16 %v1210_v9, %v1305_v10 }
 0x138   : > { %v4779_v23 = vpack.c.bf16 %v4773_v12, %v2832_v32  ;;  %3934 = vmatmul.msk.bf16.gmra.mxu2 %vm638_vm2, %v4776_v15 }
 0x139   : > { %3958 = vmatmul.msk.bf16.gmra.mxu3 %vm638_vm2, %v1328_v17  ;;  %v484_v13 = vpop.f32.mrf.mxu0  ;;  %v553_v57 = vpop.f32.mrf.mxu1 }
 0x13a   : > { %6009 = vst [vmem:[#allocation10_spill] sm:$0xff] %v4779_v23  ;;  %v485_v18 = vadd.f32 %v484_v13, %v4503_v33  ;;  %v554_v2 = vadd.f32 %v553_v57, %v4605_v51  ;;  %v2842_v57 = vsel %vm4830_vm13, %v2046_v0, 0.0 }
 0x13b   : > { %v4848_v25 = vpack.c.bf16 %v2047_v8, %v2842_v57 }
 0x13c   : > { %v625_v22 = vmax.f32 %v485_v18, 0.0  ;;  %650 = vst.msk [vmem:[%s4616_s16 + $0x58] sm:$0xff] %vm638_vm2, %v554_v2 }
 0x13d   : > { %v2038_v27 = vld [vmem:[#allocation2 + $0xa0] sm:$0xff]  ;;  %6017 = vst [vmem:[#allocation12_spill] sm:$0xff] %v4848_v25 }
 0x13e   : > { %697 = vst.msk [vmem:[#allocation2 + $0xa9] sm:$0xff] %vm638_vm2, %v625_v22  ;;  %v2834_v28 = vsel %vm4725_vm9, %v2038_v27, 0.0  ;;  %v1211_v39 = vld [vmem:[#allocation2 + $0xa0] sm:$0xff] }
 0x13f   : > { %v1359_v43 = vld [vmem:[#allocation2 + $0xa1] sm:$0xff]  ;;  %v1307_v45 = vsel %vm4794_vm11, %v1211_v39, 0.0 }
 0x141   : > { %v487_v29 = vpop.f32.mrf.mxu0  ;;  %v556_v35 = vpop.f32.mrf.mxu1 }
 0x142   : > { %v488_v37 = vadd.f32 %v487_v29, %v4503_v33  ;;  %v557_v49 = vadd.f32 %v556_v35, %v4605_v51 }
 0x144   : > { %v626_v41 = vmax.f32 %v488_v37, 0.0  ;;  %651 = vst.msk [vmem:[%s4616_s16 + $0x60] sm:$0xff] %vm638_vm2, %v557_v49  ;;  %3911 = vmatmul.msk.bf16.gmra.mxu1 %vm372_vm1, %v4463_v24  ;;  %4039 = vmatmul.msk.bf16.gmra.mxu0 %vm638_vm2, %v4707_v16 }
 0x145   : > { %v1360_v31 = vld [vmem:[#allocation2 + $0xa9] sm:$0xff] }
 0x146   : > { %v1212_v44 = vld [vmem:[#allocation2 + $0xa8] sm:$0xff]  ;;  %698 = vst.msk [vmem:[#allocation2 + $0xb1] sm:$0xff] %vm638_vm2, %v626_v41  ;;  %v4809_v52 = vpack.c.bf16 %v1360_v31, %v1359_v43  ;;  %v737_v31 = vadd.s32 208, %v4568_v14 }
 0x147   : > { %v4806_v46 = vld [vmem:[#allocation2 + $0xa8] sm:$0xff]  ;;  %v1329_v11 = vpack.c.bf16 %v1212_v44, %v1307_v45 }
 0x148   : > { %v4812_v53 = vpack.c.bf16 %v4806_v46, %v2834_v28  ;;  %3935 = vmatmul.msk.bf16.gmra.mxu2 %vm638_vm2, %v4809_v52  ;;  %v1339_v44 = vld [vmem:[#allocation2 + $0x1] sm:$0xff]  ;;  %v1340_v45 = vld [vmem:[#allocation2 + $0x9] sm:$0xff] }
 0x149   : > { %3959 = vmatmul.msk.bf16.gmra.mxu3 %vm638_vm2, %v1329_v11  ;;  %v489_v24 = vpop.f32.mrf.mxu0  ;;  %v558_v16 = vpop.f32.mrf.mxu1  ;;  %v1371_v11 = vpack.c.bf16 %v1340_v45, %v1339_v44  ;;  %v2050_v45 = vld [vmem:[#allocation2 + $0x100] sm:$0xff] }
 0x14a   : > { %6012 = vst [vmem:[#allocation11_spill] sm:$0xff] %v4812_v53  ;;  %v490_v54 = vadd.f32 %v489_v24, %v4503_v33  ;;  %v559_v55 = vadd.f32 %v558_v16, %v4605_v51  ;;  %v929_v24 = vand.u32 15, %v737_v31 }
 0x14c   : > { %v627_v4 = vmax.f32 %v490_v54, 0.0  ;;  %652 = vst.msk [vmem:[%s4616_s16 + $0x68] sm:$0xff] %vm638_vm2, %v559_v55  ;;  %vm4882_vm14 = vcmp.ge.s32.totalorder %v929_v24, 1 }
 0x14d   : > { %v2040_v32 = vld [vmem:[#allocation2 + $0xb0] sm:$0xff]  ;;  %v2844_v8 = vsel %vm4882_vm14, %v2048_v58, 0.0 }
 0x14e   : > { %699 = vst.msk [vmem:[#allocation2 + $0xb9] sm:$0xff] %vm638_vm2, %v627_v4  ;;  %v1213_v7 = vld [vmem:[#allocation2 + $0xb0] sm:$0xff]  ;;  %v2836_v10 = vsel %vm4761_vm10, %v2040_v32, 0.0 }
 0x14f   : > { %v1361_v13 = vld [vmem:[#allocation2 + $0xb1] sm:$0xff]  ;;  %v1309_v19 = vsel %vm4826_vm12, %v1213_v7, 0.0 }
 0x151   : > { %v492_v62 = vpop.f32.mrf.mxu0  ;;  %v561_v63 = vpop.f32.mrf.mxu1 }
 0x152   : > { %v493_v1 = vadd.f32 %v492_v62, %v4503_v33  ;;  %v562_v34 = vadd.f32 %v561_v63, %v4605_v51 }
 0x154   : > { %v628_v17 = vmax.f32 %v493_v1, 0.0  ;;  %653 = vst.msk [vmem:[%s4616_s16 + $0x70] sm:$0xff] %vm638_vm2, %v562_v34  ;;  %3912 = vmatmul.msk.bf16.gmra.mxu1 %vm372_vm1, %v4470_v26  ;;  %4040 = vmatmul.msk.bf16.gmra.mxu0 %vm638_vm2, %v4740_v50 }
 0x155   : > { %v1362_v18 = vld [vmem:[#allocation2 + $0xb9] sm:$0xff] }
 0x156   : > { %v1214_v2 = vld [vmem:[#allocation2 + $0xb8] sm:$0xff]  ;;  %700 = vst.msk [vmem:[#allocation2 + $0xc1] sm:$0xff] %vm638_vm2, %v628_v17  ;;  %v4851_v26 = vpack.c.bf16 %v1362_v18, %v1361_v13 }
 0x157   : > { %v4846_v22 = vld [vmem:[#allocation2 + $0xb8] sm:$0xff]  ;;  %v1330_v27 = vpack.c.bf16 %v1214_v2, %v1309_v19 }
 0x158   : > { %v4854_v50 = vpack.c.bf16 %v4846_v22, %v2836_v10  ;;  %3936 = vmatmul.msk.bf16.gmra.mxu2 %vm638_vm2, %v4851_v26  ;;  %v4901_v18 = vld [vmem:[#allocation2 + $0xd8] sm:$0xff] }
 0x159   : > { %3960 = vmatmul.msk.bf16.gmra.mxu3 %vm638_vm2, %v1330_v27  ;;  %v494_v28 = vpop.f32.mrf.mxu0  ;;  %v563_v29 = vpop.f32.mrf.mxu1 }
 0x15a   : > { %6018 = vst [vmem:[#allocation13_spill] sm:$0xff] %v4854_v50  ;;  %v495_v35 = vadd.f32 %v494_v28, %v4503_v33  ;;  %v564_v37 = vadd.f32 %v563_v29, %v4605_v51  ;;  %v739_v29 = vadd.s32 224, %v4568_v14 }
 0x15b   : > { %v1476_v49 = vpop.f32.mrf.mxu2 }
 0x15c   : > { %v1625_v39 = vpop.f32.mrf.mxu3  ;;  %v629_v41 = vmax.f32 %v495_v35, 0.0  ;;  %654 = vst.msk [vmem:[%s4616_s16 + $0x78] sm:$0xff] %vm638_vm2, %v564_v37  ;;  %v943_v31 = vand.u32 15, %v739_v29 }
 0x15d   : > { %v4863_v43 = vadd.f32 %v1625_v39, %v1476_v49  ;;  %v4867_v16 = vld [vmem:[#allocation2 + $0xc0] sm:$0xff] }
 0x15e   : > { %701 = vst.msk [vmem:[#allocation2 + $0xc9] sm:$0xff] %vm638_vm2, %v629_v41  ;;  %v1215_v56 = vld [vmem:[#allocation2 + $0xc0] sm:$0xff]  ;;  %v2838_v32 = vsel %vm4794_vm11, %v4867_v16, 0.0  ;;  %vm4923_vm15 = vcmp.ge.s32.totalorder %v943_v31, 1 }
 0x15f   : > { %v1363_v0 = vld [vmem:[#allocation2 + $0xc1] sm:$0xff]  ;;  %v1311_v7 = vsel %vm4830_vm13, %v1215_v56, 0.0  ;;  %v6024_v56 = vmov 0 }
 0x160   : > { %v6025_v56 = vsel %vm4923_vm15, 4294967295, %v6024_v56 }
 0x161   : > { %v566_v33 = vpop.f32.mrf.mxu1  ;;  %v4869_v54 = vpop.f32.mrf.mxu0 }
 0x162   : > { %v567_v55 = vadd.f32 %v566_v33, %v4605_v51  ;;  %v2051_v33 = vld [vmem:[#allocation2 + $0x108] sm:$0xff] }
 0x163   : > { %v1478_v4 = vpop.f32.mrf.mxu2 }
 0x164   : > { %v1627_v42 = vpop.f32.mrf.mxu3  ;;  %655 = vst.msk [vmem:[%s4616_s16 + $0x80] sm:$0xff] %vm638_vm2, %v567_v55  ;;  %3925 = vmatmul.msk.bf16.vlgmr.msra.gmra.mxu1 %vm638_vm2, %v1371_v11  ;;  %4041 = vmatmul.msk.bf16.gmra.mxu0 %vm638_vm2, %v4776_v15  ;;  %v4894_v15 = vpack.c.bf16 %v2049_v61, %v2844_v8  ;;  %v1366_v61 = vld [vmem:[#allocation2 + $0xd9] sm:$0xff] }
 0x165   : > { %v4877_v62 = vadd.f32 %v1627_v42, %v1478_v4  ;;  %v1364_v1 = vld [vmem:[#allocation2 + $0xc9] sm:$0xff]  ;;  %v1365_v42 = vld [vmem:[#allocation2 + $0xd1] sm:$0xff] }
 0x166   : > { %v1216_v34 = vld [vmem:[#allocation2 + $0xc8] sm:$0xff]  ;;  %v4890_v10 = vpack.c.bf16 %v1364_v1, %v1363_v0  ;;  %6021 = vst [vmem:[#allocation14_spill] sm:$0xff] %v4894_v15  ;;  %v4896_v57 = vld [vmem:[#allocation2 + $0xd0] sm:$0xff]  ;;  %v2846_v1 = vsel %vm4923_vm15, %v2050_v45, 0.0  ;;  %v4941_v8 = vpack.c.bf16 %v1366_v61, %v1365_v42 }
 0x167   : > { %v1331_v17 = vpack.c.bf16 %v1216_v34, %v1311_v7  ;;  %v4892_v13 = vld [vmem:[#allocation2 + $0xc8] sm:$0xff]  ;;  %v2840_v35 = vsel %vm4826_vm12, %v4896_v57, 0.0  ;;  %v1217_v44 = vld [vmem:[#allocation2 + $0xd0] sm:$0xff]  ;;  %v4939_v7 = vpack.c.bf16 %v2051_v33, %v2846_v1  ;;  %v741_v1 = vadd.s32 240, %v4568_v14 }
 0x168   : > { %3937 = vmatmul.msk.bf16.gmra.mxu2 %vm638_vm2, %v4890_v10  ;;  %v4906_v27 = vpack.c.bf16 %v4892_v13, %v2838_v32  ;;  %v4914_v39 = vpack.c.bf16 %v4901_v18, %v2840_v35  ;;  %v1218_v32 = vld [vmem:[#allocation2 + $0xd8] sm:$0xff]  ;;  %v1313_v0 = vsel %vm4882_vm14, %v1217_v44, 0.0  ;;  %v1367_v33 = vld [vmem:[#allocation2 + $0xe1] sm:$0xff] }
 0x169   : > { %3961 = vmatmul.msk.bf16.gmra.mxu3 %vm638_vm2, %v1331_v17  ;;  %v568_v2 = vpop.f32.mrf.mxu1  ;;  %v4903_v19 = vpop.f32.mrf.mxu0  ;;  %6026 = vst [vmem:[#allocation17_spill] sm:$0xff] %v4939_v7  ;;  %v1332_v17 = vpack.c.bf16 %v1218_v32, %v1313_v0  ;;  %v747_v0 = vand.u32 15, %v4568_v14 }
 0x16a   : > { %6022 = vst [vmem:[#allocation15_spill] sm:$0xff] %v4906_v27  ;;  %v569_v28 = vadd.f32 %v568_v2, %v4605_v51 }
 0x16b   : > { %v1481_v37 = vpop.f32.mrf.mxu2  ;;  %6023 = vst [vmem:[#allocation16_spill] sm:$0xff] %v4914_v39  ;;  %vm4983_vm0 = vcmp.ge.s32.totalorder %v747_v0, 1  ;;  %v1690_v39 = vld [vmem:[#allocation2 + $0x2] sm:$0xff] }
 0x16c   : > { %v1630_v49 = vpop.f32.mrf.mxu3  ;;  %656 = vst.msk [vmem:[%s4616_s16 + $0x88] sm:$0xff] %vm638_vm2, %v569_v28 }
 0x16d   : > { %v4918_v41 = vadd.f32 %v1630_v49, %v1481_v37  ;;  %v1219_v37 = vld [vmem:[#allocation2 + $0xe0] sm:$0xff] }
 0x171   : > { %v571_v11 = vpop.f32.mrf.mxu1  ;;  %v4920_v24 = vpop.f32.mrf.mxu0 }
 0x172   : > { %v572_v55 = vadd.f32 %v571_v11, %v4605_v51 }
 0x173   : > { %v1483_v58 = vpop.f32.mrf.mxu2 }
 0x174   : > { %v1632_v4 = vpop.f32.mrf.mxu3  ;;  %657 = vst.msk [vmem:[%s4616_s16 + $0x90] sm:$0xff] %vm638_vm2, %v572_v55  ;;  %3926 = vmatmul.msk.bf16.gmra.mxu1 %vm638_vm2, %v4610_v59  ;;  %4042 = vmatmul.msk.bf16.gmra.mxu0 %vm638_vm2, %v4809_v52  ;;  %v1368_v55 = vld [vmem:[#allocation2 + $0xe9] sm:$0xff] }
 0x175   : > { %v4933_v34 = vadd.f32 %v1632_v4, %v1483_v58  ;;  %v1220_v58 = vld [vmem:[#allocation2 + $0xe8] sm:$0xff]  ;;  %v1315_v4 = vsel %vm4923_vm15, %v1219_v37, 0.0  ;;  %v4966_v61 = vpack.c.bf16 %v1368_v55, %v1367_v33 }
 0x176   : > { %v1333_v32 = vpack.c.bf16 %v1220_v58, %v1315_v4  ;;  %v6029_v58 = vmov 0  ;;  %v1221_v4 = vld [vmem:[#allocation2 + $0xf0] sm:$0xff] }
 0x178   : > { %3938 = vmatmul.msk.bf16.gmra.mxu2 %vm638_vm2, %v4941_v8 }
 0x179   : > { %3962 = vmatmul.msk.bf16.gmra.mxu3 %vm638_vm2, %v1332_v17  ;;  %v573_v2 = vpop.f32.mrf.mxu1  ;;  %v4946_v28 = vpop.f32.mrf.mxu0 }
 0x17a   : > { %v574_v29 = vadd.f32 %v573_v2, %v4605_v51 }
 0x17b   : > { %v1486_v59 = vpop.f32.mrf.mxu2 }
 0x17c   : > { %v1635_v35 = vpop.f32.mrf.mxu3  ;;  %658 = vst.msk [vmem:[%s4616_s16 + $0x98] sm:$0xff] %vm638_vm2, %v574_v29  ;;  %v1191_v29 = vld [vmem:[#allocation2] sm:$0xff] }
 0x17d   : > { %v4951_v52 = vadd.f32 %v1635_v35, %v1486_v59  ;;  %v1287_v33 = vsel %vm4983_vm0, %v1191_v29, 0.0 }
 0x181   : > { %v576_v49 = vpop.f32.mrf.mxu1  ;;  %v4953_v31 = vpop.f32.mrf.mxu0 }
 0x182   : > { %v577_v44 = vadd.f32 %v576_v49, %v4605_v51  ;;  %v6027_v49 = vmov 0 }
 0x183   : > { %v1488_v45 = vpop.f32.mrf.mxu2  ;;  %v6028_v49 = vsel %vm4983_vm0, 4294967295, %v6027_v49 }
 0x184   : > { %v1637_v11 = vpop.f32.mrf.mxu3  ;;  %659 = vst.msk [vmem:[%s4616_s16 + $0xa0] sm:$0xff] %vm638_vm2, %v577_v44  ;;  %3927 = vmatmul.msk.bf16.gmra.mxu1 %vm638_vm2, %v4640_v20  ;;  %4043 = vmatmul.msk.bf16.gmra.mxu0 %vm638_vm2, %v4851_v26  ;;  %v4200_v20 = vld [vmem:[%s5974_s3 + $0x68] sm:$0xff]  ;;  %v957_v44 = vand.u32 15, %v741_v1 }
 0x185   : > { %v4960_v42 = vadd.f32 %v1637_v11, %v1488_v45  ;;  %2937 = vmatpush.bf16.msra.mxu2 %v4200_v20  ;;  %v4202_v45 = vld [vmem:[%s5974_s3 + $0x78] sm:$0xff]  ;;  %v1192_v11 = vld [vmem:[#allocation2 + $0x8] sm:$0xff] }
 0x186   : > { %3171 = vmatpush.bf16.msra.mxu3 %v4202_v45  ;;  %v1319_v55 = vpack.c.bf16 %v1192_v11, %v1287_v33  ;;  %vm4992_vm1 = vcmp.ge.s32.totalorder %v957_v44, 1  ;;  %v4204_v45 = vld [vmem:[%s5974_s3 + $0x88] sm:$0xff] }
 0x187   : > { %v6030_v58 = vsel %vm4992_vm1, 4294967295, %v6029_v58  ;;  %v1317_v29 = vsel %vm4992_vm1, %v1221_v4, 0.0  ;;  %3437 = vmatpush.bf16.msra.mxu0 %v4204_v45  ;;  %v6031_v45 = vmov 0 }
 0x188   : > { %3939 = vmatmul.msk.bf16.gmra.mxu2 %vm638_vm2, %v4966_v61 }
 0x189   : > { %3963 = vmatmul.msk.bf16.gmra.mxu3 %vm638_vm2, %v1333_v32  ;;  %v578_v17 = vpop.f32.mrf.mxu1  ;;  %v4976_v2 = vpop.f32.mrf.mxu0 }
 0x18a   : > { %v579_v26 = vadd.f32 %v578_v17, %v4605_v51  ;;  %3172 = vmatpush.bf16.msra.mxu3 %v4201_v48 }
 0x18b   : > { %v1491_v59 = vpop.f32.mrf.mxu2 }
 0x18c   : > { %v1640_v35 = vpop.f32.mrf.mxu3  ;;  %660 = vst.msk [vmem:[%s4616_s16 + $0xa8] sm:$0xff] %vm638_vm2, %v579_v26  ;;  %v1369_v26 = vld [vmem:[#allocation2 + $0xf1] sm:$0xff] }
 0x18d   : > { %v4981_v37 = vadd.f32 %v1640_v35, %v1491_v59  ;;  %v1370_v59 = vld [vmem:[#allocation2 + $0xf9] sm:$0xff] }
 0x18e   : > { %v1222_v35 = vld [vmem:[#allocation2 + $0xf8] sm:$0xff]  ;;  %v5011_v11 = vpack.c.bf16 %v1370_v59, %v1369_v26 }
 0x18f   : > { %v1334_v33 = vpack.c.bf16 %v1222_v35, %v1317_v29  ;;  %v4198_v59 = vld [vmem:[%s5974_s3 + $0x58] sm:$0xff] }
 0x190   : > { %2671 = vmatpush.bf16.msra.mxu1 %v4198_v59 }
 0x191   : > { %v581_v32 = vpop.f32.mrf.mxu1  ;;  %v4996_v0 = vpop.f32.mrf.mxu0 }
 0x192   : > { %v582_v1 = vadd.f32 %v581_v32, %v4605_v51  ;;  %v713_v32 = vadd.s32 16, %v4568_v14 }
 0x193   : > { %v1493_v20 = vpop.f32.mrf.mxu2 }
 0x194   : > { %v1642_v17 = vpop.f32.mrf.mxu3  ;;  %661 = vst.msk [vmem:[%s4616_s16 + $0xb0] sm:$0xff] %vm638_vm2, %v582_v1  ;;  %3949 = vmatmul.msk.bf16.vlgmr.msrb.gmra.mxu1 %vm638_vm2, %v1319_v55  ;;  %4044 = vmatmul.msk.bf16.gmra.mxu0 %vm638_vm2, %v4890_v10  ;;  %v712_v55 = vadd.s32 8, %v4568_v14 }
 0x195   : > { %v5003_v44 = vadd.f32 %v1642_v17, %v1493_v20  ;;  %v761_v20 = vand.u32 15, %v713_v32  ;;  %v4197_v32 = vld [vmem:[%s5974_s3 + $0x50] sm:$0xff] }
 0x196   : > { %v754_v29 = vand.u32 15, %v712_v55  ;;  %2672 = vmatpush.bf16.msra.mxu1 %v4197_v32 }
 0x197   : > { %vm5028_vm3 = vcmp.ge.s32.totalorder %v761_v20, 1 }
 0x198   : > { %3940 = vmatmul.msk.bf16.gmra.mxu2 %vm638_vm2, %v5011_v11  ;;  %v6032_v45 = vsel %vm5028_vm3, 4294967295, %v6031_v45  ;;  %vm5035_vm1 = vcmp.le.s32.totalorder %v754_v29, 14 }
 0x199   : > { %3964 = vmatmul.msk.bf16.gmra.mxu3 %vm638_vm2, %v1334_v33  ;;  %v583_v4 = vpop.f32.mrf.mxu1  ;;  %v5018_v10 = vpop.f32.mrf.mxu0  ;;  %6033 = vst [vmem:[#allocation18_spill] sm:$0xff] %v6032_v45  ;;  %v1193_v33 = vld [vmem:[#allocation2 + $0x10] sm:$0xff]  ;;  %v2027_v45 = vld [vmem:[#allocation2 + $0x48] sm:$0xff] }
 0x19a   : > { %v584_v1 = vadd.f32 %v583_v4, %v4605_v51  ;;  %v1194_v4 = vld [vmem:[#allocation2 + $0x18] sm:$0xff]  ;;  %v1289_v55 = vsel %vm5028_vm3, %v1193_v33, 0.0  ;;  %v2052_v32 = vsel %vm4983_vm0, %v1193_v33, 0.0 }
 0x19b   : > { %v1496_v17 = vpop.f32.mrf.mxu2  ;;  %v1320_v59 = vpack.c.bf16 %v1194_v4, %v1289_v55  ;;  %v2084_v55 = vpack.c.bf16 %v1194_v4, %v2052_v32  ;;  %v6039_v4 = vmov 0  ;;  %v1196_v32 = vld [vmem:[#allocation2 + $0x28] sm:$0xff] }
 0x19c   : > { %v1645_v26 = vpop.f32.mrf.mxu3  ;;  %662 = vst.msk [vmem:[%s4616_s16 + $0xb8] sm:$0xff] %vm638_vm2, %v584_v1  ;;  %v1691_v1 = vld [vmem:[#allocation2 + $0xa] sm:$0xff] }
 0x19d   : > { %v5026_v35 = vadd.f32 %v1645_v26, %v1496_v17  ;;  %v1787_v29 = vsel %vm5035_vm1, %v1691_v1, 0.0  ;;  %v714_v1 = vadd.s32 24, %v4568_v14 }
 0x19f   : > { %v768_v33 = vand.u32 15, %v714_v1 }
 0x1a1   : > { %v586_v17 = vpop.f32.mrf.mxu1  ;;  %v5042_v26 = vpop.f32.mrf.mxu0  ;;  %vm5070_vm15 = vcmp.le.s32.totalorder %v768_v33, 14  ;;  %v1692_v33 = vld [vmem:[#allocation2 + $0x12] sm:$0xff] }
 0x1a2   : > { %v587_v20 = vadd.f32 %v586_v17, %v4605_v51  ;;  %6036 = vst [vmem:[#allocation19_spill] sm:$0xff] %v5042_v26  ;;  %v1818_v17 = vpack.c.bf16 %v1787_v29, %v1690_v39  ;;  %v715_v26 = vadd.s32 32, %v4568_v14  ;;  %v1195_v29 = vld [vmem:[#allocation2 + $0x20] sm:$0xff] }
 0x1a3   : > { %v1498_v15 = vpop.f32.mrf.mxu2 }
 0x1a4   : > { %v1647_v25 = vpop.f32.mrf.mxu3  ;;  %663 = vst.msk [vmem:[%s4616_s16 + $0xc0] sm:$0xff] %vm638_vm2, %v587_v20  ;;  %3950 = vmatmul.msk.bf16.gmra.mxu1 %vm638_vm2, %v1320_v59  ;;  %4045 = vmatmul.msk.bf16.gmra.mxu0 %vm638_vm2, %v4941_v8  ;;  %v775_v20 = vand.u32 15, %v715_v26 }
 0x1a5   : > { %v5048_v27 = vadd.f32 %v1647_v25, %v1498_v15 }
 0x1a6   : > { %vm5066_vm0 = vcmp.ge.s32.totalorder %v775_v20, 1 }
 0x1a7   : > { %v6040_v4 = vsel %vm5066_vm0, 4294967295, %v6039_v4 }
 0x1a8   : > { %3977 = vmatmul.msk.bf16.vlgmr.msrb.gmra.mxu2 %vm638_vm2, %v1818_v17  ;;  %6041 = vst [vmem:[#allocation22_spill] sm:$0xff] %v6040_v4  ;;  %v2521_v17 = vld [vmem:[#allocation2 + $0x1a] sm:$0xff] }
 0x1a9   : > { %4005 = vmatmul.msk.bf16.vlgmr.msrb.gmra.mxu3 %vm638_vm2, %v2084_v55  ;;  %v588_v25 = vpop.f32.mrf.mxu1  ;;  %v5062_v8 = vpop.f32.mrf.mxu0  ;;  %v1789_v20 = vsel %vm5070_vm15, %v2521_v17, 0.0 }
 0x1aa   : > { %v589_v15 = vadd.f32 %v588_v25, %v4605_v51  ;;  %6037 = vst [vmem:[#allocation20_spill] sm:$0xff] %v5062_v8  ;;  %v1291_v25 = vsel %vm5066_vm0, %v1195_v29, 0.0  ;;  %v1819_v53 = vpack.c.bf16 %v1789_v20, %v1692_v33  ;;  %v5100_v20 = vld [vmem:[#allocation2 + $0x2a] sm:$0xff] }
 0x1ab   : > { %v1501_v59 = vpop.f32.mrf.mxu2 }
 0x1ac   : > { %v1650_v50 = vpop.f32.mrf.mxu3  ;;  %664 = vst.msk [vmem:[%s4616_s16 + $0xc8] sm:$0xff] %vm638_vm2, %v589_v15 }
 0x1ad   : > { %v5064_v39 = vadd.f32 %v1650_v50, %v1501_v59  ;;  %v1321_v50 = vpack.c.bf16 %v1196_v32, %v1291_v25 }
 0x1af   : > { %6038 = vst [vmem:[#allocation21_spill] sm:$0xff] %v5064_v39 }
 0x1b1   : > { %v591_v26 = vpop.f32.mrf.mxu1  ;;  %v5088_v25 = vpop.f32.mrf.mxu0 }
 0x1b2   : > { %v592_v15 = vadd.f32 %v591_v26, %v4605_v51  ;;  %v2054_v26 = vsel %vm5028_vm3, %v1195_v29, 0.0  ;;  %6045 = vst [vmem:[#allocation24_spill] sm:$0xff] %v5088_v25 }
 0x1b3   : > { %v1503_v59 = vpop.f32.mrf.mxu2  ;;  %v2085_v23 = vpack.c.bf16 %v1196_v32, %v2054_v26  ;;  %v2553_v32 = vsel %vm5035_vm1, %v2521_v17, 0.0  ;;  %v4203_v26 = vld [vmem:[%s5974_s3 + $0x80] sm:$0xff] }
 0x1b4   : > { %v1652_v1 = vpop.f32.mrf.mxu3  ;;  %665 = vst.msk [vmem:[%s4616_s16 + $0xd0] sm:$0xff] %vm638_vm2, %v592_v15  ;;  %3951 = vmatmul.msk.bf16.gmra.mxu1 %vm638_vm2, %v1321_v50  ;;  %4046 = vmatmul.msk.bf16.gmra.mxu0 %vm638_vm2, %v4966_v61  ;;  %v716_v15 = vadd.s32 40, %v4568_v14 }
 0x1b5   : > { %v5081_v8 = vadd.f32 %v1652_v1, %v1503_v59  ;;  %3438 = vmatpush.bf16.msra.mxu0 %v4203_v26 }
 0x1b6   : > { %v782_v29 = vand.u32 15, %v716_v15  ;;  %v2024_v15 = vld [vmem:[#allocation2 + $0x30] sm:$0xff] }
 0x1b7   : > { %6044 = vst [vmem:[#allocation23_spill] sm:$0xff] %v5081_v8 }
 0x1b8   : > { %3978 = vmatmul.msk.bf16.gmra.mxu2 %vm638_vm2, %v1819_v53  ;;  %vm5104_vm3 = vcmp.le.s32.totalorder %v782_v29, 14  ;;  %v2025_v29 = vld [vmem:[#allocation2 + $0x38] sm:$0xff] }
 0x1b9   : > { %4006 = vmatmul.msk.bf16.gmra.mxu3 %vm638_vm2, %v2085_v23  ;;  %v593_v59 = vpop.f32.mrf.mxu1  ;;  %v5102_v53 = vpop.f32.mrf.mxu0 }
 0x1ba   : > { %v594_v50 = vadd.f32 %v593_v59, %v4605_v51  ;;  %6047 = vst [vmem:[#allocation26_spill] sm:$0xff] %v5102_v53  ;;  %v1791_v53 = vsel %vm5104_vm3, %v5100_v20, 0.0 }
 0x1bb   : > { %v1506_v1 = vpop.f32.mrf.mxu2 }
 0x1bc   : > { %v1655_v36 = vpop.f32.mrf.mxu3  ;;  %666 = vst.msk [vmem:[%s4616_s16 + $0xd8] sm:$0xff] %vm638_vm2, %v594_v50  ;;  %v2584_v50 = vpack.c.bf16 %v2553_v32, %v1692_v33  ;;  %v1694_v33 = vld [vmem:[#allocation2 + $0x22] sm:$0xff]  ;;  %v2056_v32 = vsel %vm5066_vm0, %v2024_v15, 0.0 }
 0x1bd   : > { %v5096_v61 = vadd.f32 %v1655_v36, %v1506_v1  ;;  %v1820_v26 = vpack.c.bf16 %v1791_v53, %v1694_v33  ;;  %v2316_v53 = vld [vmem:[#allocation2 + $0x101] sm:$0xff] }
 0x1bf   : > { %6046 = vst [vmem:[#allocation25_spill] sm:$0xff] %v5096_v61 }
 0x1c1   : > { %v596_v59 = vpop.f32.mrf.mxu1 }
 0x1c2   : > { %v597_v36 = vadd.f32 %v596_v59, %v4605_v51  ;;  %v2086_v59 = vpack.c.bf16 %v2025_v29, %v2056_v32  ;;  %v2317_v29 = vld [vmem:[#allocation2 + $0x109] sm:$0xff]  ;;  %v2555_v32 = vsel %vm5070_vm15, %v5100_v20, 0.0 }
 0x1c3   : > { %v1508_v1 = vpop.f32.mrf.mxu2 }
 0x1c4   : > { %v1657_v17 = vpop.f32.mrf.mxu3  ;;  %667 = vst.msk [vmem:[%s4616_s16 + $0xe0] sm:$0xff] %vm638_vm2, %v597_v36  ;;  %4047 = vmatmul.msk.bf16.gmra.mxu0 %vm638_vm2, %v5011_v11  ;;  %4061 = vmatmul.msk.bf16.vlgmr.msra.gmra.mxu1 %vm638_vm2, %v2584_v50  ;;  %v718_v36 = vadd.s32 56, %v4568_v14 }
 0x1c5   : > { %v5117_v25 = vadd.f32 %v1657_v17, %v1508_v1  ;;  %v5127_v1 = vpop.f32.mrf.mxu0 }
 0x1c6   : > { %6051 = vst [vmem:[#allocation28_spill] sm:$0xff] %v5127_v1  ;;  %v796_v15 = vand.u32 15, %v718_v36 }
 0x1c7   : > { %6050 = vst [vmem:[#allocation27_spill] sm:$0xff] %v5117_v25 }
 0x1c8   : > { %3979 = vmatmul.msk.bf16.gmra.mxu2 %vm638_vm2, %v1820_v26  ;;  %vm5137_vm0 = vcmp.le.s32.totalorder %v796_v15, 14 }
 0x1c9   : > { %4007 = vmatmul.msk.bf16.gmra.mxu3 %vm638_vm2, %v2086_v59  ;;  %v598_v61 = vpop.f32.mrf.mxu1  ;;  %v5141_v59 = vld [vmem:[#allocation2 + $0x3a] sm:$0xff] }
 0x1ca   : > { %v599_v17 = vadd.f32 %v598_v61, %v4605_v51  ;;  %v1793_v4 = vsel %vm5137_vm0, %v5141_v59, 0.0 }
 0x1cb   : > { %v1511_v11 = vpop.f32.mrf.mxu2 }
 0x1cc   : > { %v1660_v25 = vpop.f32.mrf.mxu3  ;;  %668 = vst.msk [vmem:[%s4616_s16 + $0xe8] sm:$0xff] %vm638_vm2, %v599_v17  ;;  %v2333_v17 = vpack.c.bf16 %v2317_v29, %v2316_v53  ;;  %v1696_v53 = vld [vmem:[#allocation2 + $0x32] sm:$0xff] }
 0x1cd   : > { %v5132_v50 = vadd.f32 %v1660_v25, %v1511_v11  ;;  %v2585_v25 = vpack.c.bf16 %v2555_v32, %v1694_v33  ;;  %v2026_v11 = vld [vmem:[#allocation2 + $0x40] sm:$0xff]  ;;  %v5147_v8 = vpop.f32.mrf.mxu0  ;;  %v1821_v32 = vpack.c.bf16 %v1793_v4, %v1696_v53  ;;  %v2557_v4 = vsel %vm5104_vm3, %v5141_v59, 0.0 }
 0x1ce   : > { %6055 = vst [vmem:[#allocation30_spill] sm:$0xff] %v5147_v8  ;;  %v2058_v29 = vsel %vm4580_vm4, %v2026_v11, 0.0  ;;  %v720_v8 = vadd.s32 72, %v4568_v14 }
 0x1cf   : > { %6052 = vst [vmem:[#allocation29_spill] sm:$0xff] %v5132_v50 }
 0x1d1   : > { %v601_v61 = vpop.f32.mrf.mxu1 }
 0x1d2   : > { %v602_v1 = vadd.f32 %v601_v61, %v4605_v51  ;;  %v2087_v61 = vpack.c.bf16 %v2027_v45, %v2058_v29  ;;  %v3319_v45 = vsel %vm5035_vm1, %v5100_v20, 0.0  ;;  %v2586_v29 = vpack.c.bf16 %v2557_v4, %v1696_v53  ;;  %v2029_v20 = vld [vmem:[#allocation2 + $0x58] sm:$0xff] }
 0x1d3   : > { %v1513_v36 = vpop.f32.mrf.mxu2 }
 0x1d4   : > { %v1662_v50 = vpop.f32.mrf.mxu3  ;;  %669 = vst.msk [vmem:[%s4616_s16 + $0xf0] sm:$0xff] %vm638_vm2, %v602_v1  ;;  %4048 = vmatmul.msk.bf16.gmra.mxu0 %vm638_vm2, %v2333_v17  ;;  %4062 = vmatmul.msk.bf16.gmra.mxu1 %vm638_vm2, %v2585_v25  ;;  %v810_v25 = vand.u32 15, %v720_v8  ;;  %v2028_v8 = vld [vmem:[#allocation2 + $0x50] sm:$0xff] }
 0x1d5   : > { %v5151_v15 = vadd.f32 %v1662_v50, %v1513_v36  ;;  %v5165_v30 = vpop.f32.mrf.mxu0 }
 0x1d6   : > { %6058 = vst [vmem:[#allocation33_spill] sm:$0xff] %v5165_v30  ;;  %vm5173_vm4 = vcmp.le.s32.totalorder %v810_v25, 14  ;;  %v2060_v25 = vsel %vm4612_vm5, %v2028_v8, 0.0 }
 0x1d7   : > { %6056 = vst [vmem:[#allocation31_spill] sm:$0xff] %v5151_v15  ;;  %v2088_v4 = vpack.c.bf16 %v2029_v20, %v2060_v25  ;;  %v5205_v20 = vld [vmem:[#allocation2 + $0x5a] sm:$0xff]  ;;  %v726_v15 = vadd.s32 120, %v4568_v14 }
 0x1d8   : > { %3980 = vmatmul.msk.bf16.gmra.mxu2 %vm638_vm2, %v1821_v32  ;;  %v3350_v32 = vpack.c.bf16 %v3319_v45, %v1694_v33  ;;  %v722_v45 = vadd.s32 88, %v4568_v14 }
 0x1d9   : > { %4008 = vmatmul.msk.bf16.gmra.mxu3 %vm638_vm2, %v2087_v61  ;;  %v603_v39 = vpop.f32.mrf.mxu1 }
 0x1da   : > { %v604_v1 = vadd.f32 %v603_v39, %v4605_v51  ;;  %v1699_v51 = vld [vmem:[#allocation2 + $0x4a] sm:$0xff] }
 0x1db   : > { %v1516_v50 = vpop.f32.mrf.mxu2  ;;  %v1795_v7 = vsel %vm5173_vm4, %v1699_v51, 0.0  ;;  %v2559_v8 = vsel %vm5137_vm0, %v1699_v51, 0.0 }
 0x1dc   : > { %v1665_v36 = vpop.f32.mrf.mxu3  ;;  %670 = vst.msk [vmem:[%s4616_s16 + $0xf8] sm:$0xff] %vm638_vm2, %v604_v1 }
 0x1dd   : > { %v5163_v17 = vadd.f32 %v1665_v36, %v1516_v50  ;;  %v1698_v36 = vld [vmem:[#allocation2 + $0x42] sm:$0xff]  ;;  %v5187_v33 = vpop.f32.mrf.mxu0 }
 0x1de   : > { %v1822_v30 = vpack.c.bf16 %v1795_v7, %v1698_v36  ;;  %6062 = vst [vmem:[#allocation35_spill] sm:$0xff] %v5187_v33  ;;  %v3321_v7 = vsel %vm5070_vm15, %v5141_v59, 0.0  ;;  %v2031_v59 = vld [vmem:[#allocation2 + $0x68] sm:$0xff] }
 0x1df   : > { %6057 = vst [vmem:[#allocation32_spill] sm:$0xff] %v5163_v17 }
 0x1e1   : > { %v5177_v39 = vpop.f32.mrf.mxu1 }
 0x1e3   : > { %v1518_v61 = vpop.f32.mrf.mxu2 }
 0x1e4   : > { %v1667_v1 = vpop.f32.mrf.mxu3  ;;  %4063 = vmatmul.msk.bf16.gmra.mxu1 %vm638_vm2, %v2586_v29  ;;  %4145 = vmatmul.msk.bf16.vlgmr.msra.gmra.mxu0 %vm638_vm2, %v3350_v32  ;;  %v824_v32 = vand.u32 15, %v722_v45  ;;  %v2030_v45 = vld [vmem:[#allocation2 + $0x60] sm:$0xff] }
 0x1e5   : > { %v5181_v50 = vadd.f32 %v1667_v1, %v1518_v61 }
 0x1e6   : > { %vm5201_vm1 = vcmp.le.s32.totalorder %v824_v32, 14 }
 0x1e7   : > { %6061 = vst [vmem:[#allocation34_spill] sm:$0xff] %v5181_v50  ;;  %v1797_v55 = vsel %vm5201_vm1, %v5205_v20, 0.0 }
 0x1e8   : > { %3981 = vmatmul.msk.bf16.gmra.mxu2 %vm638_vm2, %v1822_v30  ;;  %v1708_v30 = vld [vmem:[#allocation2 + $0x92] sm:$0xff] }
 0x1e9   : > { %4009 = vmatmul.msk.bf16.gmra.mxu3 %vm638_vm2, %v2088_v4  ;;  %v5192_v61 = vpop.f32.mrf.mxu1  ;;  %v5209_v4 = vpop.f32.mrf.mxu0 }
 0x1ea   : > { %6066 = vst [vmem:[#allocation37_spill] sm:$0xff] %v5209_v4  ;;  %v2062_v4 = vsel %vm4642_vm6, %v2030_v45, 0.0  ;;  %v2561_v45 = vsel %vm5173_vm4, %v5205_v20, 0.0 }
 0x1eb   : > { %v1521_v1 = vpop.f32.mrf.mxu2 }
 0x1ec   : > { %v1670_v29 = vpop.f32.mrf.mxu3 }
 0x1ed   : > { %v5194_v50 = vadd.f32 %v1670_v29, %v1521_v1  ;;  %v2587_v1 = vpack.c.bf16 %v2559_v8, %v1698_v36  ;;  %v3351_v29 = vpack.c.bf16 %v3321_v7, %v1696_v53  ;;  %v1823_v8 = vpack.c.bf16 %v1797_v55, %v1700_v60 }
 0x1ee   : > { %v2089_v53 = vpack.c.bf16 %v2031_v59, %v2062_v4  ;;  %v724_v7 = vadd.s32 104, %v4568_v14  ;;  %v3323_v4 = vsel %vm5104_vm3, %v1699_v51, 0.0  ;;  %v5238_v59 = vld [vmem:[#allocation2 + $0x6a] sm:$0xff]  ;;  %v1702_v51 = vld [vmem:[#allocation2 + $0x62] sm:$0xff]  ;;  %vm6099_vm3 = vnez %v6030_v58 }
 0x1ef   : > { %6063 = vst [vmem:[#allocation36_spill] sm:$0xff] %v5194_v50 }
 0x1f1   : > { %v5207_v25 = vpop.f32.mrf.mxu1 }
 0x1f3   : > { %v1523_v33 = vpop.f32.mrf.mxu2 }
 0x1f4   : > { %v1672_v50 = vpop.f32.mrf.mxu3  ;;  %4064 = vmatmul.msk.bf16.gmra.mxu1 %vm638_vm2, %v2587_v1  ;;  %4146 = vmatmul.msk.bf16.gmra.mxu0 %vm638_vm2, %v3351_v29  ;;  %v838_v29 = vand.u32 15, %v724_v7 }
 0x1f5   : > { %v5214_v32 = vadd.f32 %v1672_v50, %v1523_v33 }
 0x1f6   : > { %vm5234_vm15 = vcmp.le.s32.totalorder %v838_v29, 14 }
 0x1f7   : > { %6067 = vst [vmem:[#allocation38_spill] sm:$0xff] %v5214_v32  ;;  %v5225_v32 = vpop.f32.mrf.mxu0 }
 0x1f8   : > { %3982 = vmatmul.msk.bf16.gmra.mxu2 %vm638_vm2, %v1823_v8  ;;  %6068 = vst [vmem:[#allocation39_spill] sm:$0xff] %v5225_v32  ;;  %v3352_v32 = vpack.c.bf16 %v3323_v4, %v1698_v36 }
 0x1f9   : > { %4010 = vmatmul.msk.bf16.gmra.mxu3 %vm638_vm2, %v2089_v53  ;;  %v5223_v17 = vpop.f32.mrf.mxu1  ;;  %v2588_v53 = vpack.c.bf16 %v2561_v45, %v1700_v60 }
 0x1fb   : > { %v1526_v50 = vpop.f32.mrf.mxu2 }
 0x1fc   : > { %v1675_v33 = vpop.f32.mrf.mxu3 }
 0x1fd   : > { %v5227_v1 = vadd.f32 %v1675_v33, %v1526_v50  ;;  %v2032_v50 = vld [vmem:[#allocation2 + $0x70] sm:$0xff] }
 0x1fe   : > { %v2064_v29 = vsel %vm4668_vm7, %v2032_v50, 0.0  ;;  %v852_v50 = vand.u32 15, %v726_v15 }
 0x1ff   : > { %6069 = vst [vmem:[#allocation40_spill] sm:$0xff] %v5227_v1  ;;  %v1799_v1 = vsel %vm5234_vm15, %v5238_v59, 0.0  ;;  %v5251_v45 = vpop.f32.mrf.mxu0  ;;  %v2090_v4 = vpack.c.bf16 %v2033_v21, %v2064_v29  ;;  %v3325_v29 = vsel %vm5137_vm0, %v5205_v20, 0.0 }
 0x200   : > { %6073 = vst [vmem:[#allocation42_spill] sm:$0xff] %v5251_v45  ;;  %v1824_v36 = vpack.c.bf16 %v1799_v1, %v1702_v51  ;;  %vm5274_vm7 = vcmp.le.s32.totalorder %v852_v50, 14  ;;  %v1704_v50 = vld [vmem:[#allocation2 + $0x72] sm:$0xff] }
 0x201   : > { %v5240_v8 = vpop.f32.mrf.mxu1 }
 0x203   : > { %v1528_v33 = vpop.f32.mrf.mxu2 }
 0x204   : > { %v1677_v7 = vpop.f32.mrf.mxu3  ;;  %4065 = vmatmul.msk.bf16.gmra.mxu1 %vm638_vm2, %v2588_v53  ;;  %4147 = vmatmul.msk.bf16.gmra.mxu0 %vm638_vm2, %v3352_v32  ;;  %v4199_v53 = vld [vmem:[%s5974_s3 + $0x60] sm:$0xff] }
 0x205   : > { %v5245_v23 = vadd.f32 %v1677_v7, %v1528_v33  ;;  %2938 = vmatpush.bf16.msra.mxu2 %v4199_v53  ;;  %v2563_v7 = vsel %vm5201_vm1, %v5238_v59, 0.0  ;;  %v5278_v53 = vld [vmem:[#allocation2 + $0x7a] sm:$0xff] }
 0x206   : > { %v2589_v48 = vpack.c.bf16 %v2563_v7, %v1702_v51  ;;  %v1801_v26 = vsel %vm5274_vm7, %v5278_v53, 0.0  ;;  %v728_v7 = vadd.s32 136, %v4568_v14 }
 0x207   : > { %6072 = vst [vmem:[#allocation41_spill] sm:$0xff] %v5245_v23 }
 0x208   : > { %3983 = vmatmul.msk.bf16.gmra.mxu2 %vm638_vm2, %v1824_v36  ;;  %v5272_v36 = vpop.f32.mrf.mxu0  ;;  %v866_v6 = vand.u32 15, %v728_v7 }
 0x209   : > { %4011 = vmatmul.msk.bf16.gmra.mxu3 %vm638_vm2, %v2090_v4  ;;  %v5259_v33 = vpop.f32.mrf.mxu1  ;;  %6075 = vst [vmem:[#allocation44_spill] sm:$0xff] %v5272_v36  ;;  %v4256_v36 = vld [vmem:[#allocation2 + $0x80] sm:$0xff] }
 0x20a   : > { %v2066_v23 = vsel %vm4694_vm8, %v4256_v36, 0.0  ;;  %vm5305_vm8 = vcmp.le.s32.totalorder %v866_v6, 14  ;;  %v4257_v6 = vld [vmem:[#allocation2 + $0x90] sm:$0xff] }
 0x20b   : > { %v1531_v32 = vpop.f32.mrf.mxu2 }
 0x20c   : > { %v1680_v1 = vpop.f32.mrf.mxu3 }
 0x20d   : > { %v5264_v21 = vadd.f32 %v1680_v1, %v1531_v32  ;;  %v3353_v1 = vpack.c.bf16 %v3325_v29, %v1700_v60  ;;  %v2091_v60 = vpack.c.bf16 %v4737_v47, %v2066_v23  ;;  %v2565_v47 = vsel %vm5234_vm15, %v5278_v53, 0.0 }
 0x20e   : > { %v3327_v23 = vsel %vm5173_vm4, %v5238_v59, 0.0  ;;  %v1706_v59 = vld [vmem:[#allocation2 + $0x82] sm:$0xff] }
 0x20f   : > { %6074 = vst [vmem:[#allocation43_spill] sm:$0xff] %v5264_v21 }
 0x211   : > { %v1610_v32 = vpop.f32.mrf.mxu1 }
 0x212   : > { %v1611_v15 = vadd.f32 %v1610_v32, %v5177_v39  ;;  %v1825_v39 = vpack.c.bf16 %v1801_v26, %v1704_v50  ;;  %v5309_v26 = vld [vmem:[#allocation2 + $0x8a] sm:$0xff] }
 0x213   : > { %v1533_v45 = vpop.f32.mrf.mxu2 }
 0x214   : > { %v1682_v21 = vpop.f32.mrf.mxu3  ;;  %4066 = vmatmul.msk.bf16.gmra.mxu1 %vm638_vm2, %v2589_v48  ;;  %4148 = vmatmul.msk.bf16.gmra.mxu0 %vm638_vm2, %v3353_v1 }
 0x215   : > { %v5284_v20 = vadd.f32 %v1682_v21, %v1533_v45  ;;  %v5294_v21 = vpop.f32.mrf.mxu0 }
 0x216   : > { %6078 = vst [vmem:[#allocation45_spill] sm:$0xff] %v5294_v21 }
 0x218   : > { %3984 = vmatmul.msk.bf16.gmra.mxu2 %vm638_vm2, %v1825_v39 }
 0x219   : > { %4012 = vmatmul.msk.bf16.gmra.mxu3 %vm638_vm2, %v2091_v60  ;;  %v1612_v45 = vpop.f32.mrf.mxu1  ;;  %v2590_v60 = vpack.c.bf16 %v2565_v47, %v1704_v50 }
 0x21a   : > { %v1613_v29 = vadd.f32 %v1612_v45, %v5192_v61  ;;  %v3354_v45 = vpack.c.bf16 %v3327_v23, %v1702_v51  ;;  %v730_v23 = vadd.s32 152, %v4568_v14 }
 0x21b   : > { %v1536_v32 = vpop.f32.mrf.mxu2 }
 0x21c   : > { %v1685_v48 = vpop.f32.mrf.mxu3 }
 0x21d   : > { %v5297_v1 = vadd.f32 %v1685_v48, %v1536_v32  ;;  %v1803_v48 = vsel %vm5305_vm8, %v5309_v26, 0.0  ;;  %v5315_v21 = vpop.f32.mrf.mxu0 }
 0x21e   : > { %6081 = vst [vmem:[#allocation46_spill] sm:$0xff] %v5315_v21  ;;  %v1826_v51 = vpack.c.bf16 %v1803_v48, %v1706_v59  ;;  %v880_v21 = vand.u32 15, %v730_v23  ;;  %v3329_v48 = vsel %vm5201_vm1, %v5278_v53, 0.0  ;;  %v4258_v53 = vld [vmem:[#allocation2 + $0xa0] sm:$0xff]  ;;  %vm6100_vm1 = vnez %v6028_v49 }
 0x21f   : > { %v2550_v49 = vld [vmem:[#allocation2 + $0x102] sm:$0xff] }
 0x220   : > { %vm5336_vm4 = vcmp.le.s32.totalorder %v880_v21, 14  ;;  %v2070_v21 = vsel %vm4761_vm10, %v4258_v53, 0.0 }
 0x221   : > { %v1615_v61 = vpop.f32.mrf.mxu1 }
 0x222   : > { %v1616_v39 = vadd.f32 %v1615_v61, %v5207_v25  ;;  %v2068_v25 = vsel %vm4725_vm9, %v4257_v6, 0.0 }
 0x223   : > { %v1538_v7 = vpop.f32.mrf.mxu2  ;;  %v2092_v47 = vpack.c.bf16 %v4773_v12, %v2068_v25  ;;  %v2567_v12 = vsel %vm5274_vm7, %v5309_v26, 0.0 }
 0x224   : > { %v1687_v32 = vpop.f32.mrf.mxu3  ;;  %4067 = vmatmul.msk.bf16.gmra.mxu1 %vm638_vm2, %v2590_v60  ;;  %4149 = vmatmul.msk.bf16.gmra.mxu0 %vm638_vm2, %v3354_v45 }
 0x225   : > { %v5317_v11 = vadd.f32 %v1687_v32, %v1538_v7 }
 0x227   : > { %6082 = vst [vmem:[#allocation47_spill] sm:$0xff] %v5317_v11  ;;  %v5328_v11 = vpop.f32.mrf.mxu0 }
 0x228   : > { %3985 = vmatmul.msk.bf16.gmra.mxu2 %vm638_vm2, %v1826_v51  ;;  %v2591_v51 = vpack.c.bf16 %v2567_v12, %v1706_v59 }
 0x229   : > { %4013 = vmatmul.msk.bf16.gmra.mxu3 %vm638_vm2, %v2092_v47  ;;  %v1617_v61 = vpop.f32.mrf.mxu1  ;;  %v3355_v47 = vpack.c.bf16 %v3329_v48, %v1704_v50  ;;  %v2093_v50 = vpack.c.bf16 %v4806_v46, %v2070_v21 }
 0x22a   : > { %v1618_v7 = vadd.f32 %v1617_v61, %v5223_v17  ;;  %v5340_v17 = vld [vmem:[#allocation2 + $0x9a] sm:$0xff] }
 0x22b   : > { %v1908_v60 = vpop.f32.mrf.mxu2  ;;  %v2569_v46 = vsel %vm5305_vm8, %v5340_v17, 0.0 }
 0x22c   : > { %v2174_v32 = vpop.f32.mrf.mxu3  ;;  %v1988_v45 = vadd.f32 %v1908_v60, %v1611_v15  ;;  %v1805_v60 = vsel %vm5336_vm4, %v5340_v17, 0.0 }
 0x22e   : > { %v2254_v40 = vadd.f32 %v2174_v32, %v1988_v45 }
 0x22f   : > { %v5351_v12 = vpop.f32.mrf.mxu0 }
 0x231   : > { %v1620_v25 = vpop.f32.mrf.mxu1 }
 0x232   : > { %v1621_v15 = vadd.f32 %v1620_v25, %v5240_v8  ;;  %v1827_v8 = vpack.c.bf16 %v1805_v60, %v1708_v30  ;;  %v2488_v60 = vadd.f32 %v4869_v54, %v2254_v40  ;;  %v4259_v40 = vld [vmem:[#allocation2 + $0xb0] sm:$0xff] }
 0x233   : > { %v1910_v23 = vpop.f32.mrf.mxu2 }
 0x234   : > { %v2176_v61 = vpop.f32.mrf.mxu3  ;;  %v1989_v32 = vadd.f32 %v1910_v23, %v1613_v29  ;;  %4068 = vmatmul.msk.bf16.gmra.mxu1 %vm638_vm2, %v2591_v51  ;;  %4150 = vmatmul.msk.bf16.gmra.mxu0 %vm638_vm2, %v3355_v47  ;;  %v732_v29 = vadd.s32 168, %v4568_v14 }
 0x236   : > { %v2255_v45 = vadd.f32 %v2176_v61, %v1989_v32  ;;  %v894_v3 = vand.u32 15, %v732_v29  ;;  %v3331_v61 = vsel %vm5234_vm15, %v5309_v26, 0.0  ;;  %v1710_v26 = vld [vmem:[#allocation2 + $0xa2] sm:$0xff] }
 0x237   : > { %v3356_v29 = vpack.c.bf16 %v3331_v61, %v1706_v59 }
 0x238   : > { %3986 = vmatmul.msk.bf16.gmra.mxu2 %vm638_vm2, %v1827_v8  ;;  %vm5364_vm9 = vcmp.le.s32.totalorder %v894_v3, 14 }
 0x239   : > { %4014 = vmatmul.msk.bf16.gmra.mxu3 %vm638_vm2, %v2093_v50  ;;  %v1622_v48 = vpop.f32.mrf.mxu1  ;;  %v2592_v50 = vpack.c.bf16 %v2569_v46, %v1708_v30  ;;  %v2489_v46 = vadd.f32 %v4903_v19, %v2255_v45  ;;  %v3333_v19 = vsel %vm5274_vm7, %v5340_v17, 0.0 }
 0x23a   : > { %v1623_v25 = vadd.f32 %v1622_v48, %v5259_v33  ;;  %v5368_v33 = vld [vmem:[#allocation2 + $0xaa] sm:$0xff] }
 0x23b   : > { %v1913_v51 = vpop.f32.mrf.mxu2  ;;  %v1807_v55 = vsel %vm5364_vm9, %v5368_v33, 0.0 }
 0x23c   : > { %v2179_v47 = vpop.f32.mrf.mxu3  ;;  %v1990_v23 = vadd.f32 %v1913_v51, %v1616_v39  ;;  %v5370_v39 = vpop.f32.mrf.mxu0  ;;  %v1828_v3 = vpack.c.bf16 %v1807_v55, %v1710_v26 }
 0x23e   : > { %v2256_v53 = vadd.f32 %v2179_v47, %v1990_v23  ;;  %v2072_v47 = vsel %vm4794_vm11, %v4259_v40, 0.0 }
 0x23f   : > { %v2094_v59 = vpack.c.bf16 %v4846_v22, %v2072_v47  ;;  %v2571_v22 = vsel %vm5336_vm4, %v5368_v33, 0.0 }
 0x240   : > { %v2490_v45 = vadd.f32 %v4920_v24, %v2256_v53  ;;  %v2593_v47 = vpack.c.bf16 %v2571_v22, %v1710_v26  ;;  %v1712_v24 = vld [vmem:[#allocation2 + $0xb2] sm:$0xff]  ;;  %v2074_v53 = vsel %vm4826_vm12, %v4867_v16, 0.0 }
 0x241   : > { %v2674_v21 = vpop.f32.mrf.mxu1 }
 0x242   : > { %v5372_v8 = vadd.f32 %v2674_v21, %v2488_v60 }
 0x243   : > { %v1915_v48 = vpop.f32.mrf.mxu2 }
 0x244   : > { %v2181_v51 = vpop.f32.mrf.mxu3  ;;  %v1991_v54 = vadd.f32 %v1915_v48, %v1618_v7  ;;  %4069 = vmatmul.msk.bf16.gmra.mxu1 %vm638_vm2, %v2592_v50  ;;  %4151 = vmatmul.msk.bf16.gmra.mxu0 %vm638_vm2, %v3356_v29  ;;  %v734_v7 = vadd.s32 184, %v4568_v14  ;;  %v5388_v29 = vpop.f32.mrf.mxu0 }
 0x246   : > { %v2257_v23 = vadd.f32 %v2181_v51, %v1991_v54  ;;  %v908_v48 = vand.u32 15, %v734_v7  ;;  %v5401_v54 = vld [vmem:[#allocation2 + $0xba] sm:$0xff] }
 0x248   : > { %3987 = vmatmul.msk.bf16.gmra.mxu2 %vm638_vm2, %v1828_v3  ;;  %vm5397_vm10 = vcmp.le.s32.totalorder %v908_v48, 14  ;;  %v3357_v3 = vpack.c.bf16 %v3333_v19, %v1708_v30 }
 0x249   : > { %4015 = vmatmul.msk.bf16.gmra.mxu3 %vm638_vm2, %v2094_v59  ;;  %v2676_v61 = vpop.f32.mrf.mxu1  ;;  %v1809_v4 = vsel %vm5397_vm10, %v5401_v54, 0.0 }
 0x24a   : > { %v5386_v60 = vadd.f32 %v2676_v61, %v2489_v46  ;;  %v1829_v30 = vpack.c.bf16 %v1809_v4, %v1712_v24 }
 0x24b   : > { %v1918_v21 = vpop.f32.mrf.mxu2 }
 0x24c   : > { %v2184_v50 = vpop.f32.mrf.mxu3  ;;  %v1992_v38 = vadd.f32 %v1918_v21, %v1621_v15  ;;  %v5413_v7 = vpop.f32.mrf.mxu0  ;;  %v2095_v21 = vpack.c.bf16 %v4892_v13, %v2074_v53  ;;  %v2573_v13 = vsel %vm5364_vm9, %v5401_v54, 0.0 }
 0x24e   : > { %v2258_v51 = vadd.f32 %v2184_v50, %v1992_v38  ;;  %v736_v50 = vadd.s32 200, %v4568_v14 }
 0x250   : > { %v922_v19 = vand.u32 15, %v736_v50  ;;  %v738_v50 = vadd.s32 216, %v4568_v14 }
 0x251   : > { %v2679_v40 = vpop.f32.mrf.mxu1 }
 0x252   : > { %v5403_v15 = vadd.f32 %v2679_v40, %v2490_v45  ;;  %v3335_v40 = vsel %vm5305_vm8, %v5368_v33, 0.0  ;;  %vm5432_vm11 = vcmp.le.s32.totalorder %v922_v19, 14 }
 0x253   : > { %v1920_v59 = vpop.f32.mrf.mxu2  ;;  %v3358_v4 = vpack.c.bf16 %v3335_v40, %v1710_v26  ;;  %v5472_v40 = vld [vmem:[#allocation2 + $0xda] sm:$0xff] }
 0x254   : > { %v2186_v46 = vpop.f32.mrf.mxu3  ;;  %v1993_v17 = vadd.f32 %v1920_v59, %v1623_v25  ;;  %4070 = vmatmul.msk.bf16.gmra.mxu1 %vm638_vm2, %v2593_v47  ;;  %4152 = vmatmul.msk.bf16.gmra.mxu0 %vm638_vm2, %v3357_v3  ;;  %v2491_v25 = vadd.f32 %v4946_v28, %v2257_v23  ;;  %v5429_v28 = vpop.f32.mrf.mxu0  ;;  %v2492_v23 = vadd.f32 %v4953_v31, %v2258_v51  ;;  %v5436_v3 = vld [vmem:[#allocation2 + $0xca] sm:$0xff]  ;;  %v2076_v31 = vsel %vm4830_vm13, %v4896_v57, 0.0 }
 0x255   : > { %v1811_v36 = vsel %vm5432_vm11, %v5436_v3, 0.0  ;;  %v2096_v26 = vpack.c.bf16 %v4901_v18, %v2076_v31  ;;  %v2575_v18 = vsel %vm5397_vm10, %v5436_v3, 0.0 }
 0x256   : > { %v2259_v61 = vadd.f32 %v2186_v46, %v1993_v17  ;;  %v2594_v46 = vpack.c.bf16 %v2573_v13, %v1712_v24  ;;  %v3054_v13 = vld [vmem:[#allocation2 + $0x31] sm:$0xff] }
 0x258   : > { %3988 = vmatmul.msk.bf16.gmra.mxu2 %vm638_vm2, %v1829_v30  ;;  %v1714_v30 = vld [vmem:[#allocation2 + $0xc2] sm:$0xff] }
 0x259   : > { %4016 = vmatmul.msk.bf16.gmra.mxu3 %vm638_vm2, %v2095_v21  ;;  %v2681_v38 = vpop.f32.mrf.mxu1  ;;  %v1830_v21 = vpack.c.bf16 %v1811_v36, %v1714_v30 }
 0x25a   : > { %v5420_v48 = vadd.f32 %v2681_v38, %v2491_v25  ;;  %v2493_v25 = vadd.f32 %v4976_v2, %v2259_v61  ;;  %v3337_v2 = vsel %vm5336_vm4, %v5401_v54, 0.0  ;;  %v4260_v54 = vld [vmem:[#allocation2 + $0xe0] sm:$0xff] }
 0x25b   : > { %v1923_v22 = vpop.f32.mrf.mxu2 }
 0x25c   : > { %v2189_v5 = vpop.f32.mrf.mxu3  ;;  %v1994_v16 = vadd.f32 %v1923_v22, %v4863_v43  ;;  %v5454_v57 = vpop.f32.mrf.mxu0 }
 0x25e   : > { %v2260_v45 = vadd.f32 %v2189_v5, %v1994_v16  ;;  %v936_v16 = vand.u32 15, %v738_v50 }
 0x260   : > { %v2494_v61 = vadd.f32 %v4996_v0, %v2260_v45  ;;  %vm5468_vm12 = vcmp.le.s32.totalorder %v936_v16, 14  ;;  %v2078_v0 = vsel %vm4882_vm14, %v4260_v54, 0.0  ;;  %vm6095_vm14 = vnez %v6025_v56 }
 0x261   : > { %v2684_v43 = vpop.f32.mrf.mxu1  ;;  %v1813_v6 = vsel %vm5468_vm12, %v5472_v40, 0.0  ;;  %v742_v56 = vadd.s32 248, %v4568_v14 }
 0x262   : > { %v5438_v59 = vadd.f32 %v2684_v43, %v2492_v23  ;;  %v2595_v43 = vpack.c.bf16 %v2575_v18, %v1714_v30  ;;  %v2577_v18 = vsel %vm5432_vm11, %v5472_v40, 0.0 }
 0x263   : > { %v1925_v17 = vpop.f32.mrf.mxu2 }
 0x264   : > { %v2191_v53 = vpop.f32.mrf.mxu3  ;;  %v1995_v33 = vadd.f32 %v1925_v17, %v4877_v62  ;;  %4071 = vmatmul.msk.bf16.gmra.mxu1 %vm638_vm2, %v2594_v46  ;;  %4153 = vmatmul.msk.bf16.gmra.mxu0 %vm638_vm2, %v3358_v4  ;;  %v3359_v46 = vpack.c.bf16 %v3337_v2, %v1712_v24  ;;  %v5481_v45 = vpop.f32.mrf.mxu0  ;;  %v1719_v2 = vld [vmem:[#allocation2 + $0xea] sm:$0xff] }
 0x266   : > { %v2261_v51 = vadd.f32 %v2191_v53, %v1995_v33  ;;  %v1716_v53 = vld [vmem:[#allocation2 + $0xd2] sm:$0xff]  ;;  %v4261_v33 = vld [vmem:[#allocation2 + $0xe8] sm:$0xff] }
 0x267   : > { %v1831_v31 = vpack.c.bf16 %v1813_v6, %v1716_v53 }
 0x268   : > { %3989 = vmatmul.msk.bf16.gmra.mxu2 %vm638_vm2, %v1830_v21  ;;  %v2097_v21 = vpack.c.bf16 %v4261_v33, %v2078_v0  ;;  %v2495_v63 = vadd.f32 %v5018_v10, %v2261_v51  ;;  %v3339_v10 = vsel %vm5364_vm9, %v5436_v3, 0.0 }
 0x269   : > { %4017 = vmatmul.msk.bf16.gmra.mxu3 %vm638_vm2, %v2096_v26  ;;  %v2686_v9 = vpop.f32.mrf.mxu1  ;;  %v740_v26 = vadd.s32 232, %v4568_v14 }
 0x26a   : > { %v5456_v62 = vadd.f32 %v2686_v9, %v2493_v25 }
 0x26b   : > { %v1928_v38 = vpop.f32.mrf.mxu2 }
 0x26c   : > { %v2194_v22 = vpop.f32.mrf.mxu3  ;;  %v1996_v5 = vadd.f32 %v1928_v38, %v4918_v41 }
 0x26e   : > { %v5459_v19 = vadd.f32 %v2194_v22, %v1996_v5  ;;  %v950_v22 = vand.u32 15, %v740_v26  ;;  %v5495_v5 = vpop.f32.mrf.mxu0  ;;  %v2579_v26 = vsel %vm5468_vm12, %v1719_v2, 0.0 }
 0x270   : > { %vm5505_vm13 = vcmp.le.s32.totalorder %v950_v22, 14 }
 0x271   : > { %v2689_v41 = vpop.f32.mrf.mxu1 }
 0x272   : > { %v5474_v23 = vadd.f32 %v2689_v41, %v2494_v61  ;;  %v2596_v61 = vpack.c.bf16 %v2577_v18, %v1716_v53 }
 0x273   : > { %v1930_v4 = vpop.f32.mrf.mxu2 }
 0x274   : > { %v2196_v17 = vpop.f32.mrf.mxu3  ;;  %v1997_v36 = vadd.f32 %v1930_v4, %v4933_v34  ;;  %4072 = vmatmul.msk.bf16.gmra.mxu1 %vm638_vm2, %v2595_v43  ;;  %4154 = vmatmul.msk.bf16.gmra.mxu0 %vm638_vm2, %v3359_v46  ;;  %v1718_v46 = vld [vmem:[#allocation2 + $0xe2] sm:$0xff]  ;;  %v1815_v4 = vsel %vm5505_vm13, %v1719_v2, 0.0 }
 0x275   : > { %v1832_v54 = vpack.c.bf16 %v1815_v4, %v1718_v46 }
 0x276   : > { %v5486_v24 = vadd.f32 %v2196_v17, %v1997_v36  ;;  %v4262_v17 = vld [vmem:[#allocation2 + $0xf0] sm:$0xff]  ;;  %v5518_v36 = vpop.f32.mrf.mxu0 }
 0x277   : > { %v2080_v6 = vsel %vm6095_vm14, %v4262_v17, 0.0  ;;  %6096 = vst [vmem:[#allocation48_spill] sm:$0xff] %v5518_v36  ;;  %v3064_v36 = vld [vmem:[#allocation2 + $0x81] sm:$0xff] }
 0x278   : > { %3990 = vmatmul.msk.bf16.gmra.mxu2 %vm638_vm2, %v1831_v31 }
 0x279   : > { %4018 = vmatmul.msk.bf16.gmra.mxu3 %vm638_vm2, %v2097_v21  ;;  %v2691_v25 = vpop.f32.mrf.mxu1  ;;  %v964_v21 = vand.u32 15, %v742_v56 }
 0x27a   : > { %v5492_v50 = vadd.f32 %v2691_v25, %v2495_v63  ;;  %v3341_v25 = vsel %vm5397_vm10, %v5472_v40, 0.0 }
 0x27b   : > { %v1933_v34 = vpop.f32.mrf.mxu2  ;;  %vm5531_vm0 = vcmp.le.s32.totalorder %v964_v21, 14  ;;  %v3361_v22 = vpack.c.bf16 %v3341_v25, %v1716_v53  ;;  %v4265_v53 = vld [vmem:[#allocation2 + $0x108] sm:$0xff] }
 0x27c   : > { %v2199_v9 = vpop.f32.mrf.mxu3  ;;  %v1998_v38 = vadd.f32 %v1933_v34, %v4951_v52  ;;  %v3360_v52 = vpack.c.bf16 %v3339_v10, %v1714_v30  ;;  %v4263_v30 = vld [vmem:[#allocation2 + $0xf8] sm:$0xff]  ;;  %v3053_v25 = vld [vmem:[#allocation2 + $0x29] sm:$0xff] }
 0x27d   : > { %v2098_v0 = vpack.c.bf16 %v4263_v30, %v2080_v6  ;;  %v1720_v10 = vld [vmem:[#allocation2 + $0xf2] sm:$0xff] }
 0x27e   : > { %v5497_v16 = vadd.f32 %v2199_v9, %v1998_v38  ;;  %v1721_v9 = vld [vmem:[#allocation2 + $0xfa] sm:$0xff]  ;;  %v5535_v14 = vpop.f32.mrf.mxu0  ;;  %v2597_v38 = vpack.c.bf16 %v2579_v26, %v1718_v46  ;;  %v2787_v26 = vld [vmem:[#allocation2 + $0x28] sm:$0xff] }
 0x27f   : > { %v2581_v30 = vsel %vm5505_vm13, %v1721_v9, 0.0 }
 0x280   : > { %v2598_v56 = vpack.c.bf16 %v2581_v30, %v1720_v10 }
 0x283   : > { %v1935_v41 = vpop.f32.mrf.mxu2 }
 0x284   : > { %v2201_v43 = vpop.f32.mrf.mxu3  ;;  %v1999_v32 = vadd.f32 %v1935_v41, %v4960_v42  ;;  %4073 = vmatmul.msk.bf16.gmra.mxu1 %vm638_vm2, %v2596_v61  ;;  %4155 = vmatmul.msk.bf16.gmra.mxu0 %vm638_vm2, %v3360_v52  ;;  %v1817_v61 = vsel %vm5531_vm0, %v1721_v9, 0.0  ;;  %v4264_v52 = vld [vmem:[#allocation2 + $0x100] sm:$0xff] }
 0x285   : > { %v2082_v55 = vsel %vm6099_vm3, %v4264_v52, 0.0 }
 0x286   : > { %v5516_v3 = vadd.f32 %v2201_v43, %v1999_v32  ;;  %v1833_v43 = vpack.c.bf16 %v1817_v61, %v1720_v10  ;;  %v2099_v4 = vpack.c.bf16 %v4265_v53, %v2082_v55  ;;  %v5548_v32 = vpop.f32.mrf.mxu0  ;;  %v6101_v61 = vld [vmem:[#allocation21_spill] sm:$0xff]  ;;  %v2551_v55 = vld [vmem:[#allocation2 + $0x10a] sm:$0xff]  ;;  %v3345_v53 = vsel %vm5468_vm12, %v1721_v9, 0.0 }
 0x288   : > { %3991 = vmatmul.msk.bf16.gmra.mxu2 %vm638_vm2, %v1832_v54 }
 0x289   : > { %4019 = vmatmul.msk.bf16.gmra.mxu3 %vm638_vm2, %v2098_v0  ;;  %v3343_v0 = vsel %vm5432_vm11, %v1719_v2, 0.0 }
 0x28b   : > { %v1938_v31 = vpop.f32.mrf.mxu2 }
 0x28c   : > { %v2204_v33 = vpop.f32.mrf.mxu3  ;;  %v2000_v42 = vadd.f32 %v1938_v31, %v4981_v37  ;;  %v3362_v31 = vpack.c.bf16 %v3343_v0, %v1718_v46 }
 0x28e   : > { %v5524_v63 = vadd.f32 %v2204_v33, %v2000_v42  ;;  %v2786_v33 = vld [vmem:[#allocation2 + $0x20] sm:$0xff] }
 0x293   : > { %v1940_v37 = vpop.f32.mrf.mxu2 }
 0x294   : > { %v2206_v18 = vpop.f32.mrf.mxu3  ;;  %v2001_v40 = vadd.f32 %v1940_v37, %v5003_v44  ;;  %4074 = vmatmul.msk.bf16.gmra.mxu1 %vm638_vm2, %v2597_v38  ;;  %4156 = vmatmul.msk.bf16.gmra.mxu0 %vm638_vm2, %v3361_v22  ;;  %v3052_v22 = vld [vmem:[#allocation2 + $0x21] sm:$0xff]  ;;  %v5562_v37 = vpop.f32.mrf.mxu0 }
 0x295   : > { %v3084_v46 = vpack.c.bf16 %v3053_v25, %v3052_v22 }
 0x296   : > { %v5544_v41 = vadd.f32 %v2206_v18, %v2001_v40 }
 0x298   : > { %3992 = vmatmul.msk.bf16.gmra.mxu2 %vm638_vm2, %v1833_v43  ;;  %v2583_v43 = vsel %vm5531_vm0, %v2551_v55, 0.0 }
 0x299   : > { %4020 = vmatmul.msk.bf16.gmra.mxu3 %vm638_vm2, %v2099_v4 }
 0x29b   : > { %v1943_v17 = vpop.f32.mrf.mxu2 }
 0x29c   : > { %v2209_v6 = vpop.f32.mrf.mxu3  ;;  %v2002_v54 = vadd.f32 %v1943_v17, %v5026_v35  ;;  %v2818_v35 = vsel %vm6100_vm1, %v2786_v33, 0.0  ;;  %v5575_v4 = vpop.f32.mrf.mxu0  ;;  %v2599_v17 = vpack.c.bf16 %v2583_v43, %v2550_v49  ;;  %v6102_v33 = vld [vmem:[#allocation23_spill] sm:$0xff] }
 0x29d   : > { %v2850_v2 = vpack.c.bf16 %v2787_v26, %v2818_v35 }
 0x29e   : > { %v5551_v44 = vadd.f32 %v2209_v6, %v2002_v54  ;;  %v3363_v6 = vpack.c.bf16 %v3345_v53, %v1720_v10  ;;  %v2788_v54 = vld [vmem:[#allocation2 + $0x30] sm:$0xff] }
 0x2a3   : > { %v1945_v42 = vpop.f32.mrf.mxu2 }
 0x2a4   : > { %v2211_v21 = vpop.f32.mrf.mxu3  ;;  %v2003_v38 = vadd.f32 %v1945_v42, %v5048_v27  ;;  %4075 = vmatmul.msk.bf16.gmra.mxu1 %vm638_vm2, %v2598_v56  ;;  %4157 = vmatmul.msk.bf16.gmra.mxu0 %vm638_vm2, %v3362_v31  ;;  %v2789_v56 = vld [vmem:[#allocation2 + $0x38] sm:$0xff]  ;;  %v5586_v10 = vpop.f32.mrf.mxu0 }
 0x2a5   : > { %v3055_v31 = vld [vmem:[#allocation2 + $0x39] sm:$0xff] }
 0x2a6   : > { %v5564_v47 = vadd.f32 %v2211_v21, %v2003_v38  ;;  %v6103_v21 = vld [vmem:[#allocation18_spill] sm:$0xff]  ;;  %v3085_v38 = vpack.c.bf16 %v3055_v31, %v3054_v13 }
 0x2a7   : > { %vm6104_vm15 = vnez %v6103_v21 }
 0x2a8   : > { %4089 = vmatmul.msk.bf16.vlgmr.msra.gmra.mxu2 %vm638_vm2, %v2850_v2  ;;  %v2820_v26 = vsel %vm6104_vm15, %v2788_v54, 0.0  ;;  %v6105_v2 = vld [vmem:[#allocation25_spill] sm:$0xff] }
 0x2a9   : > { %4117 = vmatmul.msk.bf16.vlgmr.msra.gmra.mxu3 %vm638_vm2, %v3084_v46  ;;  %v2851_v25 = vpack.c.bf16 %v2789_v56, %v2820_v26  ;;  %v6107_v56 = vld [vmem:[#allocation22_spill] sm:$0xff]  ;;  %v6109_v26 = vld [vmem:[#allocation29_spill] sm:$0xff] }
 0x2aa   : > { %vm6108_vm7 = vnez %v6107_v56 }
 0x2ab   : > { %v1948_v18 = vpop.f32.mrf.mxu2 }
 0x2ac   : > { %v2214_v27 = vpop.f32.mrf.mxu3  ;;  %v2004_v52 = vadd.f32 %v1948_v18, %v6101_v61  ;;  %v5593_v54 = vpop.f32.mrf.mxu0 }
 0x2ae   : > { %v5569_v40 = vadd.f32 %v2214_v27, %v2004_v52  ;;  %v3347_v27 = vsel %vm5505_vm13, %v2551_v55, 0.0  ;;  %v2790_v52 = vld [vmem:[#allocation2 + $0x40] sm:$0xff] }
 0x2af   : > { %v3364_v61 = vpack.c.bf16 %v3347_v27, %v2550_v49  ;;  %v2822_v31 = vsel %vm6108_vm7, %v2790_v52, 0.0  ;;  %v6110_v27 = vld [vmem:[#allocation31_spill] sm:$0xff]  ;;  %v6111_v52 = vld [vmem:[#allocation6_spill] sm:$0xff] }
 0x2b0   : > { %vm6112_vm8 = vnez %v6111_v52 }
 0x2b3   : > { %v1950_v30 = vpop.f32.mrf.mxu2 }
 0x2b4   : > { %v2216_v0 = vpop.f32.mrf.mxu3  ;;  %v2005_v42 = vadd.f32 %v1950_v30, %v6102_v33  ;;  %4076 = vmatmul.msk.bf16.gmra.mxu1 %vm638_vm2, %v2599_v17  ;;  %4158 = vmatmul.msk.bf16.gmra.mxu0 %vm638_vm2, %v3363_v6  ;;  %v2791_v17 = vld [vmem:[#allocation2 + $0x48] sm:$0xff]  ;;  %v6106_v30 = vld [vmem:[#allocation27_spill] sm:$0xff] }
 0x2b5   : > { %v3057_v6 = vld [vmem:[#allocation2 + $0x49] sm:$0xff]  ;;  %v3056_v33 = vld [vmem:[#allocation2 + $0x41] sm:$0xff]  ;;  %v2852_v51 = vpack.c.bf16 %v2791_v17, %v2822_v31  ;;  %v6113_v31 = vld [vmem:[#allocation32_spill] sm:$0xff] }
 0x2b6   : > { %v5582_v9 = vadd.f32 %v2216_v0, %v2005_v42  ;;  %v3086_v55 = vpack.c.bf16 %v3057_v6, %v3056_v33 }
 0x2b8   : > { %4090 = vmatmul.msk.bf16.gmra.mxu2 %vm638_vm2, %v2851_v25 }
 0x2b9   : > { %4118 = vmatmul.msk.bf16.gmra.mxu3 %vm638_vm2, %v3085_v38  ;;  %v2792_v38 = vld [vmem:[#allocation2 + $0x50] sm:$0xff] }
 0x2bb   : > { %v1953_v35 = vpop.f32.mrf.mxu2 }
 0x2bc   : > { %v2219_v22 = vpop.f32.mrf.mxu3  ;;  %v2006_v46 = vadd.f32 %v1953_v35, %v6105_v2  ;;  %v2793_v2 = vld [vmem:[#allocation2 + $0x58] sm:$0xff] }
 0x2be   : > { %v5589_v18 = vadd.f32 %v2219_v22, %v2006_v46  ;;  %v3059_v46 = vld [vmem:[#allocation2 + $0x59] sm:$0xff] }
 0x2c3   : > { %v1955_v43 = vpop.f32.mrf.mxu2 }
 0x2c4   : > { %v2221_v53 = vpop.f32.mrf.mxu3  ;;  %v2007_v0 = vadd.f32 %v1955_v43, %v6106_v30  ;;  %4159 = vmatmul.msk.bf16.gmra.mxu0 %vm638_vm2, %v3364_v61  ;;  %v2824_v43 = vsel %vm6112_vm8, %v2792_v38, 0.0  ;;  %v6114_v38 = vld [vmem:[#allocation34_spill] sm:$0xff] }
 0x2c5   : > { %v2853_v6 = vpack.c.bf16 %v2793_v2, %v2824_v43 }
 0x2c6   : > { %v5599_v42 = vadd.f32 %v2221_v53, %v2007_v0  ;;  %v3058_v53 = vld [vmem:[#allocation2 + $0x51] sm:$0xff] }
 0x2c7   : > { %v3087_v30 = vpack.c.bf16 %v3059_v46, %v3058_v53  ;;  %v3060_v46 = vld [vmem:[#allocation2 + $0x61] sm:$0xff] }
 0x2c8   : > { %4091 = vmatmul.msk.bf16.gmra.mxu2 %vm638_vm2, %v2852_v51 }
 0x2c9   : > { %4119 = vmatmul.msk.bf16.gmra.mxu3 %vm638_vm2, %v3086_v55  ;;  %v2794_v55 = vld [vmem:[#allocation2 + $0x60] sm:$0xff] }
 0x2ca   : > { %v2826_v2 = vsel %vm4612_vm5, %v2794_v55, 0.0  ;;  %v3063_v55 = vld [vmem:[#allocation2 + $0x79] sm:$0xff] }
 0x2cb   : > { %v1958_v49 = vpop.f32.mrf.mxu2 }
 0x2cc   : > { %v2224_v21 = vpop.f32.mrf.mxu3  ;;  %v2008_v13 = vadd.f32 %v1958_v49, %v6109_v26  ;;  %v2795_v26 = vld [vmem:[#allocation2 + $0x68] sm:$0xff] }
 0x2ce   : > { %v5604_v25 = vadd.f32 %v2224_v21, %v2008_v13  ;;  %v3061_v13 = vld [vmem:[#allocation2 + $0x69] sm:$0xff] }
 0x2cf   : > { %v3088_v52 = vpack.c.bf16 %v3061_v13, %v3060_v46  ;;  %v3062_v13 = vld [vmem:[#allocation2 + $0x71] sm:$0xff] }
 0x2d0   : > { %v3089_v46 = vpack.c.bf16 %v3063_v55, %v3062_v13  ;;  %v6121_v55 = vld [vmem:[#allocation9_spill] sm:$0xff]  ;;  %v6122_v13 = vld [vmem:[#allocation43_spill] sm:$0xff] }
 0x2d3   : > { %v1960_v35 = vpop.f32.mrf.mxu2 }
 0x2d4   : > { %v2226_v22 = vpop.f32.mrf.mxu3  ;;  %v2009_v61 = vadd.f32 %v1960_v35, %v6110_v27 }
 0x2d6   : > { %v5609_v17 = vadd.f32 %v2226_v22, %v2009_v61  ;;  %v2854_v61 = vpack.c.bf16 %v2795_v26, %v2826_v2 }
 0x2d8   : > { %4092 = vmatmul.msk.bf16.gmra.mxu2 %vm638_vm2, %v2853_v6  ;;  %v6116_v6 = vld [vmem:[#allocation36_spill] sm:$0xff] }
 0x2d9   : > { %4120 = vmatmul.msk.bf16.gmra.mxu3 %vm638_vm2, %v3087_v30 }
 0x2db   : > { %v1963_v0 = vpop.f32.mrf.mxu2 }
 0x2dc   : > { %v2229_v56 = vpop.f32.mrf.mxu3  ;;  %v2010_v33 = vadd.f32 %v1963_v0, %v6113_v31 }
 0x2de   : > { %v5614_v51 = vadd.f32 %v2229_v56, %v2010_v33  ;;  %v2796_v56 = vld [vmem:[#allocation2 + $0x70] sm:$0xff] }
 0x2df   : > { %v2828_v26 = vsel %vm4642_vm6, %v2796_v56, 0.0 }
 0x2e3   : > { %v1965_v49 = vpop.f32.mrf.mxu2 }
 0x2e4   : > { %v2231_v21 = vpop.f32.mrf.mxu3  ;;  %v2011_v35 = vadd.f32 %v1965_v49, %v6114_v38  ;;  %v2797_v49 = vld [vmem:[#allocation2 + $0x78] sm:$0xff]  ;;  %v6117_v38 = vld [vmem:[#allocation38_spill] sm:$0xff] }
 0x2e5   : > { %v2855_v2 = vpack.c.bf16 %v2797_v49, %v2828_v26 }
 0x2e6   : > { %v5619_v27 = vadd.f32 %v2231_v21, %v2011_v35  ;;  %v6120_v35 = vld [vmem:[#allocation41_spill] sm:$0xff] }
 0x2e8   : > { %4093 = vmatmul.msk.bf16.gmra.mxu2 %vm638_vm2, %v2854_v61 }
 0x2e9   : > { %4121 = vmatmul.msk.bf16.gmra.mxu3 %vm638_vm2, %v3088_v52 }
 0x2eb   : > { %v1968_v43 = vpop.f32.mrf.mxu2 }
 0x2ec   : > { %v2234_v53 = vpop.f32.mrf.mxu3  ;;  %v2012_v30 = vadd.f32 %v1968_v43, %v6116_v6  ;;  %v6119_v43 = vld [vmem:[#allocation40_spill] sm:$0xff] }
 0x2ee   : > { %v5624_v0 = vadd.f32 %v2234_v53, %v2012_v30 }
 0x2f3   : > { %v1970_v31 = vpop.f32.mrf.mxu2 }
 0x2f4   : > { %v2236_v33 = vpop.f32.mrf.mxu3  ;;  %v2013_v21 = vadd.f32 %v1970_v31, %v6117_v38  ;;  %v3065_v38 = vld [vmem:[#allocation2 + $0x89] sm:$0xff] }
 0x2f5   : > { %v3090_v49 = vpack.c.bf16 %v3065_v38, %v3064_v36  ;;  %v6123_v38 = vld [vmem:[#allocation10_spill] sm:$0xff] }
 0x2f6   : > { %v5629_v22 = vadd.f32 %v2236_v33, %v2013_v21 }
 0x2f8   : > { %4094 = vmatmul.msk.bf16.gmra.mxu2 %vm638_vm2, %v2855_v2 }
 0x2f9   : > { %4122 = vmatmul.msk.bf16.gmra.mxu3 %vm638_vm2, %v3089_v46 }
 0x2fb   : > { %v1973_v61 = vpop.f32.mrf.mxu2 }
 0x2fc   : > { %v2239_v52 = vpop.f32.mrf.mxu3  ;;  %v2014_v53 = vadd.f32 %v1973_v61, %v6119_v43  ;;  %v3067_v43 = vld [vmem:[#allocation2 + $0x99] sm:$0xff] }
 0x2fe   : > { %v5634_v6 = vadd.f32 %v2239_v52, %v2014_v53 }
 0x303   : > { %v1975_v30 = vpop.f32.mrf.mxu2 }
 0x304   : > { %v2241_v31 = vpop.f32.mrf.mxu3  ;;  %v2015_v56 = vadd.f32 %v1975_v30, %v6120_v35  ;;  %v3066_v30 = vld [vmem:[#allocation2 + $0x91] sm:$0xff] }
 0x305   : > { %v3091_v36 = vpack.c.bf16 %v3067_v43, %v3066_v30 }
 0x306   : > { %v5637_v33 = vadd.f32 %v2241_v31, %v2015_v56 }
 0x308   : > { %4095 = vmatmul.msk.bf16.gmra.mxu2 %vm638_vm2, %v6121_v55 }
 0x309   : > { %4123 = vmatmul.msk.bf16.gmra.mxu3 %vm638_vm2, %v3090_v49 }
 0x30b   : > { %v1978_v21 = vpop.f32.mrf.mxu2 }
 0x30c   : > { %v2244_v26 = vpop.f32.mrf.mxu3  ;;  %v2016_v2 = vadd.f32 %v1978_v21, %v6122_v13  ;;  %v3069_v13 = vld [vmem:[#allocation2 + $0xa9] sm:$0xff] }
 0x30e   : > { %v5643_v46 = vadd.f32 %v2244_v26, %v2016_v2  ;;  %v6124_v2 = vld [vmem:[#allocation47_spill] sm:$0xff] }
 0x313   : > { %v1980_v61 = vpop.f32.mrf.mxu2 }
 0x314   : > { %v2246_v52 = vpop.f32.mrf.mxu3  ;;  %v2017_v53 = vadd.f32 %v1980_v61, %v5284_v20  ;;  %v3068_v61 = vld [vmem:[#allocation2 + $0xa1] sm:$0xff] }
 0x315   : > { %v3092_v43 = vpack.c.bf16 %v3069_v13, %v3068_v61 }
 0x316   : > { %v5646_v31 = vadd.f32 %v2246_v52, %v2017_v53  ;;  %v6126_v53 = vld [vmem:[#allocation11_spill] sm:$0xff] }
 0x318   : > { %4096 = vmatmul.msk.bf16.gmra.mxu2 %vm638_vm2, %v6123_v38  ;;  %v5661_v38 = vpop.f32.mrf.mxu0 }
 0x319   : > { %4124 = vmatmul.msk.bf16.gmra.mxu3 %vm638_vm2, %v3091_v36 }
 0x31b   : > { %v1983_v35 = vpop.f32.mrf.mxu2 }
 0x31c   : > { %v2249_v56 = vpop.f32.mrf.mxu3  ;;  %v2018_v49 = vadd.f32 %v1983_v35, %v5297_v1 }
 0x31e   : > { %v5652_v55 = vadd.f32 %v2249_v56, %v2018_v49  ;;  %v5666_v56 = vld [vmem:[%s5975_s4] ss:$0 sm:$0xff] }
 0x323   : > { %v1985_v21 = vpop.f32.mrf.mxu2 }
 0x324   : > { %v2251_v26 = vpop.f32.mrf.mxu3  ;;  %v2019_v20 = vadd.f32 %v1985_v21, %v6124_v2  ;;  %v3071_v2 = vld [vmem:[#allocation2 + $0xb9] sm:$0xff] }
 0x326   : > { %v5655_v52 = vadd.f32 %v2251_v26, %v2019_v20 }
 0x328   : > { %6125 = vst [vmem:[#allocation21_spill] sm:$0xff] %v5655_v52  ;;  %4097 = vmatmul.msk.bf16.gmra.mxu2 %vm638_vm2, %v6126_v53  ;;  %v5674_v52 = vpop.f32.mrf.mxu0 }
 0x329   : > { %4125 = vmatmul.msk.bf16.gmra.mxu3 %vm638_vm2, %v3092_v43  ;;  %v3070_v43 = vld [vmem:[#allocation2 + $0xb1] sm:$0xff] }
 0x32b   : > { %v2940_v30 = vpop.f32.mrf.mxu2 }
 0x32c   : > { %v3174_v36 = vpop.f32.mrf.mxu3  ;;  %v3020_v1 = vadd.f32 %v2940_v30, %v5372_v8  ;;  %v3620_v8 = vld [vmem:[%s4616_s16] sm:$0xff] }
 0x32e   : > { %v3254_v35 = vadd.f32 %v3174_v36, %v3020_v1  ;;  %v3093_v36 = vpack.c.bf16 %v3071_v2, %v3070_v43  ;;  %v5672_v1 = vpop.f32.mrf.mxu1  ;;  %v3621_v2 = vld [vmem:[%s4616_s16 + $0x8] sm:$0xff] }
 0x330   : > { %v3520_v49 = vadd.f32 %v5535_v14, %v3254_v35  ;;  %v6127_v35 = vld [vmem:[#allocation13_spill] sm:$0xff]  ;;  %v5690_v43 = vpop.f32.mrf.mxu0 }
 0x332   : > { %v3556_v21 = vadd.f32 %v5666_v56, %v3520_v49 }
 0x333   : > { %v2942_v26 = vpop.f32.mrf.mxu2 }
 0x334   : > { %v3176_v13 = vpop.f32.mrf.mxu3  ;;  %v3588_v20 = vmax.f32 %v3556_v21, 0.0  ;;  %v3021_v61 = vadd.f32 %v2942_v26, %v5386_v60 }
 0x336   : > { %v3652_v53 = vadd.f32 %v3620_v8, %v3588_v20  ;;  %v3255_v30 = vadd.f32 %v3176_v13, %v3021_v61  ;;  %v5688_v8 = vpop.f32.mrf.mxu1 }
 0x338   : > { %3684 = vst.msk [vmem:[%s4616_s16] sm:$0xff] %vm638_vm2, %v3652_v53  ;;  %v3521_v14 = vadd.f32 %v5548_v32, %v3255_v30  ;;  %4098 = vmatmul.msk.bf16.gmra.mxu2 %vm638_vm2, %v6127_v35 }
 0x339   : > { %4126 = vmatmul.msk.bf16.gmra.mxu3 %vm638_vm2, %v3093_v36 }
 0x33a   : > { %v3557_v60 = vadd.f32 %v5666_v56, %v3521_v14  ;;  %v3073_v14 = vld [vmem:[#allocation2 + $0xc9] sm:$0xff] }
 0x33b   : > { %v2945_v49 = vpop.f32.mrf.mxu2 }
 0x33c   : > { %v3179_v21 = vpop.f32.mrf.mxu3  ;;  %v3589_v26 = vmax.f32 %v3557_v60, 0.0  ;;  %v3022_v13 = vadd.f32 %v2945_v49, %v5403_v15  ;;  %v3622_v60 = vld [vmem:[%s4616_s16 + $0x10] sm:$0xff]  ;;  %v3072_v49 = vld [vmem:[#allocation2 + $0xc1] sm:$0xff] }
 0x33e   : > { %v3653_v20 = vadd.f32 %v3621_v2, %v3589_v26  ;;  %v3256_v61 = vadd.f32 %v3179_v21, %v3022_v13  ;;  %v3094_v13 = vpack.c.bf16 %v3073_v14, %v3072_v49  ;;  %v6128_v2 = vld [vmem:[#allocation15_spill] sm:$0xff]  ;;  %v3623_v14 = vld [vmem:[%s4616_s16 + $0x18] sm:$0xff] }
 0x340   : > { %3685 = vst.msk [vmem:[%s4616_s16 + $0x8] sm:$0xff] %vm638_vm2, %v3653_v20  ;;  %v3522_v32 = vadd.f32 %v5562_v37, %v3256_v61 }
 0x342   : > { %v3558_v53 = vadd.f32 %v5666_v56, %v3522_v32  ;;  %v5702_v32 = vpop.f32.mrf.mxu1 }
 0x343   : > { %v2947_v30 = vpop.f32.mrf.mxu2 }
 0x344   : > { %v3181_v36 = vpop.f32.mrf.mxu3  ;;  %v3590_v35 = vmax.f32 %v3558_v53, 0.0  ;;  %v3023_v15 = vadd.f32 %v2947_v30, %v5420_v48  ;;  %v5704_v53 = vpop.f32.mrf.mxu0 }
 0x346   : > { %v3654_v21 = vadd.f32 %v3622_v60, %v3590_v35  ;;  %v3257_v26 = vadd.f32 %v3181_v36, %v3023_v15 }
 0x348   : > { %3686 = vst.msk [vmem:[%s4616_s16 + $0x10] sm:$0xff] %vm638_vm2, %v3654_v21  ;;  %v3523_v37 = vadd.f32 %v5575_v4, %v3257_v26  ;;  %4099 = vmatmul.msk.bf16.gmra.mxu2 %vm638_vm2, %v6128_v2  ;;  %v3074_v26 = vld [vmem:[#allocation2 + $0xd1] sm:$0xff] }
 0x349   : > { %4127 = vmatmul.msk.bf16.gmra.mxu3 %vm638_vm2, %v3094_v13  ;;  %v3075_v13 = vld [vmem:[#allocation2 + $0xd9] sm:$0xff] }
 0x34a   : > { %v3559_v20 = vadd.f32 %v5666_v56, %v3523_v37 }
 0x34b   : > { %v2950_v61 = vpop.f32.mrf.mxu2 }
 0x34c   : > { %v3184_v48 = vpop.f32.mrf.mxu3  ;;  %v3591_v30 = vmax.f32 %v3559_v20, 0.0  ;;  %v3024_v36 = vadd.f32 %v2950_v61, %v5438_v59  ;;  %v3624_v20 = vld [vmem:[%s4616_s16 + $0x20] sm:$0xff]  ;;  %v5714_v59 = vpop.f32.mrf.mxu1 }
 0x34d   : > { %v5716_v61 = vpop.f32.mrf.mxu0 }
 0x34e   : > { %v3655_v35 = vadd.f32 %v3623_v14, %v3591_v30  ;;  %v3258_v4 = vadd.f32 %v3184_v48, %v3024_v36  ;;  %v3095_v36 = vpack.c.bf16 %v3075_v13, %v3074_v26  ;;  %v6129_v14 = vld [vmem:[#allocation16_spill] sm:$0xff] }
 0x350   : > { %3687 = vst.msk [vmem:[%s4616_s16 + $0x18] sm:$0xff] %vm638_vm2, %v3655_v35  ;;  %v3524_v15 = vadd.f32 %v5586_v10, %v3258_v4 }
 0x352   : > { %v3560_v60 = vadd.f32 %v5666_v56, %v3524_v15 }
 0x353   : > { %v2952_v49 = vpop.f32.mrf.mxu2 }
 0x354   : > { %v3186_v21 = vpop.f32.mrf.mxu3  ;;  %v3592_v37 = vmax.f32 %v3560_v60, 0.0  ;;  %v3025_v2 = vadd.f32 %v2952_v49, %v5456_v62  ;;  %v3625_v49 = vld [vmem:[%s4616_s16 + $0x28] sm:$0xff]  ;;  %v5727_v13 = vpop.f32.mrf.mxu1 }
 0x356   : > { %v3656_v48 = vadd.f32 %v3624_v20, %v3592_v37  ;;  %v3259_v30 = vadd.f32 %v3186_v21, %v3025_v2 }
 0x358   : > { %3688 = vst.msk [vmem:[%s4616_s16 + $0x20] sm:$0xff] %vm638_vm2, %v3656_v48  ;;  %v3525_v10 = vadd.f32 %v5593_v54, %v3259_v30  ;;  %4100 = vmatmul.msk.bf16.gmra.mxu2 %vm638_vm2, %v6129_v14  ;;  %v5729_v54 = vpop.f32.mrf.mxu0  ;;  %v3076_v30 = vld [vmem:[#allocation2 + $0xe1] sm:$0xff]  ;;  %v3626_v14 = vld [vmem:[%s4616_s16 + $0x30] sm:$0xff] }
 0x359   : > { %4128 = vmatmul.msk.bf16.gmra.mxu3 %vm638_vm2, %v3095_v36  ;;  %v3077_v36 = vld [vmem:[#allocation2 + $0xe9] sm:$0xff] }
 0x35a   : > { %v3561_v62 = vadd.f32 %v5666_v56, %v3525_v10 }
 0x35b   : > { %v2955_v35 = vpop.f32.mrf.mxu2 }
 0x35c   : > { %v3189_v4 = vpop.f32.mrf.mxu3  ;;  %v3593_v15 = vmax.f32 %v3561_v62, 0.0  ;;  %v3026_v60 = vadd.f32 %v2955_v35, %v5474_v23 }
 0x35e   : > { %v3657_v21 = vadd.f32 %v3625_v49, %v3593_v15  ;;  %v3260_v26 = vadd.f32 %v3189_v4, %v3026_v60  ;;  %v3096_v4 = vpack.c.bf16 %v3077_v36, %v3076_v30  ;;  %v6130_v15 = vld [vmem:[#allocation19_spill] sm:$0xff]  ;;  %v6131_v49 = vld [vmem:[#allocation12_spill] sm:$0xff]  ;;  %v3627_v30 = vld [vmem:[%s4616_s16 + $0x38] sm:$0xff] }
 0x35f   : > { %v2496_v60 = vadd.f32 %v6130_v15, %v5459_v19  ;;  %v3078_v15 = vld [vmem:[#allocation2 + $0xf1] sm:$0xff] }
 0x360   : > { %3689 = vst.msk [vmem:[%s4616_s16 + $0x28] sm:$0xff] %vm638_vm2, %v3657_v21  ;;  %v3526_v37 = vadd.f32 %v5661_v38, %v3260_v26  ;;  %v5746_v21 = vpop.f32.mrf.mxu1  ;;  %v5748_v26 = vpop.f32.mrf.mxu0 }
 0x362   : > { %v3562_v2 = vadd.f32 %v5666_v56, %v3526_v37 }
 0x363   : > { %v2957_v20 = vpop.f32.mrf.mxu2 }
 0x364   : > { %v3191_v48 = vpop.f32.mrf.mxu3  ;;  %v3594_v10 = vmax.f32 %v3562_v2, 0.0  ;;  %v3027_v23 = vadd.f32 %v2957_v20, %v5492_v50  ;;  %v2762_v50 = vadd.f32 %v5672_v1, %v2496_v60  ;;  %v3079_v60 = vld [vmem:[#allocation2 + $0xf9] sm:$0xff] }
 0x366   : > { %v3658_v62 = vadd.f32 %v3626_v14, %v3594_v10  ;;  %v3261_v35 = vadd.f32 %v3191_v48, %v3027_v23  ;;  %v6132_v10 = vld [vmem:[#allocation20_spill] sm:$0xff] }
 0x367   : > { %v2497_v23 = vadd.f32 %v6132_v10, %v5486_v24  ;;  %v3628_v24 = vld [vmem:[%s4616_s16 + $0x40] sm:$0xff] }
 0x368   : > { %3690 = vst.msk [vmem:[%s4616_s16 + $0x30] sm:$0xff] %vm638_vm2, %v3658_v62  ;;  %v3527_v38 = vadd.f32 %v5674_v52, %v3261_v35  ;;  %4101 = vmatmul.msk.bf16.gmra.mxu2 %vm638_vm2, %v6131_v49  ;;  %v5761_v49 = vpop.f32.mrf.mxu0 }
 0x369   : > { %4129 = vmatmul.msk.bf16.gmra.mxu3 %vm638_vm2, %v3096_v4  ;;  %v2763_v14 = vadd.f32 %v5688_v8, %v2497_v23 }
 0x36a   : > { %v3563_v37 = vadd.f32 %v5666_v56, %v3527_v38  ;;  %v5759_v38 = vpop.f32.mrf.mxu1 }
 0x36b   : > { %v2960_v2 = vpop.f32.mrf.mxu2 }
 0x36c   : > { %v3194_v19 = vpop.f32.mrf.mxu3  ;;  %v3595_v20 = vmax.f32 %v3563_v37, 0.0  ;;  %v3028_v48 = vadd.f32 %v2960_v2, %v2762_v50 }
 0x36e   : > { %v3659_v52 = vadd.f32 %v3627_v30, %v3595_v20  ;;  %v3262_v36 = vadd.f32 %v3194_v19, %v3028_v48  ;;  %v6133_v20 = vld [vmem:[#allocation24_spill] sm:$0xff]  ;;  %v6134_v30 = vld [vmem:[#allocation14_spill] sm:$0xff] }
 0x36f   : > { %v2498_v8 = vadd.f32 %v6133_v20, %v5497_v16  ;;  %v3316_v16 = vld [vmem:[#allocation2 + $0x112] sm:$0xff] }
 0x370   : > { %3691 = vst.msk [vmem:[%s4616_s16 + $0x38] sm:$0xff] %vm638_vm2, %v3659_v52  ;;  %v3528_v1 = vadd.f32 %v5690_v43, %v3262_v36  ;;  %v3097_v43 = vpack.c.bf16 %v3079_v60, %v3078_v15  ;;  %v5779_v60 = vpop.f32.mrf.mxu0 }
 0x371   : > { %v2764_v52 = vadd.f32 %v5702_v32, %v2498_v8  ;;  %v3080_v8 = vld [vmem:[#allocation2 + $0x101] sm:$0xff] }
 0x372   : > { %v3564_v62 = vadd.f32 %v5666_v56, %v3528_v1  ;;  %v3317_v1 = vld [vmem:[#allocation2 + $0x11a] sm:$0xff]  ;;  %v5777_v15 = vpop.f32.mrf.mxu1 }
 0x373   : > { %v2962_v35 = vpop.f32.mrf.mxu2 }
 0x374   : > { %v3196_v4 = vpop.f32.mrf.mxu3  ;;  %v3596_v50 = vmax.f32 %v3564_v62, 0.0  ;;  %v3029_v37 = vadd.f32 %v2962_v35, %v2763_v14  ;;  %v3349_v35 = vsel %vm5531_vm0, %v3317_v1, 0.0  ;;  %v6136_v1 = vld [vmem:[#allocation28_spill] sm:$0xff] }
 0x376   : > { %v3660_v2 = vadd.f32 %v3628_v24, %v3596_v50  ;;  %v3263_v19 = vadd.f32 %v3196_v4, %v3029_v37  ;;  %v3365_v4 = vpack.c.bf16 %v3349_v35, %v3316_v16  ;;  %v6135_v37 = vld [vmem:[#allocation26_spill] sm:$0xff]  ;;  %v6137_v16 = vld [vmem:[#allocation17_spill] sm:$0xff] }
 0x377   : > { %v2499_v24 = vadd.f32 %v6135_v37, %v5516_v3  ;;  %v3631_v37 = vld [vmem:[%s4616_s16 + $0x58] sm:$0xff] }
 0x378   : > { %3692 = vst.msk [vmem:[%s4616_s16 + $0x40] sm:$0xff] %vm638_vm2, %v3660_v2  ;;  %v3529_v48 = vadd.f32 %v5704_v53, %v3263_v19  ;;  %4102 = vmatmul.msk.bf16.gmra.mxu2 %vm638_vm2, %v6134_v30  ;;  %v3629_v53 = vld [vmem:[%s4616_s16 + $0x48] sm:$0xff]  ;;  %4160 = vmatmul.msk.bf16.gmra.mxu0 %vm638_vm2, %v3365_v4 }
 0x379   : > { %4130 = vmatmul.msk.bf16.gmra.mxu3 %vm638_vm2, %v3097_v43  ;;  %v2765_v34 = vadd.f32 %v5714_v59, %v2499_v24  ;;  %v5794_v59 = vpop.f32.mrf.mxu0 }
 0x37a   : > { %v3565_v36 = vadd.f32 %v5666_v56, %v3529_v48  ;;  %v3081_v48 = vld [vmem:[#allocation2 + $0x109] sm:$0xff] }
 0x37b   : > { %v2965_v10 = vpop.f32.mrf.mxu2  ;;  %v3098_v3 = vpack.c.bf16 %v3081_v48, %v3080_v8 }
 0x37c   : > { %v3199_v23 = vpop.f32.mrf.mxu3  ;;  %v3597_v14 = vmax.f32 %v3565_v36, 0.0  ;;  %v3030_v62 = vadd.f32 %v2965_v10, %v2764_v52  ;;  %v3630_v36 = vld [vmem:[%s4616_s16 + $0x50] sm:$0xff] }
 0x37e   : > { %v3661_v32 = vadd.f32 %v3629_v53, %v3597_v14  ;;  %v3264_v50 = vadd.f32 %v3199_v23, %v3030_v62  ;;  %v2500_v14 = vadd.f32 %v6136_v1, %v5524_v63 }
 0x380   : > { %3693 = vst.msk [vmem:[%s4616_s16 + $0x48] sm:$0xff] %vm638_vm2, %v3661_v32  ;;  %v3530_v2 = vadd.f32 %v5716_v61, %v3264_v50  ;;  %v5792_v61 = vpop.f32.mrf.mxu1  ;;  %v2766_v35 = vadd.f32 %v5727_v13, %v2500_v14  ;;  %v3083_v13 = vld [vmem:[#allocation2 + $0x119] sm:$0xff] }
 0x382   : > { %v3566_v19 = vadd.f32 %v5666_v56, %v3530_v2 }
 0x383   : > { %v2967_v43 = vpop.f32.mrf.mxu2 }
 0x384   : > { %v3201_v20 = vpop.f32.mrf.mxu3  ;;  %v3598_v30 = vmax.f32 %v3566_v19, 0.0  ;;  %v3031_v52 = vadd.f32 %v2967_v43, %v2765_v34  ;;  %v6138_v34 = vld [vmem:[#allocation30_spill] sm:$0xff]  ;;  %v2816_v43 = vld [vmem:[#allocation2 + $0x110] sm:$0xff] }
 0x385   : > { %v2501_v19 = vadd.f32 %v6138_v34, %v5544_v41  ;;  %v2848_v41 = vsel %vm6099_vm3, %v2816_v43, 0.0  ;;  %v3633_v34 = vld [vmem:[%s4616_s16 + $0x68] sm:$0xff] }
 0x386   : > { %v3662_v10 = vadd.f32 %v3630_v36, %v3598_v30  ;;  %v3265_v23 = vadd.f32 %v3201_v20, %v3031_v52  ;;  %v3082_v20 = vld [vmem:[#allocation2 + $0x111] sm:$0xff]  ;;  %v3480_v30 = vpop.f32.mrf.mxu0 }
 0x387   : > { %v2767_v8 = vadd.f32 %v5746_v21, %v2501_v19  ;;  %v3099_v14 = vpack.c.bf16 %v3083_v13, %v3082_v20  ;;  %v6139_v21 = vld [vmem:[#allocation33_spill] sm:$0xff] }
 0x388   : > { %3694 = vst.msk [vmem:[%s4616_s16 + $0x50] sm:$0xff] %vm638_vm2, %v3662_v10  ;;  %v3531_v62 = vadd.f32 %v5729_v54, %v3265_v23  ;;  %4103 = vmatmul.msk.bf16.gmra.mxu2 %vm638_vm2, %v6137_v16  ;;  %v2716_v48 = vpop.f32.mrf.mxu1  ;;  %v2817_v23 = vld [vmem:[#allocation2 + $0x118] sm:$0xff] }
 0x389   : > { %4131 = vmatmul.msk.bf16.gmra.mxu3 %vm638_vm2, %v3098_v3 }
 0x38a   : > { %v3567_v53 = vadd.f32 %v5666_v56, %v3531_v62 }
 0x38b   : > { %v2970_v4 = vpop.f32.mrf.mxu2 }
 0x38c   : > { %v3204_v63 = vpop.f32.mrf.mxu3  ;;  %v3599_v32 = vmax.f32 %v3567_v53, 0.0  ;;  %v3032_v50 = vadd.f32 %v2970_v4, %v2766_v35  ;;  %v2865_v35 = vpack.c.bf16 %v2817_v23, %v2848_v41  ;;  %v2502_v53 = vadd.f32 %v6139_v21, %v5551_v44  ;;  %v3634_v23 = vld [vmem:[%s4616_s16 + $0x70] sm:$0xff] }
 0x38e   : > { %v3663_v24 = vadd.f32 %v3631_v37, %v3599_v32  ;;  %v3266_v2 = vadd.f32 %v3204_v63, %v3032_v50  ;;  %v2768_v58 = vadd.f32 %v5759_v38, %v2502_v53 }
 0x390   : > { %3695 = vst.msk [vmem:[%s4616_s16 + $0x58] sm:$0xff] %vm638_vm2, %v3663_v24  ;;  %v3532_v54 = vadd.f32 %v5748_v26, %v3266_v2  ;;  %v3632_v26 = vld [vmem:[%s4616_s16 + $0x60] sm:$0xff]  ;;  %v2719_v37 = vpop.f32.mrf.mxu1  ;;  %v3482_v24 = vpop.f32.mrf.mxu0 }
 0x392   : > { %v3568_v52 = vadd.f32 %v5666_v56, %v3532_v54 }
 0x393   : > { %v2972_v36 = vpop.f32.mrf.mxu2 }
 0x394   : > { %v3206_v10 = vpop.f32.mrf.mxu3  ;;  %v3600_v3 = vmax.f32 %v3568_v52, 0.0  ;;  %v3033_v1 = vadd.f32 %v2972_v36, %v2767_v8 }
 0x396   : > { %v3664_v62 = vadd.f32 %v3632_v26, %v3600_v3  ;;  %v3267_v16 = vadd.f32 %v3206_v10, %v3033_v1 }
 0x398   : > { %3696 = vst.msk [vmem:[%s4616_s16 + $0x60] sm:$0xff] %vm638_vm2, %v3664_v62  ;;  %v3533_v4 = vadd.f32 %v5761_v49, %v3267_v16  ;;  %4104 = vmatmul.msk.bf16.gmra.mxu2 %vm638_vm2, %v2865_v35  ;;  %v6140_v49 = vld [vmem:[#allocation35_spill] sm:$0xff]  ;;  %v2721_v41 = vpop.f32.mrf.mxu1  ;;  %v3485_v3 = vpop.f32.mrf.mxu0 }
 0x399   : > { %4132 = vmatmul.msk.bf16.gmra.mxu3 %vm638_vm2, %v3099_v14  ;;  %v2503_v43 = vadd.f32 %v6140_v49, %v5564_v47  ;;  %v6141_v47 = vld [vmem:[#allocation37_spill] sm:$0xff] }
 0x39a   : > { %v3569_v63 = vadd.f32 %v5666_v56, %v3533_v4  ;;  %v2504_v26 = vadd.f32 %v6141_v47, %v5569_v40  ;;  %v3635_v4 = vld [vmem:[%s4616_s16 + $0x78] sm:$0xff]  ;;  %v3637_v47 = vld [vmem:[%s4616_s16 + $0x88] sm:$0xff] }
 0x39b   : > { %v2975_v32 = vpop.f32.mrf.mxu2  ;;  %v2769_v20 = vadd.f32 %v5777_v15, %v2503_v43  ;;  %v3636_v43 = vld [vmem:[%s4616_s16 + $0x80] sm:$0xff] }
 0x39c   : > { %v3209_v50 = vpop.f32.mrf.mxu3  ;;  %v3601_v2 = vmax.f32 %v3569_v63, 0.0  ;;  %v3034_v44 = vadd.f32 %v2975_v32, %v2768_v58  ;;  %v6142_v32 = vld [vmem:[#allocation39_spill] sm:$0xff] }
 0x39d   : > { %v2505_v40 = vadd.f32 %v6142_v32, %v5582_v9 }
 0x39e   : > { %v3665_v19 = vadd.f32 %v3633_v34, %v3601_v2  ;;  %v3268_v54 = vadd.f32 %v3209_v50, %v3034_v44 }
 0x3a0   : > { %3697 = vst.msk [vmem:[%s4616_s16 + $0x68] sm:$0xff] %vm638_vm2, %v3665_v19  ;;  %v3534_v38 = vadd.f32 %v5779_v60, %v3268_v54  ;;  %v2770_v60 = vadd.f32 %v5792_v61, %v2504_v26  ;;  %v2724_v50 = vpop.f32.mrf.mxu1  ;;  %v3487_v2 = vpop.f32.mrf.mxu0  ;;  %v2771_v61 = vadd.f32 %v2716_v48, %v2505_v40 }
 0x3a2   : > { %v3570_v13 = vadd.f32 %v5666_v56, %v3534_v38 }
 0x3a3   : > { %v2977_v8 = vpop.f32.mrf.mxu2 }
 0x3a4   : > { %v3211_v52 = vpop.f32.mrf.mxu3  ;;  %v3602_v36 = vmax.f32 %v3570_v13, 0.0  ;;  %v3035_v10 = vadd.f32 %v2977_v8, %v2769_v20  ;;  %v6143_v13 = vld [vmem:[#allocation42_spill] sm:$0xff] }
 0x3a5   : > { %v2506_v9 = vadd.f32 %v6143_v13, %v5589_v18 }
 0x3a6   : > { %v3666_v1 = vadd.f32 %v3634_v23, %v3602_v36  ;;  %v3269_v14 = vadd.f32 %v3211_v52, %v3035_v10 }
 0x3a7   : > { %v2772_v52 = vadd.f32 %v2719_v37, %v2506_v9  ;;  %v6146_v9 = vld [vmem:[#allocation46_spill] sm:$0xff] }
 0x3a8   : > { %3698 = vst.msk [vmem:[%s4616_s16 + $0x70] sm:$0xff] %vm638_vm2, %v3666_v1  ;;  %v3535_v15 = vadd.f32 %v5794_v59, %v3269_v14  ;;  %v3490_v48 = vpop.f32.mrf.mxu0 }
 0x3aa   : > { %v3571_v62 = vadd.f32 %v5666_v56, %v3535_v15 }
 0x3ab   : > { %v2980_v16 = vpop.f32.mrf.mxu2 }
 0x3ac   : > { %v3214_v35 = vpop.f32.mrf.mxu3  ;;  %v3603_v21 = vmax.f32 %v3571_v62, 0.0  ;;  %v3036_v53 = vadd.f32 %v2980_v16, %v2770_v60  ;;  %v6144_v60 = vld [vmem:[#allocation44_spill] sm:$0xff] }
 0x3ad   : > { %v2507_v18 = vadd.f32 %v6144_v60, %v5599_v42 }
 0x3ae   : > { %v3667_v58 = vadd.f32 %v3635_v4, %v3603_v21  ;;  %v3270_v63 = vadd.f32 %v3214_v35, %v3036_v53 }
 0x3af   : > { %v2773_v37 = vadd.f32 %v2721_v41, %v2507_v18 }
 0x3b0   : > { %3699 = vst.msk [vmem:[%s4616_s16 + $0x78] sm:$0xff] %vm638_vm2, %v3667_v58  ;;  %v3536_v59 = vadd.f32 %v3480_v30, %v3270_v63  ;;  %v2726_v30 = vpop.f32.mrf.mxu1  ;;  %v3492_v53 = vpop.f32.mrf.mxu0  ;;  %v3638_v63 = vld [vmem:[%s4616_s16 + $0x90] sm:$0xff] }
 0x3b2   : > { %v3572_v44 = vadd.f32 %v5666_v56, %v3536_v59  ;;  %v6145_v59 = vld [vmem:[#allocation45_spill] sm:$0xff] }
 0x3b3   : > { %v2982_v34 = vpop.f32.mrf.mxu2  ;;  %v2508_v42 = vadd.f32 %v6145_v59, %v5604_v25  ;;  %v2509_v25 = vadd.f32 %v6146_v9, %v5609_v17 }
 0x3b4   : > { %v3216_v19 = vpop.f32.mrf.mxu3  ;;  %v3604_v54 = vmax.f32 %v3572_v44, 0.0  ;;  %v3037_v49 = vadd.f32 %v2982_v34, %v2771_v61 }
 0x3b5   : > { %v2774_v41 = vadd.f32 %v2724_v50, %v2508_v42  ;;  %v2775_v50 = vadd.f32 %v2726_v30, %v2509_v25 }
 0x3b6   : > { %v3668_v38 = vadd.f32 %v3636_v43, %v3604_v54  ;;  %v3271_v20 = vadd.f32 %v3216_v19, %v3037_v49  ;;  %v3639_v49 = vld [vmem:[%s4616_s16 + $0x98] sm:$0xff] }
 0x3b8   : > { %3700 = vst.msk [vmem:[%s4616_s16 + $0x80] sm:$0xff] %vm638_vm2, %v3668_v38  ;;  %v3537_v8 = vadd.f32 %v3482_v24, %v3271_v20  ;;  %v2729_v21 = vpop.f32.mrf.mxu1  ;;  %v3495_v38 = vpop.f32.mrf.mxu0 }
 0x3ba   : > { %v3573_v36 = vadd.f32 %v5666_v56, %v3537_v8 }
 0x3bb   : > { %v2985_v10 = vpop.f32.mrf.mxu2 }
 0x3bc   : > { %v3219_v23 = vpop.f32.mrf.mxu3  ;;  %v3605_v1 = vmax.f32 %v3573_v36, 0.0  ;;  %v3038_v14 = vadd.f32 %v2985_v10, %v2772_v52 }
 0x3be   : > { %v3669_v26 = vadd.f32 %v3637_v47, %v3605_v1  ;;  %v3272_v15 = vadd.f32 %v3219_v23, %v3038_v14  ;;  %v3640_v1 = vld [vmem:[%s4616_s16 + $0xa0] sm:$0xff] }
 0x3c0   : > { %3701 = vst.msk [vmem:[%s4616_s16 + $0x88] sm:$0xff] %vm638_vm2, %v3669_v26  ;;  %v3538_v24 = vadd.f32 %v3485_v3, %v3272_v15  ;;  %v2731_v43 = vpop.f32.mrf.mxu1  ;;  %v2510_v26 = vadd.f32 %v5328_v11, %v5614_v51  ;;  %v3497_v17 = vpop.f32.mrf.mxu0  ;;  %v2511_v11 = vadd.f32 %v5351_v12, %v5619_v27  ;;  %v2512_v12 = vadd.f32 %v5370_v39, %v5624_v0 }
 0x3c1   : > { %v2513_v39 = vadd.f32 %v5388_v29, %v5629_v22  ;;  %v2514_v29 = vadd.f32 %v5413_v7, %v5634_v6 }
 0x3c2   : > { %v3574_v62 = vadd.f32 %v5666_v56, %v3538_v24  ;;  %v2776_v30 = vadd.f32 %v2729_v21, %v2510_v26 }
 0x3c3   : > { %v2987_v16 = vpop.f32.mrf.mxu2 }
 0x3c4   : > { %v3221_v35 = vpop.f32.mrf.mxu3  ;;  %v3606_v4 = vmax.f32 %v3574_v62, 0.0  ;;  %v3039_v58 = vadd.f32 %v2987_v16, %v2773_v37  ;;  %v3641_v16 = vld [vmem:[%s4616_s16 + $0xa8] sm:$0xff] }
 0x3c6   : > { %v3670_v32 = vadd.f32 %v3638_v63, %v3606_v4  ;;  %v3273_v40 = vadd.f32 %v3221_v35, %v3039_v58  ;;  %v2777_v58 = vadd.f32 %v2731_v43, %v2511_v11 }
 0x3c8   : > { %3702 = vst.msk [vmem:[%s4616_s16 + $0x90] sm:$0xff] %vm638_vm2, %v3670_v32  ;;  %v3539_v3 = vadd.f32 %v3487_v2, %v3273_v40  ;;  %v2734_v15 = vpop.f32.mrf.mxu1  ;;  %v3500_v21 = vpop.f32.mrf.mxu0 }
 0x3ca   : > { %v3575_v61 = vadd.f32 %v5666_v56, %v3539_v3  ;;  %v3642_v3 = vld [vmem:[%s4616_s16 + $0xb0] sm:$0xff] }
 0x3cb   : > { %v2990_v44 = vpop.f32.mrf.mxu2 }
 0x3cc   : > { %v3224_v34 = vpop.f32.mrf.mxu3  ;;  %v3607_v19 = vmax.f32 %v3575_v61, 0.0  ;;  %v3040_v54 = vadd.f32 %v2990_v44, %v2774_v41  ;;  %v2778_v44 = vadd.f32 %v2734_v15, %v2512_v12 }
 0x3ce   : > { %v3671_v20 = vadd.f32 %v3639_v49, %v3607_v19  ;;  %v3274_v13 = vadd.f32 %v3224_v34, %v3040_v54 }
 0x3d0   : > { %3703 = vst.msk [vmem:[%s4616_s16 + $0x98] sm:$0xff] %vm638_vm2, %v3671_v20  ;;  %v3540_v2 = vadd.f32 %v3490_v48, %v3274_v13  ;;  %v3502_v43 = vpop.f32.mrf.mxu0  ;;  %v3643_v13 = vld [vmem:[%s4616_s16 + $0xb8] sm:$0xff] }
 0x3d2   : > { %v3576_v8 = vadd.f32 %v5666_v56, %v3540_v2 }
 0x3d3   : > { %v2992_v52 = vpop.f32.mrf.mxu2 }
 0x3d4   : > { %v3226_v36 = vpop.f32.mrf.mxu3  ;;  %v3608_v10 = vmax.f32 %v3576_v8, 0.0  ;;  %v3041_v23 = vadd.f32 %v2992_v52, %v2775_v50 }
 0x3d6   : > { %v3672_v14 = vadd.f32 %v3640_v1, %v3608_v10  ;;  %v3275_v47 = vadd.f32 %v3226_v36, %v3041_v23  ;;  %v3644_v23 = vld [vmem:[%s4616_s16 + $0xc0] sm:$0xff] }
 0x3d8   : > { %3704 = vst.msk [vmem:[%s4616_s16 + $0xa0] sm:$0xff] %vm638_vm2, %v3672_v14  ;;  %v3541_v48 = vadd.f32 %v3492_v53, %v3275_v47  ;;  %v2736_v53 = vpop.f32.mrf.mxu1  ;;  %v3505_v14 = vpop.f32.mrf.mxu0 }
 0x3d9   : > { %v2779_v2 = vadd.f32 %v2736_v53, %v2513_v39 }
 0x3da   : > { %v3577_v60 = vadd.f32 %v5666_v56, %v3541_v48 }
 0x3db   : > { %v2995_v18 = vpop.f32.mrf.mxu2 }
 0x3dc   : > { %v3229_v24 = vpop.f32.mrf.mxu3  ;;  %v3609_v37 = vmax.f32 %v3577_v60, 0.0  ;;  %v3042_v62 = vadd.f32 %v2995_v18, %v2776_v30 }
 0x3de   : > { %v3673_v35 = vadd.f32 %v3641_v16, %v3609_v37  ;;  %v3276_v4 = vadd.f32 %v3229_v24, %v3042_v62  ;;  %v3645_v24 = vld [vmem:[%s4616_s16 + $0xc8] sm:$0xff]  ;;  %v2515_v16 = vadd.f32 %v5429_v28, %v5637_v33  ;;  %v2516_v28 = vadd.f32 %v5454_v57, %v5643_v46 }
 0x3df   : > { %v2517_v57 = vadd.f32 %v5481_v45, %v5646_v31  ;;  %v2518_v45 = vadd.f32 %v5495_v5, %v5652_v55 }
 0x3e0   : > { %3705 = vst.msk [vmem:[%s4616_s16 + $0xa8] sm:$0xff] %vm638_vm2, %v3673_v35  ;;  %v3542_v51 = vadd.f32 %v3495_v38, %v3276_v4  ;;  %v2739_v49 = vpop.f32.mrf.mxu1  ;;  %v3507_v7 = vpop.f32.mrf.mxu0 }
 0x3e1   : > { %v2780_v15 = vadd.f32 %v2739_v49, %v2514_v29 }
 0x3e2   : > { %v3578_v63 = vadd.f32 %v5666_v56, %v3542_v51 }
 0x3e3   : > { %v2997_v32 = vpop.f32.mrf.mxu2 }
 0x3e4   : > { %v3231_v40 = vpop.f32.mrf.mxu3  ;;  %v3610_v59 = vmax.f32 %v3578_v63, 0.0  ;;  %v3043_v42 = vadd.f32 %v2997_v32, %v2777_v58  ;;  %v3646_v63 = vld [vmem:[%s4616_s16 + $0xd0] sm:$0xff] }
 0x3e6   : > { %v3674_v41 = vadd.f32 %v3642_v3, %v3610_v59  ;;  %v3277_v61 = vadd.f32 %v3231_v40, %v3043_v42 }
 0x3e8   : > { %3706 = vst.msk [vmem:[%s4616_s16 + $0xb0] sm:$0xff] %vm638_vm2, %v3674_v41  ;;  %v3543_v27 = vadd.f32 %v3497_v17, %v3277_v61  ;;  %v2741_v1 = vpop.f32.mrf.mxu1  ;;  %v3510_v3 = vpop.f32.mrf.mxu0 }
 0x3e9   : > { %v2781_v4 = vadd.f32 %v2741_v1, %v2515_v16 }
 0x3ea   : > { %v3579_v34 = vadd.f32 %v5666_v56, %v3543_v27 }
 0x3eb   : > { %v3000_v19 = vpop.f32.mrf.mxu2 }
 0x3ec   : > { %v3234_v54 = vpop.f32.mrf.mxu3  ;;  %v3611_v38 = vmax.f32 %v3579_v34, 0.0  ;;  %v3044_v20 = vadd.f32 %v3000_v19, %v2778_v44  ;;  %v3647_v34 = vld [vmem:[%s4616_s16 + $0xd8] sm:$0xff] }
 0x3ee   : > { %v3675_v9 = vadd.f32 %v3643_v13, %v3611_v38  ;;  %v3278_v25 = vadd.f32 %v3234_v54, %v3044_v20 }
 0x3f0   : > { %3707 = vst.msk [vmem:[%s4616_s16 + $0xb8] sm:$0xff] %vm638_vm2, %v3675_v9  ;;  %v3544_v0 = vadd.f32 %v3500_v21, %v3278_v25  ;;  %v2744_v35 = vpop.f32.mrf.mxu1  ;;  %v3512_v39 = vpop.f32.mrf.mxu0 }
 0x3f1   : > { %v2782_v59 = vadd.f32 %v2744_v35, %v2516_v28 }
 0x3f2   : > { %v3580_v50 = vadd.f32 %v5666_v56, %v3544_v0  ;;  %v3648_v0 = vld [vmem:[%s4616_s16 + $0xe0] sm:$0xff] }
 0x3f3   : > { %v3002_v8 = vpop.f32.mrf.mxu2 }
 0x3f4   : > { %v3236_v52 = vpop.f32.mrf.mxu3  ;;  %v3612_v36 = vmax.f32 %v3580_v50, 0.0  ;;  %v3045_v10 = vadd.f32 %v3002_v8, %v2779_v2 }
 0x3f6   : > { %v3676_v47 = vadd.f32 %v3644_v23, %v3612_v36  ;;  %v3279_v26 = vadd.f32 %v3236_v52, %v3045_v10 }
 0x3f8   : > { %3708 = vst.msk [vmem:[%s4616_s16 + $0xc0] sm:$0xff] %vm638_vm2, %v3676_v47  ;;  %v3545_v22 = vadd.f32 %v3502_v43, %v3279_v26  ;;  %v2746_v42 = vpop.f32.mrf.mxu1  ;;  %v3515_v47 = vpop.f32.mrf.mxu0 }
 0x3f9   : > { %v2783_v49 = vadd.f32 %v2746_v42, %v2517_v57 }
 0x3fa   : > { %v3581_v17 = vadd.f32 %v5666_v56, %v3545_v22 }
 0x3fb   : > { %v3005_v48 = vpop.f32.mrf.mxu2 }
 0x3fc   : > { %v3239_v30 = vpop.f32.mrf.mxu3  ;;  %v3613_v60 = vmax.f32 %v3581_v17, 0.0  ;;  %v3046_v18 = vadd.f32 %v3005_v48, %v2780_v15  ;;  %v6147_v15 = vld [vmem:[#allocation21_spill] sm:$0xff]  ;;  %v6148_v17 = vld [vmem:[#allocation48_spill] sm:$0xff] }
 0x3fd   : > { %v2519_v5 = vadd.f32 %v6148_v17, %v6147_v15 }
 0x3fe   : > { %v3677_v37 = vadd.f32 %v3645_v24, %v3613_v60  ;;  %v3280_v62 = vadd.f32 %v3239_v30, %v3046_v18 }
 0x400   : > { %3709 = vst.msk [vmem:[%s4616_s16 + $0xc8] sm:$0xff] %vm638_vm2, %v3677_v37  ;;  %v3546_v6 = vadd.f32 %v3505_v14, %v3280_v62  ;;  %v2749_v25 = vpop.f32.mrf.mxu1  ;;  %v3649_v14 = vld [vmem:[%s4616_s16 + $0xe8] sm:$0xff]  ;;  %v3650_v37 = vld [vmem:[%s4616_s16 + $0xf0] sm:$0xff] }
 0x401   : > { %v2784_v8 = vadd.f32 %v2749_v25, %v2518_v45 }
 0x402   : > { %v3582_v11 = vadd.f32 %v5666_v56, %v3546_v6 }
 0x403   : > { %v3007_v51 = vpop.f32.mrf.mxu2 }
 0x404   : > { %v3241_v58 = vpop.f32.mrf.mxu3  ;;  %v3614_v53 = vmax.f32 %v3582_v11, 0.0  ;;  %v3047_v21 = vadd.f32 %v3007_v51, %v2781_v4  ;;  %v3651_v51 = vld [vmem:[%s4616_s16 + $0xf8] sm:$0xff] }
 0x406   : > { %v3678_v32 = vadd.f32 %v3646_v63, %v3614_v53  ;;  %v3281_v40 = vadd.f32 %v3241_v58, %v3047_v21 }
 0x408   : > { %3710 = vst.msk [vmem:[%s4616_s16 + $0xd0] sm:$0xff] %vm638_vm2, %v3678_v32  ;;  %v3547_v33 = vadd.f32 %v3507_v7, %v3281_v40  ;;  %v2751_v22 = vpop.f32.mrf.mxu1  ;;  %v3517_v7 = vpop.f32.mrf.mxu0 }
 0x409   : > { %v2785_v48 = vadd.f32 %v2751_v22, %v2519_v5 }
 0x40a   : > { %v3583_v41 = vadd.f32 %v5666_v56, %v3547_v33 }
 0x40b   : > { %v3010_v61 = vpop.f32.mrf.mxu2 }
 0x40c   : > { %v3244_v12 = vpop.f32.mrf.mxu3  ;;  %v3615_v27 = vmax.f32 %v3583_v41, 0.0  ;;  %v3048_v44 = vadd.f32 %v3010_v61, %v2782_v59 }
 0x40e   : > { %v3679_v19 = vadd.f32 %v3647_v34, %v3615_v27  ;;  %v3282_v54 = vadd.f32 %v3244_v12, %v3048_v44 }
 0x410   : > { %3711 = vst.msk [vmem:[%s4616_s16 + $0xd8] sm:$0xff] %vm638_vm2, %v3679_v19  ;;  %v3548_v46 = vadd.f32 %v3510_v3, %v3282_v54 }
 0x412   : > { %v3584_v43 = vadd.f32 %v5666_v56, %v3548_v46 }
 0x413   : > { %v3012_v38 = vpop.f32.mrf.mxu2 }
 0x414   : > { %v3246_v20 = vpop.f32.mrf.mxu3  ;;  %v3616_v13 = vmax.f32 %v3584_v43, 0.0  ;;  %v3049_v9 = vadd.f32 %v3012_v38, %v2783_v49 }
 0x416   : > { %v3680_v2 = vadd.f32 %v3648_v0, %v3616_v13  ;;  %v3283_v50 = vadd.f32 %v3246_v20, %v3049_v9 }
 0x418   : > { %3712 = vst.msk [vmem:[%s4616_s16 + $0xe0] sm:$0xff] %vm638_vm2, %v3680_v2  ;;  %v3549_v31 = vadd.f32 %v3512_v39, %v3283_v50 }
 0x41a   : > { %v3585_v52 = vadd.f32 %v5666_v56, %v3549_v31 }
 0x41b   : > { %v3015_v36 = vpop.f32.mrf.mxu2 }
 0x41c   : > { %v3249_v10 = vpop.f32.mrf.mxu3  ;;  %v3617_v23 = vmax.f32 %v3585_v52, 0.0  ;;  %v3050_v1 = vadd.f32 %v3015_v36, %v2784_v8 }
 0x41e   : > { %v3681_v26 = vadd.f32 %v3649_v14, %v3617_v23  ;;  %v3284_v29 = vadd.f32 %v3249_v10, %v3050_v1 }
 0x420   : > { %3713 = vst.msk [vmem:[%s4616_s16 + $0xe8] sm:$0xff] %vm638_vm2, %v3681_v26  ;;  %v3550_v55 = vadd.f32 %v3515_v47, %v3284_v29 }
 0x422   : > { %v3586_v30 = vadd.f32 %v5666_v56, %v3550_v55 }
 0x423   : > { %v3017_v60 = vpop.f32.mrf.mxu2 }
 0x424   : > { %v3618_v18 = vmax.f32 %v3586_v30, 0.0  ;;  %v3051_v24 = vadd.f32 %v3017_v60, %v2785_v48  ;;  %v3251_v62 = vpop.f32.mrf.mxu3 }
 0x426   : > { %v3682_v16 = vadd.f32 %v3650_v37, %v3618_v18  ;;  %v3285_v35 = vadd.f32 %v3251_v62, %v3051_v24 }
 0x428   : > { %3714 = vst.msk [vmem:[%s4616_s16 + $0xf0] sm:$0xff] %vm638_vm2, %v3682_v16  ;;  %v3551_v6 = vadd.f32 %v3517_v7, %v3285_v35 }
 0x42a   : > { %v3587_v4 = vadd.f32 %v5666_v56, %v3551_v6 }
 0x42c   : > { %v3619_v11 = vmax.f32 %v3587_v4, 0.0 }
 0x42e   : > { %v3683_v58 = vadd.f32 %v3651_v51, %v3619_v11 }
 0x430   : > { %3715 = vst.msk [vmem:[%s4616_s16 + $0xf8] sm:$0xff] %vm638_vm2, %v3683_v58 }
 0x431   : > { %4293 = shalt.err (!%p4290_p3)
}
 0x432   : > { %s4331_s25 = smov 128   ;;  %s4332_s16 = smov 8  }
 0x433   : > { %4213 = dma.vmem_to_hbm [thread:$0]  (%p4401_p5), %s3730_s14, 4096, %s3732_s15, %s3717_s22, %s4331_s25, %s4331_s25, %s4332_s16  }
 0x434 PF: > { %p4219_p4 = scmp.ge.s32.totalorder %s4328_s21, 2  ;;  %s3746_s9 = sand.u32 1, %s4316_s18  }
 0x435   : > { %s3747_s10 = scalar_lea.sflag [#allocation4], %s3746_s9 }
 0x436   : > { %p4216_p7 = pnand %p4219_p4, %p4405_p6 }
 0x438   : > { %p4217_p8 = pneg %p4216_p7 }
 0x43a   : > { %4311 = dma.done.wait (%p4217_p8), %s3747_s10, 4096  }
 0x43b   : > { %4313 = vsyncadd (%p4217_p8), %s3747_s10, 4294963200  ;;  %p15_p9 = scmp.ge.s32.totalorder %s4388_s24, 4   ;;  %s6149_s18 = smov %s4320_s19 }
 0x43c   : > { %s6150_s19 = smov %s4324_s20  ;;  %s6151_s20 = smov %s4399_s27 }
 0x43d   : > { %s6152_s21 = smov %s4388_s24  ;;  %17 = sbr.rel (!%p15_p9) target bundleno = 3 (0x3), region = 83 }
 0x442   :  { %3753 = vsyncpa [#allocation4], 1 }
 0x443   :  { %3755 = vsyncpa [#allocation4 + $0x1], 1 }

</bundles_post_ra>
